<compile_context>
chip_gen: v5e
topology: v5e:2x2
jax: 0.10.0
libtpu: 0.0.40
codegen_flags: <defaults>
</compile_context>

<pallas_src>
import functools

import jax
import jax.numpy as jnp
from jax import lax
from jax.experimental import pallas as pl
from jax.experimental.pallas import tpu as pltpu

_CLAMP_MIN = 753.0
_CLAMP_MAX = -8162.0
_VMEM_LIMIT = 32 * 1024 * 1024  # <= physical VMEM on v5e/v6e/v7x, >= defaults


def _round_up(x, m):
    return (x + m - 1) // m * m


# ---------------------------------------------------------------------------
# Kernel 1: tiled GEMM + bias  (conv1 as im2col matmul; single K block = 256)
# ---------------------------------------------------------------------------
def _mm_bias_kernel(x_ref, w_ref, b_ref, o_ref):
    acc = jnp.dot(x_ref[...], w_ref[...], preferred_element_type=jnp.float32)
    o_ref[...] = (acc + b_ref[...]).astype(o_ref.dtype)


def _matmul_bias(patches, w_mat, bias, *, tm):
    Mp, K = patches.shape
    Cout = w_mat.shape[1]
    cost = pl.CostEstimate(
        flops=2 * Mp * K * Cout,
        transcendentals=0,
        bytes_accessed=4 * (Mp * K + K * Cout + Mp * Cout),
    )
    return pl.pallas_call(
        _mm_bias_kernel,
        out_shape=jax.ShapeDtypeStruct((Mp, Cout), jnp.float32),
        grid=(Mp // tm,),
        in_specs=[
            pl.BlockSpec((tm, K), lambda i: (i, 0)),
            pl.BlockSpec((K, Cout), lambda i: (0, 0)),
            pl.BlockSpec((1, Cout), lambda i: (0, 0)),
        ],
        out_specs=pl.BlockSpec((tm, Cout), lambda i: (i, 0)),
        compiler_params=pltpu.CompilerParams(
            dimension_semantics=("parallel",),
            vmem_limit_bytes=_VMEM_LIMIT,
        ),
        cost_estimate=cost,
    )(patches, w_mat, bias.reshape(1, Cout))


# ---------------------------------------------------------------------------
# Kernel 2: conv2 as tap-accumulated GEMM.
#   x_ref : (5*Wp, KW*Cin)   shifted slab for (row-block i, tap kh)
#   w_ref : (KH, KW*Cin, Cout) resident weights, indexed dynamically by kh
#   acc   : VMEM f32 accumulator over the kh reduction axis
# ---------------------------------------------------------------------------
def _conv2_tap_kernel(x_ref, w_ref, b_ref, o_ref, acc_ref, *, n_kh,
                      clamp_min, clamp_max):
    kh = pl.program_id(1)

    @pl.when(kh == 0)
    def _init():
        acc_ref[...] = jnp.zeros_like(acc_ref)

    acc_ref[...] += jnp.dot(x_ref[...], w_ref[kh],
                            preferred_element_type=jnp.float32)

    @pl.when(kh == n_kh - 1)
    def _finalize():
        out = acc_ref[...] + b_ref[...]
        if clamp_min is not None:
            out = jnp.maximum(out, clamp_min)   # torch.clamp_min
        if clamp_max is not None:
            out = jnp.minimum(out, clamp_max)   # torch.clamp_max
        o_ref[...] = out.astype(o_ref.dtype)


def _conv2_pallas(xflat, w_stack, bias, *, Wp, Hout_p, dil,
                  clamp_min, clamp_max):
    KH, Kdim, Cout = w_stack.shape          # (3, 768, 256)
    tr_rows = dil * Wp                       # flat rows per block (dil out rows)
    n_blocks = Hout_p // dil
    Mout = Hout_p * Wp

    kernel = functools.partial(_conv2_tap_kernel, n_kh=KH,
                               clamp_min=clamp_min, clamp_max=clamp_max)
    cost = pl.CostEstimate(
        flops=2 * Mout * Kdim * Cout * KH,
        transcendentals=0,
        bytes_accessed=4 * (n_blocks * KH * tr_rows * Kdim
                            + KH * Kdim * Cout + Mout * Cout),
    )
    return pl.pallas_call(
        kernel,
        out_shape=jax.ShapeDtypeStruct((Mout, Cout), jnp.float32),
        grid=(n_blocks, KH),
        in_specs=[
            # dilated row shift of kh*dil rows == kh blocks of dil*Wp flat rows
            pl.BlockSpec((tr_rows, Kdim), lambda i, kh: (i + kh, 0)),
            pl.BlockSpec((KH, Kdim, Cout), lambda i, kh: (0, 0, 0)),
            pl.BlockSpec((1, Cout), lambda i, kh: (0, 0)),
        ],
        out_specs=pl.BlockSpec((tr_rows, Cout), lambda i, kh: (i, 0)),
        scratch_shapes=[pltpu.VMEM((tr_rows, Cout), jnp.float32)],
        compiler_params=pltpu.CompilerParams(
            dimension_semantics=("parallel", "arbitrary"),
            vmem_limit_bytes=_VMEM_LIMIT,
        ),
        cost_estimate=cost,
    )(xflat, w_stack, bias.reshape(1, Cout))


# ---------------------------------------------------------------------------
# Glue: conv1 (im2col, stride 1, no pad, no dilation), HWC in -> HWC out
# ---------------------------------------------------------------------------
def conv1_hwc(x_hwc, weight, bias, *, tm=256):
    H, W, Cin = x_hwc.shape
    Cout, _, KH, KW = weight.shape
    Hout, Wout = H - KH + 1, W - KW + 1

    cols = [x_hwc[kh:kh + Hout, kw:kw + Wout, :]
            for kh in range(KH) for kw in range(KW)]
    K = KH * KW * Cin                                   # 225
    patches = jnp.stack(cols, axis=2).reshape(Hout * Wout, K)

    Kp = _round_up(K, 128)                              # 225 -> 256 (unmasked MXU)
    M = Hout * Wout
    Mp = _round_up(M, tm)
    patches = jnp.pad(patches, ((0, Mp - M), (0, Kp - K)))

    w_mat = jnp.transpose(weight, (2, 3, 1, 0)).reshape(K, Cout)
    w_mat = jnp.pad(w_mat, ((0, Kp - K), (0, 0)))

    out = _matmul_bias(patches, w_mat, bias, tm=tm)
    return out[:M].reshape(Hout, Wout, Cout)            # stays HWC


# ---------------------------------------------------------------------------
# Glue: conv2 (stride 1, pad 2, dilation 5) + fused clamp, HWC in -> HWC out
# ---------------------------------------------------------------------------
def conv2_fused_hwc(y1, weight, bias, *, pad=2, dil=5,
                    clamp_min=None, clamp_max=None):
    Hin, Win, Cin = y1.shape
    Cout, _, KH, KW = weight.shape
    eff_kh = dil * (KH - 1) + 1
    eff_kw = dil * (KW - 1) + 1
    Hout = Hin + 2 * pad - eff_kh + 1
    Wout = Win + 2 * pad - eff_kw + 1

    Hout_p = _round_up(Hout, dil)                 # row-blocks of `dil` rows
    Wp = _round_up(Win + 2 * pad, 8)              # aligned sublane width
    Hp = Hout_p + dil * (KH - 1)                  # rows incl. halo

    pad_bottom = Hp - Hin - pad                   # >= pad (extra rows are zeros)
    pad_right = Wp + dil * (KW - 1) - Win - pad   # >= pad
    y1e = jnp.pad(y1, ((pad, pad_bottom), (pad, pad_right), (0, 0)))

    # kw-concat along channels: xk[r, c, kw, :] = y1e[r, c + kw*dil, :]
    xk = jnp.stack([y1e[:, kw * dil: kw * dil + Wp, :] for kw in range(KW)],
                   axis=2)
    xflat = xk.reshape(Hp * Wp, KW * Cin)         # (Hp*Wp, 768)

    # OIHW -> (KH, KW*Cin, Cout), matching the kw-major / cin-minor K ordering
    w_stack = jnp.transpose(weight, (2, 3, 1, 0)).reshape(KH, KW * Cin, Cout)

    out = _conv2_pallas(xflat, w_stack, bias, Wp=Wp, Hout_p=Hout_p, dil=dil,
                        clamp_min=clamp_min, clamp_max=clamp_max)
    return out.reshape(Hout_p, Wp, Cout)[:Hout, :Wout, :]


# ---------------------------------------------------------------------------
# Model forward (NCHW in / NCHW out, batch handled by an unrolled loop)
# ---------------------------------------------------------------------------
@functools.partial(jax.jit, static_argnames=("return_intermediates",))
def model_forward(params, x, return_intermediates=False):
    v0s, v1s, v3s = [], [], []
    for n in range(x.shape[0]):
        x_hwc = jnp.transpose(x[n], (1, 2, 0))                 # NCHW -> HWC
        y1 = conv1_hwc(x_hwc, params["w1"], params["b1"])      # HWC, stays HWC
        y3 = conv2_fused_hwc(y1, params["w2"], params["b2"],
                             clamp_min=_CLAMP_MIN, clamp_max=_CLAMP_MAX)
        v3s.append(jnp.transpose(y3, (2, 0, 1)))
        if return_intermediates:
            v0s.append(jnp.transpose(y1, (2, 0, 1)))
            v1 = conv2_fused_hwc(y1, params["w2"], params["b2"])  # no clamp
            v1s.append(jnp.transpose(v1, (2, 0, 1)))
    v3 = jnp.stack(v3s, axis=0)
    if return_intermediates:
        return jnp.stack(v0s, axis=0), jnp.stack(v1s, axis=0), v3
    return v3


# ---------------------------------------------------------------------------
# Reference (plain JAX) and parameter init (PyTorch-like uniform init)
# ---------------------------------------------------------------------------
def reference_forward(params, x):
    dn = ("NCHW", "OIHW", "NCHW")
    v0 = lax.conv_general_dilated(
        x, params["w1"], (1, 1), [(0, 0), (0, 0)], rhs_dilation=(1, 1),
        dimension_numbers=dn, precision=lax.Precision.HIGHEST,
    ) + params["b1"][None, :, None, None]
    v1 = lax.conv_general_dilated(
        v0, params["w2"], (1, 1), [(2, 2), (2, 2)], rhs_dilation=(5, 5),
        dimension_numbers=dn, precision=lax.Precision.HIGHEST,
    ) + params["b2"][None, :, None, None]
    v3 = jnp.minimum(jnp.maximum(v1, _CLAMP_MIN), _CLAMP_MAX)
    return v0, v1, v3


def init_params(key):
    k1, k2, k3, k4 = jax.random.split(key, 4)
    b1lim = 1.0 / jnp.sqrt(9 * 5 * 5)
    b2lim = 1.0 / jnp.sqrt(256 * 3 * 3)
    return {
        "w1": jax.random.uniform(k1, (256, 9, 5, 5), jnp.float32, -b1lim, b1lim),
        "b1": jax.random.uniform(k2, (256,), jnp.float32, -b1lim, b1lim),
        "w2": jax.random.uniform(k3, (256, 256, 3, 3), jnp.float32, -b2lim, b2lim),
        "b2": jax.random.uniform(k4, (256,), jnp.float32, -b2lim, b2lim),
    }


if __name__ == "__main__":
    key = jax.random.PRNGKey(0)
    pkey, xkey = jax.random.split(key)
    params = init_params(pkey)

    # Module implies (1, 9, 100, 100); use a small consistent shape.
    x = jax.random.normal(xkey, (1, 9, 28, 28), jnp.float32)

    v3 = jax.block_until_ready(model_forward(params, x))
    assert v3.shape == (1, 256, 18, 18), v3.shape

    # Correctness: check conv1, un-clamped conv2, and the final clamped output.
    v0, v1, v3d = model_forward(params, x, return_intermediates=True)
    v0 = jax.block_until_ready(v0)
    v0_ref, v1_ref, v3_ref = reference_forward(params, x)
    assert jnp.allclose(v0, v0_ref, rtol=1e-2, atol=1e-2), "conv1 mismatch"
    assert jnp.allclose(v1, v1_ref, rtol=1e-2, atol=1e-2), "conv2 mismatch"
    assert jnp.allclose(v3, v3_ref), "clamped output mismatch"
    assert jnp.allclose(v3d, v3_ref), "clamped output (debug path) mismatch"

    print("KERNEL_OK")
</pallas_src>

<mosaic_0001>
module attributes {stable_mosaic.version = 11 : i64} {
  func.func @_mm_bias_kernel(%arg0: i32, %arg1: memref<256x256xf32, #tpu.memory_space<vmem>>, %arg2: memref<256x256xf32, #tpu.memory_space<vmem>>, %arg3: memref<1x256xf32, #tpu.memory_space<vmem>>, %arg4: memref<256x256xf32, #tpu.memory_space<vmem>>) attributes {dimension_semantics = [#tpu.dimension_semantics<parallel>], iteration_bounds = array<i64: 3>, scalar_prefetch = 0 : i64, scratch_operands = 0 : i64, tpu.core_type = #tpu.core_type<tc>, window_params = [{transform_indices = @transform_0, window_bounds = array<i64: 256, 256>}, {pipeline_mode = #tpu.pipeline_mode<synchronous>, transform_indices = @transform_1, window_bounds = array<i64: 256, 256>}, {pipeline_mode = #tpu.pipeline_mode<synchronous>, transform_indices = @transform_2, window_bounds = array<i64: 1, 256>}, {transform_indices = @transform_3, window_bounds = array<i64: 256, 256>}]} {
    %c0 = arith.constant 0 : index
    %c0_0 = arith.constant 0 : index
    %0 = vector.load %arg1[%c0, %c0_0] : memref<256x256xf32, #tpu.memory_space<vmem>>, vector<256x256xf32>
    %c0_1 = arith.constant 0 : index
    %c0_2 = arith.constant 0 : index
    %1 = vector.load %arg2[%c0_1, %c0_2] : memref<256x256xf32, #tpu.memory_space<vmem>>, vector<256x256xf32>
    %cst = arith.constant dense<0.000000e+00> : vector<256x256xf32>
    %2 = tpu.matmul %0, %1, %cst {dimension_numbers = #tpu.dot_dimension_numbers<[1], [0], [0], [1], [0, 0, 1, 1], [], []>} : vector<256x256xf32>, vector<256x256xf32>, vector<256x256xf32> -> vector<256x256xf32>
    %c0_3 = arith.constant 0 : index
    %c0_4 = arith.constant 0 : index
    %3 = vector.load %arg3[%c0_3, %c0_4] : memref<1x256xf32, #tpu.memory_space<vmem>>, vector<1x256xf32>
    %4 = vector.broadcast %3 : vector<1x256xf32> to vector<256x256xf32>
    %5 = arith.addf %2, %4 : vector<256x256xf32>
    %c0_5 = arith.constant 0 : index
    %c0_6 = arith.constant 0 : index
    %6 = vector.load %arg4[%c0_5, %c0_6] : memref<256x256xf32, #tpu.memory_space<vmem>>, vector<256x256xf32>
    tpu.vector_store %arg4[%c0_5, %c0_6], %5 {strides = array<i32>} : memref<256x256xf32, #tpu.memory_space<vmem>>, vector<256x256xf32>,
    return
  }
  func.func @transform_0(%arg0: i32) -> (i32, i32) {
    %c0_i32 = arith.constant 0 : i32
    %c0_i32_0 = arith.constant 0 : i32
    return %arg0, %c0_i32 : i32, i32
  }
  func.func @transform_1(%arg0: i32) -> (i32, i32) {
    %c0_i32 = arith.constant 0 : i32
    %c0_i32_0 = arith.constant 0 : i32
    %c0_i32_1 = arith.constant 0 : i32
    return %c0_i32, %c0_i32_0 : i32, i32
  }
  func.func @transform_2(%arg0: i32) -> (i32, i32) {
    %c0_i32 = arith.constant 0 : i32
    %c0_i32_0 = arith.constant 0 : i32
    %c0_i32_1 = arith.constant 0 : i32
    return %c0_i32, %c0_i32_0 : i32, i32
  }
  func.func @transform_3(%arg0: i32) -> (i32, i32) {
    %c0_i32 = arith.constant 0 : i32
    %c0_i32_0 = arith.constant 0 : i32
    return %arg0, %c0_i32 : i32, i32
  }
}

module attributes {stable_mosaic.version = 11 : i64} {
  func.func @_conv2_tap_kernel(%arg0: i32, %arg1: i32, %arg2: memref<160x768xf32, #tpu.memory_space<vmem>>, %arg3: memref<3x768x256xf32, #tpu.memory_space<vmem>>, %arg4: memref<1x256xf32, #tpu.memory_space<vmem>>, %arg5: memref<160x256xf32, #tpu.memory_space<vmem>>, %arg6: memref<160x256xf32, #tpu.memory_space<vmem>>) attributes {dimension_semantics = [#tpu.dimension_semantics<parallel>, #tpu.dimension_semantics<arbitrary>], iteration_bounds = array<i64: 4, 3>, scalar_prefetch = 0 : i64, scratch_operands = 1 : i64, tpu.core_type = #tpu.core_type<tc>, window_params = [{transform_indices = @transform_0, window_bounds = array<i64: 160, 768>}, {pipeline_mode = #tpu.pipeline_mode<synchronous>, transform_indices = @transform_1, window_bounds = array<i64: 3, 768, 256>}, {pipeline_mode = #tpu.pipeline_mode<synchronous>, transform_indices = @transform_2, window_bounds = array<i64: 1, 256>}, {transform_indices = @transform_3, window_bounds = array<i64: 160, 256>}]} {
    %c0_i32 = arith.constant 0 : i32
    %0 = arith.cmpi eq, %arg1, %c0_i32 : i32
    %1 = arith.extui %0 : i1 to i32
    %c0_i32_0 = arith.constant 0 : i32
    %2 = arith.cmpi ne, %1, %c0_i32_0 : i32
    scf.if %2 {
      %cst_9 = arith.constant 0.000000e+00 : f32
      %14 = vector.broadcast %cst_9 : f32 to vector<160x256xf32>
      %c0_10 = arith.constant 0 : index
      %c0_11 = arith.constant 0 : index
      %15 = vector.load %arg6[%c0_10, %c0_11] : memref<160x256xf32, #tpu.memory_space<vmem>>, vector<160x256xf32>
      tpu.vector_store %arg6[%c0_10, %c0_11], %14 {strides = array<i32>} : memref<160x256xf32, #tpu.memory_space<vmem>>, vector<160x256xf32>,
    } else {
    }
    %c0 = arith.constant 0 : index
    %c0_1 = arith.constant 0 : index
    %3 = vector.load %arg6[%c0, %c0_1] : memref<160x256xf32, #tpu.memory_space<vmem>>, vector<160x256xf32>
    %c0_2 = arith.constant 0 : index
    %c0_3 = arith.constant 0 : index
    %4 = vector.load %arg2[%c0_2, %c0_3] : memref<160x768xf32, #tpu.memory_space<vmem>>, vector<160x768xf32>
    %5 = arith.index_cast %arg1 : i32 to index
    %c0_4 = arith.constant 0 : index
    %c0_5 = arith.constant 0 : index
    %6 = vector.load %arg3[%5, %c0_4, %c0_5] : memref<3x768x256xf32, #tpu.memory_space<vmem>>, vector<1x768x256xf32>
    %7 = vector.shape_cast %6 : vector<1x768x256xf32> to vector<768x256xf32>
    %cst = arith.constant dense<0.000000e+00> : vector<160x256xf32>
    %8 = tpu.matmul %4, %7, %cst {dimension_numbers = #tpu.dot_dimension_numbers<[1], [0], [0], [1], [0, 0, 1, 1], [], []>} : vector<160x768xf32>, vector<768x256xf32>, vector<160x256xf32> -> vector<160x256xf32>
    %9 = arith.addf %3, %8 : vector<160x256xf32>
    %c0_6 = arith.constant 0 : index
    %c0_7 = arith.constant 0 : index
    %10 = vector.load %arg6[%c0_6, %c0_7] : memref<160x256xf32, #tpu.memory_space<vmem>>, vector<160x256xf32>
    tpu.vector_store %arg6[%c0_6, %c0_7], %9 {strides = array<i32>} : memref<160x256xf32, #tpu.memory_space<vmem>>, vector<160x256xf32>,
    %c2_i32 = arith.constant 2 : i32
    %11 = arith.cmpi eq, %arg1, %c2_i32 : i32
    %12 = arith.extui %11 : i1 to i32
    %c0_i32_8 = arith.constant 0 : i32
    %13 = arith.cmpi ne, %12, %c0_i32_8 : i32
    scf.if %13 {
      %c0_9 = arith.constant 0 : index
      %c0_10 = arith.constant 0 : index
      %14 = vector.load %arg6[%c0_9, %c0_10] : memref<160x256xf32, #tpu.memory_space<vmem>>, vector<160x256xf32>
      %c0_11 = arith.constant 0 : index
      %c0_12 = arith.constant 0 : index
      %15 = vector.load %arg4[%c0_11, %c0_12] : memref<1x256xf32, #tpu.memory_space<vmem>>, vector<1x256xf32>
      %16 = vector.broadcast %15 : vector<1x256xf32> to vector<160x256xf32>
      %17 = arith.addf %14, %16 : vector<160x256xf32>
      %cst_13 = arith.constant 7.530000e+02 : f32
      %18 = vector.broadcast %cst_13 : f32 to vector<160x256xf32>
      %19 = arith.maximumf %17, %18 : vector<160x256xf32>
      %cst_14 = arith.constant -8.162000e+03 : f32
      %20 = vector.broadcast %cst_14 : f32 to vector<160x256xf32>
      %21 = arith.minimumf %19, %20 : vector<160x256xf32>
      %c0_15 = arith.constant 0 : index
      %c0_16 = arith.constant 0 : index
      %22 = vector.load %arg5[%c0_15, %c0_16] : memref<160x256xf32, #tpu.memory_space<vmem>>, vector<160x256xf32>
      tpu.vector_store %arg5[%c0_15, %c0_16], %21 {strides = array<i32>} : memref<160x256xf32, #tpu.memory_space<vmem>>, vector<160x256xf32>,
    } else {
    }
    return
  }
  func.func @transform_0(%arg0: i32, %arg1: i32) -> (i32, i32) {
    %0 = arith.addi %arg0, %arg1 : i32
    %c0_i32 = arith.constant 0 : i32
    %c0_i32_0 = arith.constant 0 : i32
    return %0, %c0_i32 : i32, i32
  }
  func.func @transform_1(%arg0: i32, %arg1: i32) -> (i32, i32, i32) {
    %c0_i32 = arith.constant 0 : i32
    %c0_i32_0 = arith.constant 0 : i32
    %c0_i32_1 = arith.constant 0 : i32
    %c0_i32_2 = arith.constant 0 : i32
    return %c0_i32, %c0_i32_0, %c0_i32_1 : i32, i32, i32
  }
  func.func @transform_2(%arg0: i32, %arg1: i32) -> (i32, i32) {
    %c0_i32 = arith.constant 0 : i32
    %c0_i32_0 = arith.constant 0 : i32
    %c0_i32_1 = arith.constant 0 : i32
    return %c0_i32, %c0_i32_0 : i32, i32
  }
  func.func @transform_3(%arg0: i32, %arg1: i32) -> (i32, i32) {
    %c0_i32 = arith.constant 0 : i32
    %c0_i32_0 = arith.constant 0 : i32
    return %arg0, %c0_i32 : i32, i32
  }
}

</mosaic_0001>

<bundles_post_ra>
// kernel: model_forward.2
= control target key start
LH: loop header
LB: loop body
LE: loop exit
PB: predicated region body
PF: predicated region fallthrough
CT: control target
= control target key end

     0   :  { %s938_s12 = smov 0   ;;  %s1365_s0 = inlined_call_operand.vmem [shape: f32[768,256], index: 0, kind: input, shape index: {}]   ;;  %s1366_s1 = inlined_call_operand.vmem [shape: f32[256,256], index: 1, kind: input, shape index: {}]   ;;  %s1367_s2 = inlined_call_operand.vmem [shape: f32[1,256], index: 2, kind: input, shape index: {}]   ;;  %s1368_s3 = inlined_call_operand.vmem [shape: f32[768,256], index: 3, kind: output, shape index: {}]  }
   0x1 LB: > { %s887_s13 = sadd.s32 4294967295, %s916_s12   ;;  %p891_p0 = scmp.ge.s32.totalorder %s916_s12, 1  ;;  %s916_s12 = sphi %s938_s12, %s13_s12  }
   0x2   : > { %p139_p1 = scmp.lt.s32.totalorder %s916_s12, 4 }
   0x4   : > { %p140_p2 = pnand %p891_p0, %p139_p1 }
   0x5   : > { %s1035_s22 = sshll.u32 (!%p140_p2), %s887_s13, 5 }
   0x6   : > { %143 = sbr.rel (%p140_p2) target bundleno = 428 (0x1ac), region = 32  ;;  %p166_p3 = scmp.lt.s32.totalorder (!%p140_p2), %s1035_s22, 95 }
   0xb   : > { %v274_v0 = vld [vmem:[%s1366_s1 + $0xf8] sm:$0xff]  ;;  %v272_v1 = vld [vmem:[%s1366_s1 + $0xe8] sm:$0xff]  ;;  %v273_v4 = vld [vmem:[%s1366_s1 + $0xf0] sm:$0xff]  ;;  %s1370_s22 = smov (!%p166_p3, %s1035_s22), 95 }
   0xc   : > { %v306_v2 = vld [vmem:[%s1366_s1 + $0x1f8] sm:$0xff]  ;;  %539 = vmatpush.msra.mxu2 %v274_v0  ;;  %v304_v3 = vld [vmem:[%s1366_s1 + $0x1e8] sm:$0xff]  ;;  %313 = vmatpush.msra.mxu0 %v273_v4  ;;  %v271_v7 = vld [vmem:[%s1366_s1 + $0xe0] sm:$0xff]  ;;  %s900_s16 = sshll.u32 %s1370_s22, 4 }
   0xd   : > { %652 = vmatpush.msra.mxu3 %v306_v2  ;;  %v270_v5 = vld [vmem:[%s1366_s1 + $0xd8] sm:$0xff]  ;;  %v268_v8 = vld [vmem:[%s1366_s1 + $0xc8] sm:$0xff]  ;;  %v305_v9 = vld [vmem:[%s1366_s1 + $0x1f0] sm:$0xff]  ;;  %s1133_s4 = scalar_lea.vmem %s1365_s0, %s900_s16  ;;  %s1203_s27 = scalar_lea.vmem %s1368_s3, %s900_s16 }
   0xe   : > { %v302_v6 = vld [vmem:[%s1366_s1 + $0x1d8] sm:$0xff]  ;;  %540 = vmatpush.msra.mxu2 %v272_v1  ;;  %314 = vmatpush.msra.mxu0 %v271_v7  ;;  %v300_v10 = vld [vmem:[%s1366_s1 + $0x1c8] sm:$0xff]  ;;  %v269_v11 = vld [vmem:[%s1366_s1 + $0xd0] sm:$0xff] }
   0xf   : > { %653 = vmatpush.msra.mxu3 %v304_v3  ;;  %426 = vmatpush.msra.mxu1 %v305_v9  ;;  %v303_v12 = vld [vmem:[%s1366_s1 + $0x1e0] sm:$0xff]  ;;  %v301_v14 = vld [vmem:[%s1366_s1 + $0x1d0] sm:$0xff]  ;;  %v266_v15 = vld [vmem:[%s1366_s1 + $0xb8] sm:$0xff] }
  0x10   : > { %541 = vmatpush.msra.mxu2 %v270_v5  ;;  %v267_v13 = vld [vmem:[%s1366_s1 + $0xc0] sm:$0xff]  ;;  %315 = vmatpush.msra.mxu0 %v269_v11  ;;  %v298_v16 = vld [vmem:[%s1366_s1 + $0x1b8] sm:$0xff]  ;;  %v265_v17 = vld [vmem:[%s1366_s1 + $0xb0] sm:$0xff] }
  0x11   : > { %654 = vmatpush.msra.mxu3 %v302_v6  ;;  %427 = vmatpush.msra.mxu1 %v303_v12  ;;  %v299_v18 = vld [vmem:[%s1366_s1 + $0x1c0] sm:$0xff]  ;;  %v264_v19 = vld [vmem:[%s1366_s1 + $0xa8] sm:$0xff]  ;;  %v297_v22 = vld [vmem:[%s1366_s1 + $0x1b0] sm:$0xff] }
  0x12   : > { %542 = vmatpush.msra.mxu2 %v268_v8  ;;  %316 = vmatpush.msra.mxu0 %v267_v13  ;;  %v296_v20 = vld [vmem:[%s1366_s1 + $0x1a8] sm:$0xff]  ;;  %v263_v21 = vld [vmem:[%s1366_s1 + $0xa0] sm:$0xff]  ;;  %v262_v23 = vld [vmem:[%s1366_s1 + $0x98] sm:$0xff] }
  0x13   : > { %655 = vmatpush.msra.mxu3 %v300_v10  ;;  %428 = vmatpush.msra.mxu1 %v301_v14  ;;  %v294_v24 = vld [vmem:[%s1366_s1 + $0x198] sm:$0xff]  ;;  %v261_v25 = vld [vmem:[%s1366_s1 + $0x90] sm:$0xff]  ;;  %v295_v26 = vld [vmem:[%s1366_s1 + $0x1a0] sm:$0xff] }
  0x14   : > { %543 = vmatpush.msra.mxu2 %v266_v15  ;;  %317 = vmatpush.msra.mxu0 %v265_v17  ;;  %v260_v27 = vld [vmem:[%s1366_s1 + $0x88] sm:$0xff]  ;;  %v259_v29 = vld [vmem:[%s1366_s1 + $0x80] sm:$0xff]  ;;  %v293_v30 = vld [vmem:[%s1366_s1 + $0x190] sm:$0xff] }
  0x15   : > { %656 = vmatpush.msra.mxu3 %v298_v16  ;;  %429 = vmatpush.msra.mxu1 %v299_v18  ;;  %v292_v28 = vld [vmem:[%s1366_s1 + $0x188] sm:$0xff]  ;;  %v258_v31 = vld [vmem:[%s1366_s1 + $0x78] sm:$0xff]  ;;  %v257_v33 = vld [vmem:[%s1366_s1 + $0x70] sm:$0xff] }
  0x16   : > { %544 = vmatpush.msra.mxu2 %v264_v19  ;;  %318 = vmatpush.msra.mxu0 %v263_v21  ;;  %v290_v32 = vld [vmem:[%s1366_s1 + $0x178] sm:$0xff]  ;;  %v291_v34 = vld [vmem:[%s1366_s1 + $0x180] sm:$0xff]  ;;  %v256_v35 = vld [vmem:[%s1366_s1 + $0x68] sm:$0xff] }
  0x17   : > { %657 = vmatpush.msra.mxu3 %v296_v20  ;;  %430 = vmatpush.msra.mxu1 %v297_v22  ;;  %v288_v36 = vld [vmem:[%s1366_s1 + $0x168] sm:$0xff]  ;;  %v255_v37 = vld [vmem:[%s1366_s1 + $0x60] sm:$0xff]  ;;  %v289_v38 = vld [vmem:[%s1366_s1 + $0x170] sm:$0xff] }
  0x18   : > { %545 = vmatpush.msra.mxu2 %v262_v23  ;;  %319 = vmatpush.msra.mxu0 %v261_v25  ;;  %v254_v39 = vld [vmem:[%s1366_s1 + $0x58] sm:$0xff]  ;;  %v253_v41 = vld [vmem:[%s1366_s1 + $0x50] sm:$0xff]  ;;  %v287_v42 = vld [vmem:[%s1366_s1 + $0x160] sm:$0xff] }
  0x19   : > { %658 = vmatpush.msra.mxu3 %v294_v24  ;;  %431 = vmatpush.msra.mxu1 %v295_v26  ;;  %v286_v40 = vld [vmem:[%s1366_s1 + $0x158] sm:$0xff]  ;;  %v252_v43 = vld [vmem:[%s1366_s1 + $0x48] sm:$0xff]  ;;  %v251_v45 = vld [vmem:[%s1366_s1 + $0x40] sm:$0xff] }
  0x1a   : > { %546 = vmatpush.msra.mxu2 %v260_v27  ;;  %320 = vmatpush.msra.mxu0 %v259_v29  ;;  %v284_v44 = vld [vmem:[%s1366_s1 + $0x148] sm:$0xff]  ;;  %v285_v46 = vld [vmem:[%s1366_s1 + $0x150] sm:$0xff]  ;;  %v250_v47 = vld [vmem:[%s1366_s1 + $0x38] sm:$0xff] }
  0x1b   : > { %659 = vmatpush.msra.mxu3 %v292_v28  ;;  %432 = vmatpush.msra.mxu1 %v293_v30  ;;  %v282_v48 = vld [vmem:[%s1366_s1 + $0x138] sm:$0xff]  ;;  %v249_v49 = vld [vmem:[%s1366_s1 + $0x30] sm:$0xff]  ;;  %v283_v50 = vld [vmem:[%s1366_s1 + $0x140] sm:$0xff] }
  0x1c   : > { %547 = vmatpush.msra.mxu2 %v258_v31  ;;  %321 = vmatpush.msra.mxu0 %v257_v33  ;;  %v248_v51 = vld [vmem:[%s1366_s1 + $0x28] sm:$0xff]  ;;  %v247_v53 = vld [vmem:[%s1366_s1 + $0x20] sm:$0xff]  ;;  %v281_v54 = vld [vmem:[%s1366_s1 + $0x130] sm:$0xff] }
  0x1d   : > { %660 = vmatpush.msra.mxu3 %v290_v32  ;;  %433 = vmatpush.msra.mxu1 %v291_v34  ;;  %v280_v52 = vld [vmem:[%s1366_s1 + $0x128] sm:$0xff]  ;;  %v246_v55 = vld [vmem:[%s1366_s1 + $0x18] sm:$0xff]  ;;  %v245_v57 = vld [vmem:[%s1366_s1 + $0x10] sm:$0xff] }
  0x1e   : > { %548 = vmatpush.msra.mxu2 %v256_v35  ;;  %322 = vmatpush.msra.mxu0 %v255_v37  ;;  %v278_v56 = vld [vmem:[%s1366_s1 + $0x118] sm:$0xff]  ;;  %v279_v58 = vld [vmem:[%s1366_s1 + $0x120] sm:$0xff]  ;;  %v244_v59 = vld [vmem:[%s1366_s1 + $0x8] sm:$0xff] }
  0x1f   : > { %661 = vmatpush.msra.mxu3 %v288_v36  ;;  %434 = vmatpush.msra.mxu1 %v289_v38  ;;  %v276_v60 = vld [vmem:[%s1366_s1 + $0x108] sm:$0xff]  ;;  %v179_v61 = vld [vmem:[%s1133_s4] sm:$0xff]  ;;  %v277_v0 = vld [vmem:[%s1366_s1 + $0x110] sm:$0xff] }
  0x20   : > { %549 = vmatpush.msra.mxu2 %v254_v39  ;;  %323 = vmatpush.msra.mxu0 %v253_v41  ;;  %v180_v62 = vld [vmem:[%s1133_s4 + $0x8] sm:$0xff]  ;;  %v243_v63 = vld [vmem:[%s1366_s1] sm:$0xff]  ;;  %v181_v2 = vld [vmem:[%s1133_s4 + $0x10] sm:$0xff] }
  0x21   : > { %662 = vmatpush.msra.mxu3 %v286_v40  ;;  %435 = vmatpush.msra.mxu1 %v287_v42  ;;  %v275_v1 = vld [vmem:[%s1366_s1 + $0x100] sm:$0xff]  ;;  %v182_v3 = vld [vmem:[%s1133_s4 + $0x18] sm:$0xff]  ;;  %v184_v5 = vld [vmem:[%s1133_s4 + $0x28] sm:$0xff] }
  0x22   : > { %550 = vmatpush.msra.mxu2 %v252_v43  ;;  %324 = vmatpush.msra.mxu0 %v251_v45  ;;  %v183_v4 = vld [vmem:[%s1133_s4 + $0x20] sm:$0xff]  ;;  %v185_v6 = vld [vmem:[%s1133_s4 + $0x30] sm:$0xff]  ;;  %v186_v7 = vld [vmem:[%s1133_s4 + $0x38] sm:$0xff] }
  0x23   : > { %663 = vmatpush.msra.mxu3 %v284_v44  ;;  %436 = vmatpush.msra.mxu1 %v285_v46  ;;  %v187_v8 = vld [vmem:[%s1133_s4 + $0x40] sm:$0xff]  ;;  %v188_v9 = vld [vmem:[%s1133_s4 + $0x48] sm:$0xff]  ;;  %v189_v10 = vld [vmem:[%s1133_s4 + $0x50] sm:$0xff] }
  0x24   : > { %551 = vmatpush.msra.mxu2 %v250_v47  ;;  %325 = vmatpush.msra.mxu0 %v249_v49  ;;  %v190_v11 = vld [vmem:[%s1133_s4 + $0x58] sm:$0xff]  ;;  %v191_v12 = vld [vmem:[%s1133_s4 + $0x60] sm:$0xff]  ;;  %v192_v13 = vld [vmem:[%s1133_s4 + $0x68] sm:$0xff] }
  0x25   : > { %664 = vmatpush.msra.mxu3 %v282_v48  ;;  %437 = vmatpush.msra.mxu1 %v283_v50  ;;  %v193_v14 = vld [vmem:[%s1133_s4 + $0x70] sm:$0xff]  ;;  %v194_v15 = vld [vmem:[%s1133_s4 + $0x78] sm:$0xff]  ;;  %v195_v16 = vld [vmem:[%s1133_s4 + $0x80] sm:$0xff] }
  0x26   : > { %552 = vmatpush.msra.mxu2 %v248_v51  ;;  %326 = vmatpush.msra.mxu0 %v247_v53  ;;  %v196_v17 = vld [vmem:[%s1133_s4 + $0x88] sm:$0xff]  ;;  %v197_v18 = vld [vmem:[%s1133_s4 + $0x90] sm:$0xff]  ;;  %v198_v19 = vld [vmem:[%s1133_s4 + $0x98] sm:$0xff] }
  0x27   : > { %665 = vmatpush.msra.mxu3 %v280_v52  ;;  %438 = vmatpush.msra.mxu1 %v281_v54  ;;  %v199_v20 = vld [vmem:[%s1133_s4 + $0xa0] sm:$0xff]  ;;  %v200_v21 = vld [vmem:[%s1133_s4 + $0xa8] sm:$0xff]  ;;  %v201_v22 = vld [vmem:[%s1133_s4 + $0xb0] sm:$0xff] }
  0x28   : > { %553 = vmatpush.msra.mxu2 %v246_v55  ;;  %327 = vmatpush.msra.mxu0 %v245_v57  ;;  %v202_v23 = vld [vmem:[%s1133_s4 + $0xb8] sm:$0xff]  ;;  %v203_v24 = vld [vmem:[%s1133_s4 + $0xc0] sm:$0xff]  ;;  %v204_v25 = vld [vmem:[%s1133_s4 + $0xc8] sm:$0xff] }
  0x29   : > { %666 = vmatpush.msra.mxu3 %v278_v56  ;;  %439 = vmatpush.msra.mxu1 %v279_v58  ;;  %v205_v26 = vld [vmem:[%s1133_s4 + $0xd0] sm:$0xff]  ;;  %v206_v27 = vld [vmem:[%s1133_s4 + $0xd8] sm:$0xff]  ;;  %v207_v28 = vld [vmem:[%s1133_s4 + $0xe0] sm:$0xff] }
  0x2a   : > { %554 = vmatpush.msra.mxu2 %v244_v59  ;;  %328 = vmatpush.msra.mxu0 %v243_v63  ;;  %v208_v29 = vld [vmem:[%s1133_s4 + $0xe8] sm:$0xff]  ;;  %v209_v30 = vld [vmem:[%s1133_s4 + $0xf0] sm:$0xff]  ;;  %v210_v31 = vld [vmem:[%s1133_s4 + $0xf8] sm:$0xff] }
  0x2b   : > { %667 = vmatpush.msra.mxu3 %v276_v60  ;;  %555 = vmatmul.f32.vlgmr.msra.gmra.mxu2 %v179_v61  ;;  %v307_v32 = vld [vmem:[%s1367_s2] sm:$0x3]  ;;  %v212_v35 = vld [vmem:[%s1133_s4 + $0x108] sm:$0xff]  ;;  %v213_v44 = vld [vmem:[%s1133_s4 + $0x110] sm:$0xff] }
  0x2c   : > { %668 = vmatmul.f32.vlgmr.msra.gmra.mxu3 %v180_v62  ;;  %440 = vmatpush.msra.mxu1 %v277_v0  ;;  %v1191_v33 = vperm.slane %v307_v32, 0  ;;  %v211_v34 = vld [vmem:[%s1133_s4 + $0x100] sm:$0xff]  ;;  %v1196_v38 = vperm.slane %v307_v32, 1  ;;  %v214_v45 = vld [vmem:[%s1133_s4 + $0x118] sm:$0xff]  ;;  %v216_v55 = vld [vmem:[%s1133_s4 + $0x128] sm:$0xff] }
  0x2d   : > { %329 = vmatmul.f32.vlgmr.msra.gmra.mxu0 %v179_v61  ;;  %v215_v54 = vld [vmem:[%s1133_s4 + $0x120] sm:$0xff]  ;;  %v217_v0 = vld [vmem:[%s1133_s4 + $0x130] sm:$0xff] }
  0x2e   : > { %441 = vmatpush.msra.mxu1 %v275_v1  ;;  %v218_v1 = vld [vmem:[%s1133_s4 + $0x138] sm:$0xff] }
  0x2f   : > { %442 = vmatmul.f32.vlgmr.msra.gmra.mxu1 %v180_v62 }
  0x33   : > { %558 = vmatmul.f32.gmra.mxu2 %v181_v2 }
  0x34   : > { %671 = vmatmul.f32.gmra.mxu3 %v182_v3 }
  0x35   : > { %332 = vmatmul.f32.gmra.mxu0 %v181_v2 }
  0x37   : > { %445 = vmatmul.f32.gmra.mxu1 %v182_v3 }
  0x3b   : > { %561 = vmatmul.f32.gmra.mxu2 %v183_v4 }
  0x3c   : > { %674 = vmatmul.f32.gmra.mxu3 %v184_v5 }
  0x3d   : > { %335 = vmatmul.f32.gmra.mxu0 %v183_v4 }
  0x3f   : > { %448 = vmatmul.f32.gmra.mxu1 %v184_v5 }
  0x43   : > { %564 = vmatmul.f32.gmra.mxu2 %v185_v6 }
  0x44   : > { %677 = vmatmul.f32.gmra.mxu3 %v186_v7 }
  0x45   : > { %338 = vmatmul.f32.gmra.mxu0 %v185_v6 }
  0x47   : > { %451 = vmatmul.f32.gmra.mxu1 %v186_v7 }
  0x4b   : > { %567 = vmatmul.f32.gmra.mxu2 %v187_v8 }
  0x4c   : > { %680 = vmatmul.f32.gmra.mxu3 %v188_v9 }
  0x4d   : > { %341 = vmatmul.f32.gmra.mxu0 %v187_v8 }
  0x4f   : > { %454 = vmatmul.f32.gmra.mxu1 %v188_v9 }
  0x53   : > { %570 = vmatmul.f32.gmra.mxu2 %v189_v10 }
  0x54   : > { %683 = vmatmul.f32.gmra.mxu3 %v190_v11 }
  0x55   : > { %344 = vmatmul.f32.gmra.mxu0 %v189_v10  ;;  %v219_v10 = vld [vmem:[%s1133_s4 + $0x140] sm:$0xff] }
  0x57   : > { %457 = vmatmul.f32.gmra.mxu1 %v190_v11  ;;  %v220_v11 = vld [vmem:[%s1133_s4 + $0x148] sm:$0xff] }
  0x5b   : > { %573 = vmatmul.f32.gmra.mxu2 %v191_v12 }
  0x5c   : > { %686 = vmatmul.f32.gmra.mxu3 %v192_v13 }
  0x5d   : > { %347 = vmatmul.f32.gmra.mxu0 %v191_v12 }
  0x5f   : > { %460 = vmatmul.f32.gmra.mxu1 %v192_v13 }
  0x63   : > { %576 = vmatmul.f32.gmra.mxu2 %v193_v14 }
  0x64   : > { %689 = vmatmul.f32.gmra.mxu3 %v194_v15 }
  0x65   : > { %350 = vmatmul.f32.gmra.mxu0 %v193_v14 }
  0x67   : > { %463 = vmatmul.f32.gmra.mxu1 %v194_v15 }
  0x6b   : > { %579 = vmatmul.f32.gmra.mxu2 %v195_v16 }
  0x6c   : > { %692 = vmatmul.f32.gmra.mxu3 %v196_v17 }
  0x6d   : > { %353 = vmatmul.f32.gmra.mxu0 %v195_v16 }
  0x6f   : > { %466 = vmatmul.f32.gmra.mxu1 %v196_v17 }
  0x73   : > { %582 = vmatmul.f32.gmra.mxu2 %v197_v18 }
  0x74   : > { %695 = vmatmul.f32.gmra.mxu3 %v198_v19 }
  0x75   : > { %356 = vmatmul.f32.gmra.mxu0 %v197_v18 }
  0x77   : > { %469 = vmatmul.f32.gmra.mxu1 %v198_v19 }
  0x7b   : > { %585 = vmatmul.f32.gmra.mxu2 %v199_v20 }
  0x7c   : > { %698 = vmatmul.f32.gmra.mxu3 %v200_v21 }
  0x7d   : > { %359 = vmatmul.f32.gmra.mxu0 %v199_v20  ;;  %v221_v20 = vld [vmem:[%s1133_s4 + $0x150] sm:$0xff] }
  0x7f   : > { %472 = vmatmul.f32.gmra.mxu1 %v200_v21  ;;  %v222_v21 = vld [vmem:[%s1133_s4 + $0x158] sm:$0xff] }
  0x83   : > { %588 = vmatmul.f32.gmra.mxu2 %v201_v22 }
  0x84   : > { %701 = vmatmul.f32.gmra.mxu3 %v202_v23 }
  0x85   : > { %362 = vmatmul.f32.gmra.mxu0 %v201_v22 }
  0x87   : > { %475 = vmatmul.f32.gmra.mxu1 %v202_v23 }
  0x8b   : > { %591 = vmatmul.f32.gmra.mxu2 %v203_v24 }
  0x8c   : > { %704 = vmatmul.f32.gmra.mxu3 %v204_v25 }
  0x8d   : > { %365 = vmatmul.f32.gmra.mxu0 %v203_v24 }
  0x8f   : > { %478 = vmatmul.f32.gmra.mxu1 %v204_v25 }
  0x93   : > { %594 = vmatmul.f32.gmra.mxu2 %v205_v26 }
  0x94   : > { %707 = vmatmul.f32.gmra.mxu3 %v206_v27 }
  0x95   : > { %368 = vmatmul.f32.gmra.mxu0 %v205_v26 }
  0x97   : > { %481 = vmatmul.f32.gmra.mxu1 %v206_v27 }
  0x9b   : > { %597 = vmatmul.f32.gmra.mxu2 %v207_v28 }
  0x9c   : > { %710 = vmatmul.f32.gmra.mxu3 %v208_v29 }
  0x9d   : > { %371 = vmatmul.f32.gmra.mxu0 %v207_v28 }
  0x9f   : > { %484 = vmatmul.f32.gmra.mxu1 %v208_v29 }
  0xa3   : > { %600 = vmatmul.f32.gmra.mxu2 %v209_v30 }
  0xa4   : > { %713 = vmatmul.f32.gmra.mxu3 %v210_v31 }
  0xa5   : > { %374 = vmatmul.f32.gmra.mxu0 %v209_v30  ;;  %v223_v30 = vld [vmem:[%s1133_s4 + $0x160] sm:$0xff] }
  0xa7   : > { %487 = vmatmul.f32.gmra.mxu1 %v210_v31  ;;  %v224_v31 = vld [vmem:[%s1133_s4 + $0x168] sm:$0xff] }
  0xaa   : > { %v330_v36 = vpop.f32.mrf.mxu0 }
  0xab   : > { %603 = vmatmul.f32.gmra.mxu2 %v211_v34  ;;  %v331_v37 = vadd.f32 %v330_v36, %v1191_v33 }
  0xac   : > { %716 = vmatmul.f32.gmra.mxu3 %v212_v35  ;;  %v443_v39 = vpop.f32.mrf.mxu1 }
  0xad   : > { %v444_v40 = vadd.f32 %v443_v39, %v331_v37  ;;  %377 = vmatmul.f32.gmra.mxu0 %v211_v34 }
  0xae   : > { %v556_v41 = vpop.f32.mrf.mxu2 }
  0xaf   : > { %v669_v42 = vpop.f32.mrf.mxu3  ;;  %v557_v43 = vadd.f32 %v556_v41, %v1196_v38  ;;  %765 = vst [vmem:[%s1203_s27] sm:$0xff] %v444_v40  ;;  %490 = vmatmul.f32.gmra.mxu1 %v212_v35 }
  0xb1   : > { %v670_v46 = vadd.f32 %v669_v42, %v557_v43  ;;  %v225_v42 = vld [vmem:[%s1133_s4 + $0x170] sm:$0xff]  ;;  %v226_v43 = vld [vmem:[%s1133_s4 + $0x178] sm:$0xff] }
  0xb2   : > { %v333_v47 = vpop.f32.mrf.mxu0 }
  0xb3   : > { %766 = vst [vmem:[%s1203_s27 + $0x8] sm:$0xff] %v670_v46  ;;  %606 = vmatmul.f32.gmra.mxu2 %v213_v44  ;;  %v334_v48 = vadd.f32 %v333_v47, %v1191_v33 }
  0xb4   : > { %719 = vmatmul.f32.gmra.mxu3 %v214_v45  ;;  %v446_v49 = vpop.f32.mrf.mxu1 }
  0xb5   : > { %v447_v50 = vadd.f32 %v446_v49, %v334_v48  ;;  %380 = vmatmul.f32.gmra.mxu0 %v213_v44 }
  0xb6   : > { %v559_v51 = vpop.f32.mrf.mxu2 }
  0xb7   : > { %v672_v52 = vpop.f32.mrf.mxu3  ;;  %v560_v53 = vadd.f32 %v559_v51, %v1196_v38  ;;  %767 = vst [vmem:[%s1203_s27 + $0x10] sm:$0xff] %v447_v50  ;;  %493 = vmatmul.f32.gmra.mxu1 %v214_v45 }
  0xb9   : > { %v673_v56 = vadd.f32 %v672_v52, %v560_v53  ;;  %v227_v52 = vld [vmem:[%s1133_s4 + $0x180] sm:$0xff]  ;;  %v228_v53 = vld [vmem:[%s1133_s4 + $0x188] sm:$0xff] }
  0xba   : > { %v336_v57 = vpop.f32.mrf.mxu0 }
  0xbb   : > { %768 = vst [vmem:[%s1203_s27 + $0x18] sm:$0xff] %v673_v56  ;;  %609 = vmatmul.f32.gmra.mxu2 %v215_v54  ;;  %v337_v58 = vadd.f32 %v336_v57, %v1191_v33 }
  0xbc   : > { %722 = vmatmul.f32.gmra.mxu3 %v216_v55  ;;  %v449_v59 = vpop.f32.mrf.mxu1 }
  0xbd   : > { %v450_v60 = vadd.f32 %v449_v59, %v337_v58  ;;  %383 = vmatmul.f32.gmra.mxu0 %v215_v54 }
  0xbe   : > { %v562_v61 = vpop.f32.mrf.mxu2 }
  0xbf   : > { %v675_v62 = vpop.f32.mrf.mxu3  ;;  %v563_v63 = vadd.f32 %v562_v61, %v1196_v38  ;;  %769 = vst [vmem:[%s1203_s27 + $0x20] sm:$0xff] %v450_v60  ;;  %496 = vmatmul.f32.gmra.mxu1 %v216_v55 }
  0xc1   : > { %v676_v2 = vadd.f32 %v675_v62, %v563_v63  ;;  %v229_v62 = vld [vmem:[%s1133_s4 + $0x190] sm:$0xff]  ;;  %v230_v63 = vld [vmem:[%s1133_s4 + $0x198] sm:$0xff] }
  0xc2   : > { %v339_v3 = vpop.f32.mrf.mxu0 }
  0xc3   : > { %770 = vst [vmem:[%s1203_s27 + $0x28] sm:$0xff] %v676_v2  ;;  %612 = vmatmul.f32.gmra.mxu2 %v217_v0  ;;  %v340_v4 = vadd.f32 %v339_v3, %v1191_v33 }
  0xc4   : > { %725 = vmatmul.f32.gmra.mxu3 %v218_v1  ;;  %v452_v5 = vpop.f32.mrf.mxu1 }
  0xc5   : > { %v453_v6 = vadd.f32 %v452_v5, %v340_v4  ;;  %386 = vmatmul.f32.gmra.mxu0 %v217_v0 }
  0xc6   : > { %v565_v7 = vpop.f32.mrf.mxu2 }
  0xc7   : > { %v678_v8 = vpop.f32.mrf.mxu3  ;;  %v566_v9 = vadd.f32 %v565_v7, %v1196_v38  ;;  %771 = vst [vmem:[%s1203_s27 + $0x30] sm:$0xff] %v453_v6  ;;  %499 = vmatmul.f32.gmra.mxu1 %v218_v1 }
  0xc9   : > { %v679_v12 = vadd.f32 %v678_v8, %v566_v9  ;;  %v231_v8 = vld [vmem:[%s1133_s4 + $0x1a0] sm:$0xff]  ;;  %v232_v9 = vld [vmem:[%s1133_s4 + $0x1a8] sm:$0xff] }
  0xca   : > { %v342_v13 = vpop.f32.mrf.mxu0 }
  0xcb   : > { %772 = vst [vmem:[%s1203_s27 + $0x38] sm:$0xff] %v679_v12  ;;  %615 = vmatmul.f32.gmra.mxu2 %v219_v10  ;;  %v343_v14 = vadd.f32 %v342_v13, %v1191_v33 }
  0xcc   : > { %728 = vmatmul.f32.gmra.mxu3 %v220_v11  ;;  %v455_v15 = vpop.f32.mrf.mxu1 }
  0xcd   : > { %v456_v16 = vadd.f32 %v455_v15, %v343_v14  ;;  %389 = vmatmul.f32.gmra.mxu0 %v219_v10 }
  0xce   : > { %v568_v17 = vpop.f32.mrf.mxu2 }
  0xcf   : > { %v681_v18 = vpop.f32.mrf.mxu3  ;;  %v569_v19 = vadd.f32 %v568_v17, %v1196_v38  ;;  %773 = vst [vmem:[%s1203_s27 + $0x40] sm:$0xff] %v456_v16  ;;  %502 = vmatmul.f32.gmra.mxu1 %v220_v11 }
  0xd1   : > { %v682_v22 = vadd.f32 %v681_v18, %v569_v19  ;;  %v233_v18 = vld [vmem:[%s1133_s4 + $0x1b0] sm:$0xff]  ;;  %v234_v19 = vld [vmem:[%s1133_s4 + $0x1b8] sm:$0xff] }
  0xd2   : > { %v345_v23 = vpop.f32.mrf.mxu0 }
  0xd3   : > { %774 = vst [vmem:[%s1203_s27 + $0x48] sm:$0xff] %v682_v22  ;;  %618 = vmatmul.f32.gmra.mxu2 %v221_v20  ;;  %v346_v24 = vadd.f32 %v345_v23, %v1191_v33 }
  0xd4   : > { %731 = vmatmul.f32.gmra.mxu3 %v222_v21  ;;  %v458_v25 = vpop.f32.mrf.mxu1 }
  0xd5   : > { %v459_v26 = vadd.f32 %v458_v25, %v346_v24  ;;  %392 = vmatmul.f32.gmra.mxu0 %v221_v20 }
  0xd6   : > { %v571_v27 = vpop.f32.mrf.mxu2 }
  0xd7   : > { %v684_v28 = vpop.f32.mrf.mxu3  ;;  %v572_v29 = vadd.f32 %v571_v27, %v1196_v38  ;;  %775 = vst [vmem:[%s1203_s27 + $0x50] sm:$0xff] %v459_v26  ;;  %505 = vmatmul.f32.gmra.mxu1 %v222_v21 }
  0xd9   : > { %v685_v32 = vadd.f32 %v684_v28, %v572_v29  ;;  %v235_v28 = vld [vmem:[%s1133_s4 + $0x1c0] sm:$0xff]  ;;  %v236_v29 = vld [vmem:[%s1133_s4 + $0x1c8] sm:$0xff] }
  0xda   : > { %v348_v34 = vpop.f32.mrf.mxu0 }
  0xdb   : > { %776 = vst [vmem:[%s1203_s27 + $0x58] sm:$0xff] %v685_v32  ;;  %621 = vmatmul.f32.gmra.mxu2 %v223_v30  ;;  %v349_v35 = vadd.f32 %v348_v34, %v1191_v33 }
  0xdc   : > { %734 = vmatmul.f32.gmra.mxu3 %v224_v31  ;;  %v461_v36 = vpop.f32.mrf.mxu1 }
  0xdd   : > { %v462_v37 = vadd.f32 %v461_v36, %v349_v35  ;;  %395 = vmatmul.f32.gmra.mxu0 %v223_v30 }
  0xde   : > { %v574_v39 = vpop.f32.mrf.mxu2 }
  0xdf   : > { %v687_v40 = vpop.f32.mrf.mxu3  ;;  %v575_v41 = vadd.f32 %v574_v39, %v1196_v38  ;;  %777 = vst [vmem:[%s1203_s27 + $0x60] sm:$0xff] %v462_v37  ;;  %508 = vmatmul.f32.gmra.mxu1 %v224_v31 }
  0xe1   : > { %v688_v44 = vadd.f32 %v687_v40, %v575_v41  ;;  %v237_v40 = vld [vmem:[%s1133_s4 + $0x1d0] sm:$0xff]  ;;  %v238_v41 = vld [vmem:[%s1133_s4 + $0x1d8] sm:$0xff] }
  0xe2   : > { %v351_v45 = vpop.f32.mrf.mxu0 }
  0xe3   : > { %778 = vst [vmem:[%s1203_s27 + $0x68] sm:$0xff] %v688_v44  ;;  %624 = vmatmul.f32.gmra.mxu2 %v225_v42  ;;  %v352_v46 = vadd.f32 %v351_v45, %v1191_v33 }
  0xe4   : > { %737 = vmatmul.f32.gmra.mxu3 %v226_v43  ;;  %v464_v47 = vpop.f32.mrf.mxu1 }
  0xe5   : > { %v465_v48 = vadd.f32 %v464_v47, %v352_v46  ;;  %398 = vmatmul.f32.gmra.mxu0 %v225_v42 }
  0xe6   : > { %v577_v49 = vpop.f32.mrf.mxu2 }
  0xe7   : > { %v690_v50 = vpop.f32.mrf.mxu3  ;;  %v578_v51 = vadd.f32 %v577_v49, %v1196_v38  ;;  %779 = vst [vmem:[%s1203_s27 + $0x70] sm:$0xff] %v465_v48  ;;  %511 = vmatmul.f32.gmra.mxu1 %v226_v43 }
  0xe9   : > { %v691_v54 = vadd.f32 %v690_v50, %v578_v51  ;;  %v239_v50 = vld [vmem:[%s1133_s4 + $0x1e0] sm:$0xff]  ;;  %v240_v51 = vld [vmem:[%s1133_s4 + $0x1e8] sm:$0xff] }
  0xea   : > { %v354_v55 = vpop.f32.mrf.mxu0 }
  0xeb   : > { %780 = vst [vmem:[%s1203_s27 + $0x78] sm:$0xff] %v691_v54  ;;  %627 = vmatmul.f32.gmra.mxu2 %v227_v52  ;;  %v355_v56 = vadd.f32 %v354_v55, %v1191_v33 }
  0xec   : > { %740 = vmatmul.f32.gmra.mxu3 %v228_v53  ;;  %v467_v57 = vpop.f32.mrf.mxu1 }
  0xed   : > { %v468_v58 = vadd.f32 %v467_v57, %v355_v56  ;;  %401 = vmatmul.f32.gmra.mxu0 %v227_v52 }
  0xee   : > { %v580_v59 = vpop.f32.mrf.mxu2 }
  0xef   : > { %v693_v60 = vpop.f32.mrf.mxu3  ;;  %v581_v61 = vadd.f32 %v580_v59, %v1196_v38  ;;  %781 = vst [vmem:[%s1203_s27 + $0x80] sm:$0xff] %v468_v58  ;;  %514 = vmatmul.f32.gmra.mxu1 %v228_v53 }
  0xf1   : > { %v694_v0 = vadd.f32 %v693_v60, %v581_v61  ;;  %v241_v60 = vld [vmem:[%s1133_s4 + $0x1f0] sm:$0xff]  ;;  %v242_v61 = vld [vmem:[%s1133_s4 + $0x1f8] sm:$0xff] }
  0xf2   : > { %v357_v1 = vpop.f32.mrf.mxu0 }
  0xf3   : > { %782 = vst [vmem:[%s1203_s27 + $0x88] sm:$0xff] %v694_v0  ;;  %630 = vmatmul.f32.gmra.mxu2 %v229_v62  ;;  %v358_v2 = vadd.f32 %v357_v1, %v1191_v33 }
  0xf4   : > { %743 = vmatmul.f32.gmra.mxu3 %v230_v63  ;;  %v470_v3 = vpop.f32.mrf.mxu1 }
  0xf5   : > { %v471_v4 = vadd.f32 %v470_v3, %v358_v2  ;;  %404 = vmatmul.f32.gmra.mxu0 %v229_v62 }
  0xf6   : > { %v583_v5 = vpop.f32.mrf.mxu2 }
  0xf7   : > { %v696_v6 = vpop.f32.mrf.mxu3  ;;  %v584_v7 = vadd.f32 %v583_v5, %v1196_v38  ;;  %783 = vst [vmem:[%s1203_s27 + $0x90] sm:$0xff] %v471_v4  ;;  %517 = vmatmul.f32.gmra.mxu1 %v230_v63 }
  0xf9   : > { %v697_v10 = vadd.f32 %v696_v6, %v584_v7 }
  0xfa   : > { %v360_v11 = vpop.f32.mrf.mxu0 }
  0xfb   : > { %784 = vst [vmem:[%s1203_s27 + $0x98] sm:$0xff] %v697_v10  ;;  %633 = vmatmul.f32.gmra.mxu2 %v231_v8  ;;  %v361_v12 = vadd.f32 %v360_v11, %v1191_v33 }
  0xfc   : > { %746 = vmatmul.f32.gmra.mxu3 %v232_v9  ;;  %v473_v13 = vpop.f32.mrf.mxu1 }
  0xfd   : > { %v474_v14 = vadd.f32 %v473_v13, %v361_v12  ;;  %407 = vmatmul.f32.gmra.mxu0 %v231_v8 }
  0xfe   : > { %v586_v15 = vpop.f32.mrf.mxu2 }
  0xff   : > { %v699_v16 = vpop.f32.mrf.mxu3  ;;  %v587_v17 = vadd.f32 %v586_v15, %v1196_v38  ;;  %785 = vst [vmem:[%s1203_s27 + $0xa0] sm:$0xff] %v474_v14  ;;  %520 = vmatmul.f32.gmra.mxu1 %v232_v9 }
 0x101   : > { %v700_v20 = vadd.f32 %v699_v16, %v587_v17 }
 0x102   : > { %v363_v21 = vpop.f32.mrf.mxu0 }
 0x103   : > { %786 = vst [vmem:[%s1203_s27 + $0xa8] sm:$0xff] %v700_v20  ;;  %636 = vmatmul.f32.gmra.mxu2 %v233_v18  ;;  %v364_v22 = vadd.f32 %v363_v21, %v1191_v33 }
 0x104   : > { %749 = vmatmul.f32.gmra.mxu3 %v234_v19  ;;  %v476_v23 = vpop.f32.mrf.mxu1 }
 0x105   : > { %v477_v24 = vadd.f32 %v476_v23, %v364_v22  ;;  %410 = vmatmul.f32.gmra.mxu0 %v233_v18 }
 0x106   : > { %v589_v25 = vpop.f32.mrf.mxu2 }
 0x107   : > { %v702_v26 = vpop.f32.mrf.mxu3  ;;  %v590_v27 = vadd.f32 %v589_v25, %v1196_v38  ;;  %787 = vst [vmem:[%s1203_s27 + $0xb0] sm:$0xff] %v477_v24  ;;  %523 = vmatmul.f32.gmra.mxu1 %v234_v19 }
 0x109   : > { %v703_v30 = vadd.f32 %v702_v26, %v590_v27 }
 0x10a   : > { %v366_v31 = vpop.f32.mrf.mxu0 }
 0x10b   : > { %788 = vst [vmem:[%s1203_s27 + $0xb8] sm:$0xff] %v703_v30  ;;  %639 = vmatmul.f32.gmra.mxu2 %v235_v28  ;;  %v367_v32 = vadd.f32 %v366_v31, %v1191_v33 }
 0x10c   : > { %752 = vmatmul.f32.gmra.mxu3 %v236_v29  ;;  %v479_v34 = vpop.f32.mrf.mxu1 }
 0x10d   : > { %v480_v35 = vadd.f32 %v479_v34, %v367_v32  ;;  %413 = vmatmul.f32.gmra.mxu0 %v235_v28 }
 0x10e   : > { %v592_v36 = vpop.f32.mrf.mxu2 }
 0x10f   : > { %v705_v37 = vpop.f32.mrf.mxu3  ;;  %v593_v39 = vadd.f32 %v592_v36, %v1196_v38  ;;  %789 = vst [vmem:[%s1203_s27 + $0xc0] sm:$0xff] %v480_v35  ;;  %526 = vmatmul.f32.gmra.mxu1 %v236_v29 }
 0x111   : > { %v706_v42 = vadd.f32 %v705_v37, %v593_v39 }
 0x112   : > { %v369_v43 = vpop.f32.mrf.mxu0 }
 0x113   : > { %790 = vst [vmem:[%s1203_s27 + $0xc8] sm:$0xff] %v706_v42  ;;  %642 = vmatmul.f32.gmra.mxu2 %v237_v40  ;;  %v370_v44 = vadd.f32 %v369_v43, %v1191_v33 }
 0x114   : > { %755 = vmatmul.f32.gmra.mxu3 %v238_v41  ;;  %v482_v45 = vpop.f32.mrf.mxu1 }
 0x115   : > { %v483_v46 = vadd.f32 %v482_v45, %v370_v44  ;;  %416 = vmatmul.f32.gmra.mxu0 %v237_v40 }
 0x116   : > { %v595_v47 = vpop.f32.mrf.mxu2 }
 0x117   : > { %v708_v48 = vpop.f32.mrf.mxu3  ;;  %v596_v49 = vadd.f32 %v595_v47, %v1196_v38  ;;  %791 = vst [vmem:[%s1203_s27 + $0xd0] sm:$0xff] %v483_v46  ;;  %529 = vmatmul.f32.gmra.mxu1 %v238_v41 }
 0x119   : > { %v709_v52 = vadd.f32 %v708_v48, %v596_v49 }
 0x11a   : > { %v372_v53 = vpop.f32.mrf.mxu0 }
 0x11b   : > { %792 = vst [vmem:[%s1203_s27 + $0xd8] sm:$0xff] %v709_v52  ;;  %645 = vmatmul.f32.gmra.mxu2 %v239_v50  ;;  %v373_v54 = vadd.f32 %v372_v53, %v1191_v33 }
 0x11c   : > { %758 = vmatmul.f32.gmra.mxu3 %v240_v51  ;;  %v485_v55 = vpop.f32.mrf.mxu1 }
 0x11d   : > { %v486_v56 = vadd.f32 %v485_v55, %v373_v54  ;;  %419 = vmatmul.f32.gmra.mxu0 %v239_v50 }
 0x11e   : > { %v598_v57 = vpop.f32.mrf.mxu2 }
 0x11f   : > { %v711_v58 = vpop.f32.mrf.mxu3  ;;  %v599_v59 = vadd.f32 %v598_v57, %v1196_v38  ;;  %793 = vst [vmem:[%s1203_s27 + $0xe0] sm:$0xff] %v486_v56  ;;  %532 = vmatmul.f32.gmra.mxu1 %v240_v51 }
 0x121   : > { %v712_v62 = vadd.f32 %v711_v58, %v599_v59 }
 0x122   : > { %v375_v63 = vpop.f32.mrf.mxu0 }
 0x123   : > { %794 = vst [vmem:[%s1203_s27 + $0xe8] sm:$0xff] %v712_v62  ;;  %648 = vmatmul.f32.gmra.mxu2 %v241_v60  ;;  %v376_v0 = vadd.f32 %v375_v63, %v1191_v33 }
 0x124   : > { %761 = vmatmul.f32.gmra.mxu3 %v242_v61  ;;  %v488_v1 = vpop.f32.mrf.mxu1 }
 0x125   : > { %v489_v2 = vadd.f32 %v488_v1, %v376_v0  ;;  %422 = vmatmul.f32.gmra.mxu0 %v241_v60 }
 0x126   : > { %v601_v3 = vpop.f32.mrf.mxu2 }
 0x127   : > { %v714_v4 = vpop.f32.mrf.mxu3  ;;  %v602_v5 = vadd.f32 %v601_v3, %v1196_v38  ;;  %795 = vst [vmem:[%s1203_s27 + $0xf0] sm:$0xff] %v489_v2  ;;  %535 = vmatmul.f32.gmra.mxu1 %v242_v61 }
 0x129   : > { %v715_v6 = vadd.f32 %v714_v4, %v602_v5 }
 0x12a   : > { %v378_v7 = vpop.f32.mrf.mxu0 }
 0x12b   : > { %796 = vst [vmem:[%s1203_s27 + $0xf8] sm:$0xff] %v715_v6  ;;  %v379_v8 = vadd.f32 %v378_v7, %v1191_v33 }
 0x12c   : > { %v491_v9 = vpop.f32.mrf.mxu1 }
 0x12d   : > { %v492_v10 = vadd.f32 %v491_v9, %v379_v8 }
 0x12e   : > { %v604_v11 = vpop.f32.mrf.mxu2 }
 0x12f   : > { %v717_v12 = vpop.f32.mrf.mxu3  ;;  %v605_v13 = vadd.f32 %v604_v11, %v1196_v38  ;;  %797 = vst [vmem:[%s1203_s27 + $0x100] sm:$0xff] %v492_v10 }
 0x131   : > { %v718_v14 = vadd.f32 %v717_v12, %v605_v13 }
 0x132   : > { %v381_v15 = vpop.f32.mrf.mxu0 }
 0x133   : > { %798 = vst [vmem:[%s1203_s27 + $0x108] sm:$0xff] %v718_v14  ;;  %v382_v16 = vadd.f32 %v381_v15, %v1191_v33 }
 0x134   : > { %v494_v17 = vpop.f32.mrf.mxu1 }
 0x135   : > { %v495_v18 = vadd.f32 %v494_v17, %v382_v16 }
 0x136   : > { %v607_v19 = vpop.f32.mrf.mxu2 }
 0x137   : > { %v720_v20 = vpop.f32.mrf.mxu3  ;;  %v608_v21 = vadd.f32 %v607_v19, %v1196_v38  ;;  %799 = vst [vmem:[%s1203_s27 + $0x110] sm:$0xff] %v495_v18 }
 0x139   : > { %v721_v22 = vadd.f32 %v720_v20, %v608_v21 }
 0x13a   : > { %v384_v23 = vpop.f32.mrf.mxu0 }
 0x13b   : > { %800 = vst [vmem:[%s1203_s27 + $0x118] sm:$0xff] %v721_v22  ;;  %v385_v24 = vadd.f32 %v384_v23, %v1191_v33 }
 0x13c   : > { %v497_v25 = vpop.f32.mrf.mxu1 }
 0x13d   : > { %v498_v26 = vadd.f32 %v497_v25, %v385_v24 }
 0x13e   : > { %v610_v27 = vpop.f32.mrf.mxu2 }
 0x13f   : > { %v723_v28 = vpop.f32.mrf.mxu3  ;;  %v611_v29 = vadd.f32 %v610_v27, %v1196_v38  ;;  %801 = vst [vmem:[%s1203_s27 + $0x120] sm:$0xff] %v498_v26 }
 0x141   : > { %v724_v30 = vadd.f32 %v723_v28, %v611_v29 }
 0x142   : > { %v387_v31 = vpop.f32.mrf.mxu0 }
 0x143   : > { %802 = vst [vmem:[%s1203_s27 + $0x128] sm:$0xff] %v724_v30  ;;  %v388_v32 = vadd.f32 %v387_v31, %v1191_v33 }
 0x144   : > { %v500_v34 = vpop.f32.mrf.mxu1 }
 0x145   : > { %v501_v35 = vadd.f32 %v500_v34, %v388_v32 }
 0x146   : > { %v613_v36 = vpop.f32.mrf.mxu2 }
 0x147   : > { %v726_v37 = vpop.f32.mrf.mxu3  ;;  %v614_v39 = vadd.f32 %v613_v36, %v1196_v38  ;;  %803 = vst [vmem:[%s1203_s27 + $0x130] sm:$0xff] %v501_v35 }
 0x149   : > { %v727_v40 = vadd.f32 %v726_v37, %v614_v39 }
 0x14a   : > { %v390_v41 = vpop.f32.mrf.mxu0 }
 0x14b   : > { %804 = vst [vmem:[%s1203_s27 + $0x138] sm:$0xff] %v727_v40  ;;  %v391_v42 = vadd.f32 %v390_v41, %v1191_v33 }
 0x14c   : > { %v503_v43 = vpop.f32.mrf.mxu1 }
 0x14d   : > { %v504_v44 = vadd.f32 %v503_v43, %v391_v42 }
 0x14e   : > { %v616_v45 = vpop.f32.mrf.mxu2 }
 0x14f   : > { %v729_v46 = vpop.f32.mrf.mxu3  ;;  %v617_v47 = vadd.f32 %v616_v45, %v1196_v38  ;;  %805 = vst [vmem:[%s1203_s27 + $0x140] sm:$0xff] %v504_v44 }
 0x151   : > { %v730_v48 = vadd.f32 %v729_v46, %v617_v47 }
 0x152   : > { %v393_v49 = vpop.f32.mrf.mxu0 }
 0x153   : > { %806 = vst [vmem:[%s1203_s27 + $0x148] sm:$0xff] %v730_v48  ;;  %v394_v50 = vadd.f32 %v393_v49, %v1191_v33 }
 0x154   : > { %v506_v51 = vpop.f32.mrf.mxu1 }
 0x155   : > { %v507_v52 = vadd.f32 %v506_v51, %v394_v50 }
 0x156   : > { %v619_v53 = vpop.f32.mrf.mxu2 }
 0x157   : > { %v732_v54 = vpop.f32.mrf.mxu3  ;;  %v620_v55 = vadd.f32 %v619_v53, %v1196_v38  ;;  %807 = vst [vmem:[%s1203_s27 + $0x150] sm:$0xff] %v507_v52 }
 0x159   : > { %v733_v56 = vadd.f32 %v732_v54, %v620_v55 }
 0x15a   : > { %v396_v57 = vpop.f32.mrf.mxu0 }
 0x15b   : > { %808 = vst [vmem:[%s1203_s27 + $0x158] sm:$0xff] %v733_v56  ;;  %v397_v58 = vadd.f32 %v396_v57, %v1191_v33 }
 0x15c   : > { %v509_v59 = vpop.f32.mrf.mxu1 }
 0x15d   : > { %v510_v60 = vadd.f32 %v509_v59, %v397_v58 }
 0x15e   : > { %v622_v61 = vpop.f32.mrf.mxu2 }
 0x15f   : > { %v735_v62 = vpop.f32.mrf.mxu3  ;;  %v623_v63 = vadd.f32 %v622_v61, %v1196_v38  ;;  %809 = vst [vmem:[%s1203_s27 + $0x160] sm:$0xff] %v510_v60 }
 0x161   : > { %v736_v0 = vadd.f32 %v735_v62, %v623_v63 }
 0x162   : > { %v399_v1 = vpop.f32.mrf.mxu0 }
 0x163   : > { %810 = vst [vmem:[%s1203_s27 + $0x168] sm:$0xff] %v736_v0  ;;  %v400_v2 = vadd.f32 %v399_v1, %v1191_v33 }
 0x164   : > { %v512_v3 = vpop.f32.mrf.mxu1 }
 0x165   : > { %v513_v4 = vadd.f32 %v512_v3, %v400_v2 }
 0x166   : > { %v625_v5 = vpop.f32.mrf.mxu2 }
 0x167   : > { %v738_v6 = vpop.f32.mrf.mxu3  ;;  %v626_v7 = vadd.f32 %v625_v5, %v1196_v38  ;;  %811 = vst [vmem:[%s1203_s27 + $0x170] sm:$0xff] %v513_v4 }
 0x169   : > { %v739_v8 = vadd.f32 %v738_v6, %v626_v7 }
 0x16a   : > { %v402_v9 = vpop.f32.mrf.mxu0 }
 0x16b   : > { %812 = vst [vmem:[%s1203_s27 + $0x178] sm:$0xff] %v739_v8  ;;  %v403_v10 = vadd.f32 %v402_v9, %v1191_v33 }
 0x16c   : > { %v515_v11 = vpop.f32.mrf.mxu1 }
 0x16d   : > { %v516_v12 = vadd.f32 %v515_v11, %v403_v10 }
 0x16e   : > { %v628_v13 = vpop.f32.mrf.mxu2 }
 0x16f   : > { %v741_v14 = vpop.f32.mrf.mxu3  ;;  %v629_v15 = vadd.f32 %v628_v13, %v1196_v38  ;;  %813 = vst [vmem:[%s1203_s27 + $0x180] sm:$0xff] %v516_v12 }
 0x171   : > { %v742_v16 = vadd.f32 %v741_v14, %v629_v15 }
 0x172   : > { %v405_v17 = vpop.f32.mrf.mxu0 }
 0x173   : > { %814 = vst [vmem:[%s1203_s27 + $0x188] sm:$0xff] %v742_v16  ;;  %v406_v18 = vadd.f32 %v405_v17, %v1191_v33 }
 0x174   : > { %v518_v19 = vpop.f32.mrf.mxu1 }
 0x175   : > { %v519_v20 = vadd.f32 %v518_v19, %v406_v18 }
 0x176   : > { %v631_v21 = vpop.f32.mrf.mxu2 }
 0x177   : > { %v744_v22 = vpop.f32.mrf.mxu3  ;;  %v632_v23 = vadd.f32 %v631_v21, %v1196_v38  ;;  %815 = vst [vmem:[%s1203_s27 + $0x190] sm:$0xff] %v519_v20 }
 0x179   : > { %v745_v24 = vadd.f32 %v744_v22, %v632_v23 }
 0x17a   : > { %v408_v25 = vpop.f32.mrf.mxu0 }
 0x17b   : > { %816 = vst [vmem:[%s1203_s27 + $0x198] sm:$0xff] %v745_v24  ;;  %v409_v26 = vadd.f32 %v408_v25, %v1191_v33 }
 0x17c   : > { %v521_v27 = vpop.f32.mrf.mxu1 }
 0x17d   : > { %v522_v28 = vadd.f32 %v521_v27, %v409_v26 }
 0x17e   : > { %v634_v29 = vpop.f32.mrf.mxu2 }
 0x17f   : > { %v747_v30 = vpop.f32.mrf.mxu3  ;;  %v635_v31 = vadd.f32 %v634_v29, %v1196_v38  ;;  %817 = vst [vmem:[%s1203_s27 + $0x1a0] sm:$0xff] %v522_v28 }
 0x181   : > { %v748_v32 = vadd.f32 %v747_v30, %v635_v31 }
 0x182   : > { %v411_v34 = vpop.f32.mrf.mxu0 }
 0x183   : > { %818 = vst [vmem:[%s1203_s27 + $0x1a8] sm:$0xff] %v748_v32  ;;  %v412_v35 = vadd.f32 %v411_v34, %v1191_v33 }
 0x184   : > { %v524_v36 = vpop.f32.mrf.mxu1 }
 0x185   : > { %v525_v37 = vadd.f32 %v524_v36, %v412_v35 }
 0x186   : > { %v637_v39 = vpop.f32.mrf.mxu2 }
 0x187   : > { %v750_v40 = vpop.f32.mrf.mxu3  ;;  %v638_v41 = vadd.f32 %v637_v39, %v1196_v38  ;;  %819 = vst [vmem:[%s1203_s27 + $0x1b0] sm:$0xff] %v525_v37 }
 0x189   : > { %v751_v42 = vadd.f32 %v750_v40, %v638_v41 }
 0x18a   : > { %v414_v43 = vpop.f32.mrf.mxu0 }
 0x18b   : > { %820 = vst [vmem:[%s1203_s27 + $0x1b8] sm:$0xff] %v751_v42  ;;  %v415_v44 = vadd.f32 %v414_v43, %v1191_v33 }
 0x18c   : > { %v527_v45 = vpop.f32.mrf.mxu1 }
 0x18d   : > { %v528_v46 = vadd.f32 %v527_v45, %v415_v44 }
 0x18e   : > { %v640_v47 = vpop.f32.mrf.mxu2 }
 0x18f   : > { %v753_v48 = vpop.f32.mrf.mxu3  ;;  %v641_v49 = vadd.f32 %v640_v47, %v1196_v38  ;;  %821 = vst [vmem:[%s1203_s27 + $0x1c0] sm:$0xff] %v528_v46 }
 0x191   : > { %v754_v50 = vadd.f32 %v753_v48, %v641_v49 }
 0x192   : > { %v417_v51 = vpop.f32.mrf.mxu0 }
 0x193   : > { %822 = vst [vmem:[%s1203_s27 + $0x1c8] sm:$0xff] %v754_v50  ;;  %v418_v52 = vadd.f32 %v417_v51, %v1191_v33 }
 0x194   : > { %v530_v53 = vpop.f32.mrf.mxu1 }
 0x195   : > { %v531_v54 = vadd.f32 %v530_v53, %v418_v52 }
 0x196   : > { %v643_v55 = vpop.f32.mrf.mxu2 }
 0x197   : > { %v756_v56 = vpop.f32.mrf.mxu3  ;;  %v644_v57 = vadd.f32 %v643_v55, %v1196_v38  ;;  %823 = vst [vmem:[%s1203_s27 + $0x1d0] sm:$0xff] %v531_v54 }
 0x199   : > { %v757_v58 = vadd.f32 %v756_v56, %v644_v57 }
 0x19a   : > { %v420_v59 = vpop.f32.mrf.mxu0 }
 0x19b   : > { %824 = vst [vmem:[%s1203_s27 + $0x1d8] sm:$0xff] %v757_v58  ;;  %v421_v60 = vadd.f32 %v420_v59, %v1191_v33 }
 0x19c   : > { %v533_v61 = vpop.f32.mrf.mxu1 }
 0x19d   : > { %v534_v62 = vadd.f32 %v533_v61, %v421_v60 }
 0x19e   : > { %v646_v63 = vpop.f32.mrf.mxu2 }
 0x19f   : > { %v759_v0 = vpop.f32.mrf.mxu3  ;;  %v647_v1 = vadd.f32 %v646_v63, %v1196_v38  ;;  %825 = vst [vmem:[%s1203_s27 + $0x1e0] sm:$0xff] %v534_v62 }
 0x1a1   : > { %v760_v2 = vadd.f32 %v759_v0, %v647_v1 }
 0x1a2   : > { %v423_v3 = vpop.f32.mrf.mxu0 }
 0x1a3   : > { %826 = vst [vmem:[%s1203_s27 + $0x1e8] sm:$0xff] %v760_v2  ;;  %v424_v4 = vadd.f32 %v423_v3, %v1191_v33 }
 0x1a4   : > { %v536_v5 = vpop.f32.mrf.mxu1 }
 0x1a5   : > { %v537_v6 = vadd.f32 %v536_v5, %v424_v4 }
 0x1a6   : > { %v649_v7 = vpop.f32.mrf.mxu2 }
 0x1a7   : > { %v762_v8 = vpop.f32.mrf.mxu3  ;;  %v650_v9 = vadd.f32 %v649_v7, %v1196_v38  ;;  %827 = vst [vmem:[%s1203_s27 + $0x1f0] sm:$0xff] %v537_v6 }
 0x1a9   : > { %v763_v10 = vadd.f32 %v762_v8, %v650_v9 }
 0x1ab   : > { %828 = vst [vmem:[%s1203_s27 + $0x1f8] sm:$0xff] %v763_v10 }
 0x1ac PF: > { %s13_s12 = sadd.s32 1, %s916_s12  }
 0x1ad   : > { %p10_p4 = scmp.ge.s32.totalorder %s13_s12, 5  }
 0x1af   :  { %12 = sbr.rel (!%p10_p4) target bundleno = 1 (0x1), region = 62 }

// kernel: model_forward.3
= control target key start
LH: loop header
LB: loop body
LE: loop exit
PB: predicated region body
PF: predicated region fallthrough
CT: control target
= control target key end

     0   :  { %s2041_s12 = smov 0   ;;  %s2043_s13 = smov 0   ;;  %s2986_s0 = inlined_call_operand.vmem [shape: f32[960,768], index: 0, kind: input, shape index: {}]   ;;  %s2987_s1 = inlined_call_operand.vmem [shape: f32[3,768,256], index: 1, kind: input, shape index: {}]   ;;  %s2988_s2 = inlined_call_operand.vmem [shape: f32[1,256], index: 2, kind: input, shape index: {}]   ;;  %s2989_s3 = inlined_call_operand.vmem [shape: f32[640,256], index: 3, kind: output, shape index: {}]  }
   0x1   :  { %s2045_s14 = smov 0   ;;  %s2047_s15 = smov 0  }
   0x2   :  { %s2049_s16 = smov 0  }
   0x3 LB: > { %s22_s17 = sadd.s32 1, %s2010_s14  ;;  %s25_s18 = sadd.s32 1, %s2014_s15  ;;  %s2018_s16 = sphi %s2049_s16, %s13_s16   ;;  %s2014_s15 = sphi %s2047_s15, %s3023_s15   ;;  %s2010_s14 = sphi %s2045_s14, %s3022_s14   ;;  %s2006_s13 = sphi %s2043_s13, %s3021_s13   ;;  %s2002_s12 = sphi %s2041_s12, %s3020_s12  }
   0x4   : > { %p23_p0 = scmp.ge.s32.totalorder %s22_s17, 3  ;;  %p1887_p1 = scmp.ge.s32.totalorder %s2018_s16, 1 }
   0x5   : > { %p155_p2 = scmp.lt.s32.totalorder %s2018_s16, 13 }
   0x6   : > { %s3025_s17 = smov (%p23_p0, %s22_s17), 0  ;;  %s3027_s18 = smov (!%p23_p0, %s25_s18), %s2014_s15 }
   0x7   : > { %p156_p3 = pnand %p1887_p1, %p155_p2  ;;  %p27_p4 = scmp.ge.s32.totalorder %s3027_s18, 4 }
   0x9   : > { %s3029_s18 = smov (%p27_p4, %s3027_s18), 0  ;;  %159 = sbr.rel (%p156_p3) target bundleno = 761 (0x2f9), region = 32 }
   0xe   : > { %s182_s19 = sadd.s32 %s2002_s12, %s2006_s13  ;;  %s191_s20 = smul.u32 20, %s2006_s13 }
   0xf   : > { %s183_s21 = smul.u32 20, %s182_s19  ;;  %p1891_p7 = scmp.ne.s32.totalorder %s2002_s12, 0 }
  0x10   : > { %p192_p5 = scmp.lt.s32.totalorder %s191_s20, 79 }
  0x11   : > { %p184_p6 = scmp.lt.s32.totalorder %s183_s21, 119 }
  0x12   : > { %s3031_s20 = smov (!%p192_p5, %s191_s20), 79  ;;  %201 = sbr.rel (%p1891_p7) target bundleno = 64 (0x40), region = 36 }
  0x13   : > { %s3033_s21 = smov (!%p184_p6, %s183_s21), 119  ;;  %s1896_s22 = sshll.u32 %s3031_s20, 4 }
  0x14   : > { %s1898_s23 = smul.u32 48, %s3033_s21  ;;  %s2077_s26 = scalar_lea.vmem %s2989_s3, %s1896_s22 }
  0x16   : > { %s2082_s29 = scalar_lea.vmem %s2986_s0, %s1898_s23 }
  0x17   : > { %v2020_v0 = vmov 0.0  }
  0x18   : > { %202 = vst [vmem:[#allocation2 + $0xb0] sm:$0xff] %v2020_v0 }
  0x19   : > { %203 = vst [vmem:[#allocation2 + $0xd0] sm:$0xff] %v2020_v0 }
  0x1a   : > { %204 = vst [vmem:[#allocation2 + $0x10] sm:$0xff] %v2020_v0 }
  0x1b   : > { %205 = vst [vmem:[#allocation2 + $0x48] sm:$0xff] %v2020_v0 }
  0x1c   : > { %206 = vst [vmem:[#allocation2 + $0x120] sm:$0xff] %v2020_v0 }
  0x1d   : > { %207 = vst [vmem:[#allocation2 + $0x38] sm:$0xff] %v2020_v0 }
  0x1e   : > { %208 = vst [vmem:[#allocation2 + $0xf8] sm:$0xff] %v2020_v0 }
  0x1f   : > { %209 = vst [vmem:[#allocation2 + $0x100] sm:$0xff] %v2020_v0 }
  0x20   : > { %210 = vst [vmem:[#allocation2 + $0x80] sm:$0xff] %v2020_v0 }
  0x21   : > { %211 = vst [vmem:[#allocation2 + $0x108] sm:$0xff] %v2020_v0 }
  0x22   : > { %212 = vst [vmem:[#allocation2 + $0x138] sm:$0xff] %v2020_v0 }
  0x23   : > { %213 = vst [vmem:[#allocation2 + $0xf0] sm:$0xff] %v2020_v0 }
  0x24   : > { %214 = vst [vmem:[#allocation2 + $0x18] sm:$0xff] %v2020_v0 }
  0x25   : > { %215 = vst [vmem:[#allocation2 + $0xc8] sm:$0xff] %v2020_v0 }
  0x26   : > { %216 = vst [vmem:[#allocation2 + $0x70] sm:$0xff] %v2020_v0 }
  0x27   : > { %217 = vst [vmem:[#allocation2 + $0x20] sm:$0xff] %v2020_v0 }
  0x28   : > { %218 = vst [vmem:[#allocation2 + $0x128] sm:$0xff] %v2020_v0 }
  0x29   : > { %219 = vst [vmem:[#allocation2 + $0x110] sm:$0xff] %v2020_v0 }
  0x2a   : > { %220 = vst [vmem:[#allocation2 + $0x8] sm:$0xff] %v2020_v0 }
  0x2b   : > { %221 = vst [vmem:[#allocation2 + $0x98] sm:$0xff] %v2020_v0 }
  0x2c   : > { %222 = vst [vmem:[#allocation2 + $0xa8] sm:$0xff] %v2020_v0 }
  0x2d   : > { %223 = vst [vmem:[#allocation2 + $0x90] sm:$0xff] %v2020_v0 }
  0x2e   : > { %224 = vst [vmem:[#allocation2 + $0xe0] sm:$0xff] %v2020_v0 }
  0x2f   : > { %225 = vst [vmem:[#allocation2 + $0x88] sm:$0xff] %v2020_v0 }
  0x30   : > { %226 = vst [vmem:[#allocation2 + $0xc0] sm:$0xff] %v2020_v0 }
  0x31   : > { %227 = vst [vmem:[#allocation2 + $0x118] sm:$0xff] %v2020_v0 }
  0x32   : > { %228 = vst [vmem:[#allocation2 + $0xd8] sm:$0xff] %v2020_v0 }
  0x33   : > { %229 = vst [vmem:[#allocation2 + $0xa0] sm:$0xff] %v2020_v0 }
  0x34   : > { %230 = vst [vmem:[#allocation2 + $0x68] sm:$0xff] %v2020_v0 }
  0x35   : > { %231 = vst [vmem:[#allocation2 + $0x130] sm:$0xff] %v2020_v0 }
  0x36   : > { %232 = vst [vmem:[#allocation2 + $0x50] sm:$0xff] %v2020_v0 }
  0x37   : > { %233 = vst [vmem:[#allocation2 + $0xe8] sm:$0xff] %v2020_v0 }
  0x38   : > { %234 = vst [vmem:[#allocation2 + $0x58] sm:$0xff] %v2020_v0 }
  0x39   : > { %235 = vst [vmem:[#allocation2 + $0x78] sm:$0xff] %v2020_v0 }
  0x3a   : > { %236 = vst [vmem:[#allocation2 + $0x30] sm:$0xff] %v2020_v0 }
  0x3b   : > { %237 = vst [vmem:[#allocation2 + $0x40] sm:$0xff] %v2020_v0 }
  0x3c   : > { %238 = vst [vmem:[#allocation2 + $0x28] sm:$0xff] %v2020_v0 }
  0x3d   : > { %239 = vst [vmem:[#allocation2] sm:$0xff] %v2020_v0 }
  0x3e   : > { %240 = vst [vmem:[#allocation2 + $0xb8] sm:$0xff] %v2020_v0 }
  0x3f   : > { %241 = vst [vmem:[#allocation2 + $0x60] sm:$0xff] %v2020_v0 }
  0x40 PF: > { %s1897_s30 = smul.u32 1536, %s2002_s12  ;;  %v2155_v0 = vld [vmem:[%s2082_s29] sm:$0xff]  ;;  %p1893_p8 = scmp.ne.s32.totalorder %s2002_s12, 2 }
  0x42   : > { %s2089_s6 = scalar_lea.vmem %s2987_s1, %s1897_s30 }
  0x43   : > { %v435_v1 = vld [vmem:[%s2089_s6 + $0xf0] sm:$0xff]  ;;  %v433_v4 = vld [vmem:[%s2089_s6 + $0xe0] sm:$0xff] }
  0x44   : > { %v499_v2 = vld [vmem:[%s2089_s6 + $0x2f0] sm:$0xff]  ;;  %597 = vmatpush.msra.mxu0 %v435_v1  ;;  %v497_v6 = vld [vmem:[%s2089_s6 + $0x2e0] sm:$0xff] }
  0x45   : > { %v531_v3 = vld [vmem:[%s2089_s6 + $0x3f0] sm:$0xff]  ;;  %751 = vmatpush.msra.mxu2 %v499_v2  ;;  %v529_v7 = vld [vmem:[%s2089_s6 + $0x3e0] sm:$0xff]  ;;  %v285_v2 = vld [vmem:[%s2082_s29 + $0x18] sm:$0xff] }
  0x46   : > { %v467_v5 = vld [vmem:[%s2089_s6 + $0x1f0] sm:$0xff]  ;;  %828 = vmatpush.msra.mxu3 %v531_v3  ;;  %v465_v9 = vld [vmem:[%s2089_s6 + $0x1e0] sm:$0xff]  ;;  %598 = vmatpush.msra.mxu0 %v433_v4  ;;  %v436_v3 = vld [vmem:[%s2089_s6 + $0xf8] sm:$0xff] }
  0x47   : > { %674 = vmatpush.msra.mxu1 %v467_v5  ;;  %v431_v8 = vld [vmem:[%s2089_s6 + $0xd0] sm:$0xff]  ;;  %752 = vmatpush.msra.mxu2 %v497_v6  ;;  %v429_v12 = vld [vmem:[%s2089_s6 + $0xc0] sm:$0xff]  ;;  %v2163_v5 = vld [vmem:[%s2082_s29 + $0x8] sm:$0xff] }
  0x48   : > { %v495_v10 = vld [vmem:[%s2089_s6 + $0x2d0] sm:$0xff]  ;;  %829 = vmatpush.msra.mxu3 %v529_v7  ;;  %v493_v14 = vld [vmem:[%s2089_s6 + $0x2c0] sm:$0xff]  ;;  %599 = vmatpush.msra.mxu0 %v431_v8  ;;  %v468_v7 = vld [vmem:[%s2089_s6 + $0x1f8] sm:$0xff] }
  0x49   : > { %v527_v11 = vld [vmem:[%s2089_s6 + $0x3d0] sm:$0xff]  ;;  %675 = vmatpush.msra.mxu1 %v465_v9  ;;  %753 = vmatpush.msra.mxu2 %v495_v10  ;;  %v525_v15 = vld [vmem:[%s2089_s6 + $0x3c0] sm:$0xff]  ;;  %v434_v9 = vld [vmem:[%s2089_s6 + $0xe8] sm:$0xff] }
  0x4a   : > { %v463_v13 = vld [vmem:[%s2089_s6 + $0x1d0] sm:$0xff]  ;;  %v461_v16 = vld [vmem:[%s2089_s6 + $0x1c0] sm:$0xff]  ;;  %830 = vmatpush.msra.mxu3 %v527_v11  ;;  %600 = vmatpush.msra.mxu0 %v429_v12  ;;  %v466_v11 = vld [vmem:[%s2089_s6 + $0x1e8] sm:$0xff] }
  0x4b   : > { %676 = vmatpush.msra.mxu1 %v463_v13  ;;  %v427_v17 = vld [vmem:[%s2089_s6 + $0xb0] sm:$0xff]  ;;  %754 = vmatpush.msra.mxu2 %v493_v14  ;;  %v425_v21 = vld [vmem:[%s2089_s6 + $0xa0] sm:$0xff]  ;;  %v432_v13 = vld [vmem:[%s2089_s6 + $0xd8] sm:$0xff] }
  0x4c   : > { %v491_v18 = vld [vmem:[%s2089_s6 + $0x2b0] sm:$0xff]  ;;  %831 = vmatpush.msra.mxu3 %v525_v15  ;;  %v489_v22 = vld [vmem:[%s2089_s6 + $0x2a0] sm:$0xff]  ;;  %601 = vmatpush.msra.mxu0 %v427_v17 }
  0x4d   : > { %v523_v19 = vld [vmem:[%s2089_s6 + $0x3b0] sm:$0xff]  ;;  %677 = vmatpush.msra.mxu1 %v461_v16  ;;  %755 = vmatpush.msra.mxu2 %v491_v18  ;;  %v521_v23 = vld [vmem:[%s2089_s6 + $0x3a0] sm:$0xff]  ;;  %v464_v16 = vld [vmem:[%s2089_s6 + $0x1d8] sm:$0xff] }
  0x4e   : > { %v459_v20 = vld [vmem:[%s2089_s6 + $0x1b0] sm:$0xff]  ;;  %v457_v24 = vld [vmem:[%s2089_s6 + $0x1a0] sm:$0xff]  ;;  %832 = vmatpush.msra.mxu3 %v523_v19  ;;  %602 = vmatpush.msra.mxu0 %v425_v21  ;;  %v291_v18 = vld [vmem:[%s2082_s29 + $0x48] sm:$0xff] }
  0x4f   : > { %678 = vmatpush.msra.mxu1 %v459_v20  ;;  %v423_v25 = vld [vmem:[%s2089_s6 + $0x90] sm:$0xff]  ;;  %756 = vmatpush.msra.mxu2 %v489_v22  ;;  %v421_v29 = vld [vmem:[%s2089_s6 + $0x80] sm:$0xff]  ;;  %v430_v20 = vld [vmem:[%s2089_s6 + $0xc8] sm:$0xff] }
  0x50   : > { %v487_v26 = vld [vmem:[%s2089_s6 + $0x290] sm:$0xff]  ;;  %833 = vmatpush.msra.mxu3 %v521_v23  ;;  %v485_v30 = vld [vmem:[%s2089_s6 + $0x280] sm:$0xff]  ;;  %603 = vmatpush.msra.mxu0 %v423_v25  ;;  %v2185_v21 = vld [vmem:[%s2082_s29 + $0x38] sm:$0xff] }
  0x51   : > { %v519_v27 = vld [vmem:[%s2089_s6 + $0x390] sm:$0xff]  ;;  %679 = vmatpush.msra.mxu1 %v457_v24  ;;  %757 = vmatpush.msra.mxu2 %v487_v26  ;;  %v517_v31 = vld [vmem:[%s2089_s6 + $0x380] sm:$0xff]  ;;  %v462_v23 = vld [vmem:[%s2089_s6 + $0x1c8] sm:$0xff] }
  0x52   : > { %v455_v28 = vld [vmem:[%s2089_s6 + $0x190] sm:$0xff]  ;;  %v453_v32 = vld [vmem:[%s2089_s6 + $0x180] sm:$0xff]  ;;  %834 = vmatpush.msra.mxu3 %v519_v27  ;;  %604 = vmatpush.msra.mxu0 %v421_v29  ;;  %v428_v25 = vld [vmem:[%s2089_s6 + $0xb8] sm:$0xff] }
  0x53   : > { %680 = vmatpush.msra.mxu1 %v455_v28  ;;  %v419_v33 = vld [vmem:[%s2089_s6 + $0x70] sm:$0xff]  ;;  %758 = vmatpush.msra.mxu2 %v485_v30  ;;  %v417_v37 = vld [vmem:[%s2089_s6 + $0x60] sm:$0xff]  ;;  %v460_v27 = vld [vmem:[%s2089_s6 + $0x1b8] sm:$0xff] }
  0x54   : > { %v483_v34 = vld [vmem:[%s2089_s6 + $0x270] sm:$0xff]  ;;  %835 = vmatpush.msra.mxu3 %v517_v31  ;;  %v481_v38 = vld [vmem:[%s2089_s6 + $0x260] sm:$0xff]  ;;  %605 = vmatpush.msra.mxu0 %v419_v33  ;;  %v297_v31 = vld [vmem:[%s2082_s29 + $0x78] sm:$0xff] }
  0x55   : > { %v515_v35 = vld [vmem:[%s2089_s6 + $0x370] sm:$0xff]  ;;  %681 = vmatpush.msra.mxu1 %v453_v32  ;;  %759 = vmatpush.msra.mxu2 %v483_v34  ;;  %v513_v39 = vld [vmem:[%s2089_s6 + $0x360] sm:$0xff]  ;;  %v2202_v32 = vld [vmem:[%s2082_s29 + $0x68] sm:$0xff] }
  0x56   : > { %v451_v36 = vld [vmem:[%s2089_s6 + $0x170] sm:$0xff]  ;;  %v449_v40 = vld [vmem:[%s2089_s6 + $0x160] sm:$0xff]  ;;  %836 = vmatpush.msra.mxu3 %v515_v35  ;;  %606 = vmatpush.msra.mxu0 %v417_v37  ;;  %v426_v33 = vld [vmem:[%s2089_s6 + $0xa8] sm:$0xff] }
  0x57   : > { %682 = vmatpush.msra.mxu1 %v451_v36  ;;  %v415_v41 = vld [vmem:[%s2089_s6 + $0x50] sm:$0xff]  ;;  %760 = vmatpush.msra.mxu2 %v481_v38  ;;  %v413_v45 = vld [vmem:[%s2089_s6 + $0x40] sm:$0xff]  ;;  %v458_v35 = vld [vmem:[%s2089_s6 + $0x1a8] sm:$0xff] }
  0x58   : > { %v479_v42 = vld [vmem:[%s2089_s6 + $0x250] sm:$0xff]  ;;  %837 = vmatpush.msra.mxu3 %v513_v39  ;;  %v477_v46 = vld [vmem:[%s2089_s6 + $0x240] sm:$0xff]  ;;  %607 = vmatpush.msra.mxu0 %v415_v41  ;;  %v303_v39 = vld [vmem:[%s2082_s29 + $0xa8] sm:$0xff] }
  0x59   : > { %v511_v43 = vld [vmem:[%s2089_s6 + $0x350] sm:$0xff]  ;;  %683 = vmatpush.msra.mxu1 %v449_v40  ;;  %761 = vmatpush.msra.mxu2 %v479_v42  ;;  %v509_v47 = vld [vmem:[%s2089_s6 + $0x340] sm:$0xff]  ;;  %v2216_v40 = vld [vmem:[%s2082_s29 + $0x98] sm:$0xff] }
  0x5a   : > { %v447_v44 = vld [vmem:[%s2089_s6 + $0x150] sm:$0xff]  ;;  %v445_v48 = vld [vmem:[%s2089_s6 + $0x140] sm:$0xff]  ;;  %838 = vmatpush.msra.mxu3 %v511_v43  ;;  %608 = vmatpush.msra.mxu0 %v413_v45  ;;  %v424_v41 = vld [vmem:[%s2089_s6 + $0x98] sm:$0xff] }
  0x5b   : > { %684 = vmatpush.msra.mxu1 %v447_v44  ;;  %v411_v49 = vld [vmem:[%s2089_s6 + $0x30] sm:$0xff]  ;;  %762 = vmatpush.msra.mxu2 %v477_v46  ;;  %v409_v53 = vld [vmem:[%s2089_s6 + $0x20] sm:$0xff]  ;;  %v456_v43 = vld [vmem:[%s2089_s6 + $0x198] sm:$0xff] }
  0x5c   : > { %v475_v50 = vld [vmem:[%s2089_s6 + $0x230] sm:$0xff]  ;;  %839 = vmatpush.msra.mxu3 %v509_v47  ;;  %v473_v54 = vld [vmem:[%s2089_s6 + $0x220] sm:$0xff]  ;;  %609 = vmatpush.msra.mxu0 %v411_v49  ;;  %v309_v46 = vld [vmem:[%s2082_s29 + $0xd8] sm:$0xff] }
  0x5d   : > { %v507_v51 = vld [vmem:[%s2089_s6 + $0x330] sm:$0xff]  ;;  %685 = vmatpush.msra.mxu1 %v445_v48  ;;  %763 = vmatpush.msra.mxu2 %v475_v50  ;;  %v505_v55 = vld [vmem:[%s2089_s6 + $0x320] sm:$0xff]  ;;  %v2229_v47 = vld [vmem:[%s2082_s29 + $0xc8] sm:$0xff] }
  0x5e   : > { %v443_v52 = vld [vmem:[%s2089_s6 + $0x130] sm:$0xff]  ;;  %v441_v56 = vld [vmem:[%s2089_s6 + $0x120] sm:$0xff]  ;;  %840 = vmatpush.msra.mxu3 %v507_v51  ;;  %610 = vmatpush.msra.mxu0 %v409_v53  ;;  %v422_v49 = vld [vmem:[%s2089_s6 + $0x88] sm:$0xff] }
  0x5f   : > { %686 = vmatpush.msra.mxu1 %v443_v52  ;;  %v407_v57 = vld [vmem:[%s2089_s6 + $0x10] sm:$0xff]  ;;  %764 = vmatpush.msra.mxu2 %v473_v54  ;;  %v405_v61 = vld [vmem:[%s2089_s6] sm:$0xff]  ;;  %v315_v52 = vld [vmem:[%s2082_s29 + $0x108] sm:$0xff] }
  0x60   : > { %v471_v58 = vld [vmem:[%s2089_s6 + $0x210] sm:$0xff]  ;;  %841 = vmatpush.msra.mxu3 %v505_v55  ;;  %v469_v62 = vld [vmem:[%s2089_s6 + $0x200] sm:$0xff]  ;;  %611 = vmatpush.msra.mxu0 %v407_v57  ;;  %v2241_v53 = vld [vmem:[%s2082_s29 + $0xf8] sm:$0xff] }
  0x61   : > { %v503_v59 = vld [vmem:[%s2089_s6 + $0x310] sm:$0xff]  ;;  %687 = vmatpush.msra.mxu1 %v441_v56  ;;  %765 = vmatpush.msra.mxu2 %v471_v58  ;;  %v501_v63 = vld [vmem:[%s2089_s6 + $0x300] sm:$0xff]  ;;  %v454_v55 = vld [vmem:[%s2089_s6 + $0x188] sm:$0xff] }
  0x62   : > { %v439_v60 = vld [vmem:[%s2089_s6 + $0x110] sm:$0xff]  ;;  %842 = vmatpush.msra.mxu3 %v503_v59  ;;  %612 = vmatpush.msra.mxu0 %v405_v61  ;;  %v437_v4 = vld [vmem:[%s2089_s6 + $0x100] sm:$0xff]  ;;  %v321_v59 = vld [vmem:[%s2082_s29 + $0x138] sm:$0xff] }
  0x63   : > { %688 = vmatpush.msra.mxu1 %v439_v60  ;;  %v284_v1 = vld [vmem:[%s2082_s29 + $0x10] sm:$0xff]  ;;  %766 = vmatpush.msra.mxu2 %v469_v62  ;;  %v561_v10 = vld [vmem:[%s2089_s6 + $0x4e0] sm:$0xff]  ;;  %v2254_v60 = vld [vmem:[%s2082_s29 + $0x128] sm:$0xff] }
  0x64   : > { %843 = vmatpush.msra.mxu3 %v501_v63  ;;  %613 = vmatmul.f32.vlgmr.msra.gmra.mxu0 %v2155_v0  ;;  %v563_v6 = vld [vmem:[%s2089_s6 + $0x4f0] sm:$0xff]  ;;  %v593_v12 = vld [vmem:[%s2089_s6 + $0x5e0] sm:$0xff]  ;;  %v420_v61 = vld [vmem:[%s2089_s6 + $0x78] sm:$0xff] }
  0x65   : > { %767 = vmatmul.f32.vlgmr.msra.gmra.mxu2 %v284_v1  ;;  %844 = vmatmul.f32.vlgmr.msra.gmra.mxu3 %v285_v2  ;;  %v595_v8 = vld [vmem:[%s2089_s6 + $0x5f0] sm:$0xff]  ;;  %v290_v17 = vld [vmem:[%s2082_s29 + $0x40] sm:$0xff]  ;;  %v452_v63 = vld [vmem:[%s2089_s6 + $0x178] sm:$0xff] }
  0x66   : > { %1059 = vmatpush.msrb.mxu2 %v436_v3  ;;  %689 = vmatpush.msra.mxu1 %v437_v4  ;;  %v559_v14 = vld [vmem:[%s2089_s6 + $0x4d0] sm:$0xff]  ;;  %v557_v22 = vld [vmem:[%s2089_s6 + $0x4c0] sm:$0xff]  ;;  %v327_v4 = vld [vmem:[%s2082_s29 + $0x168] sm:$0xff] }
  0x67   : > { %690 = vmatmul.f32.vlgmr.msra.gmra.mxu1 %v2163_v5  ;;  %905 = vmatpush.msrb.mxu0 %v563_v6  ;;  %v2176_v15 = vld [vmem:[%s2082_s29 + $0x30] sm:$0xff]  ;;  %v589_v24 = vld [vmem:[%s2089_s6 + $0x5c0] sm:$0xff]  ;;  %v2268_v6 = vld [vmem:[%s2082_s29 + $0x158] sm:$0xff] }
  0x68   : > { %1136 = vmatpush.msrb.mxu3 %v468_v7  ;;  %982 = vmatpush.msrb.mxu1 %v595_v8  ;;  %v591_v19 = vld [vmem:[%s2089_s6 + $0x5d0] sm:$0xff]  ;;  %v2196_v29 = vld [vmem:[%s2082_s29 + $0x60] sm:$0xff]  ;;  %v418_v7 = vld [vmem:[%s2089_s6 + $0x68] sm:$0xff] }
  0x69   : > { %1060 = vmatpush.msrb.mxu2 %v434_v9  ;;  %906 = vmatpush.msrb.mxu0 %v561_v10  ;;  %v555_v26 = vld [vmem:[%s2089_s6 + $0x4b0] sm:$0xff]  ;;  %v553_v34 = vld [vmem:[%s2089_s6 + $0x4a0] sm:$0xff]  ;;  %v450_v9 = vld [vmem:[%s2089_s6 + $0x168] sm:$0xff] }
  0x6a   : > { %1137 = vmatpush.msrb.mxu3 %v466_v11  ;;  %983 = vmatpush.msrb.mxu1 %v593_v12  ;;  %v587_v28 = vld [vmem:[%s2089_s6 + $0x5b0] sm:$0xff]  ;;  %v585_v36 = vld [vmem:[%s2089_s6 + $0x5a0] sm:$0xff] }
  0x6b   : > { %1061 = vmatpush.msrb.mxu2 %v432_v13  ;;  %907 = vmatpush.msrb.mxu0 %v559_v14  ;;  %v296_v30 = vld [vmem:[%s2082_s29 + $0x70] sm:$0xff]  ;;  %v302_v38 = vld [vmem:[%s2082_s29 + $0xa0] sm:$0xff]  ;;  %v333_v13 = vld [vmem:[%s2082_s29 + $0x198] sm:$0xff] }
  0x6c   : > { %616 = vmatmul.f32.gmra.mxu0 %v2176_v15  ;;  %1138 = vmatpush.msrb.mxu3 %v464_v16  ;;  %v2210_v37 = vld [vmem:[%s2082_s29 + $0x90] sm:$0xff]  ;;  %v2223_v44 = vld [vmem:[%s2082_s29 + $0xc0] sm:$0xff]  ;;  %v2282_v14 = vld [vmem:[%s2082_s29 + $0x188] sm:$0xff] }
  0x6d   : > { %770 = vmatmul.f32.gmra.mxu2 %v290_v17  ;;  %847 = vmatmul.f32.gmra.mxu3 %v291_v18  ;;  %v551_v42 = vld [vmem:[%s2089_s6 + $0x490] sm:$0xff]  ;;  %v314_v51 = vld [vmem:[%s2082_s29 + $0x100] sm:$0xff]  ;;  %v416_v16 = vld [vmem:[%s2089_s6 + $0x58] sm:$0xff] }
  0x6e   : > { %984 = vmatpush.msrb.mxu1 %v591_v19  ;;  %1062 = vmatpush.msrb.mxu2 %v430_v20  ;;  %v308_v45 = vld [vmem:[%s2082_s29 + $0xd0] sm:$0xff]  ;;  %v549_v54 = vld [vmem:[%s2089_s6 + $0x480] sm:$0xff]  ;;  %v448_v18 = vld [vmem:[%s2089_s6 + $0x158] sm:$0xff] }
  0x6f   : > { %693 = vmatmul.f32.gmra.mxu1 %v2185_v21  ;;  %908 = vmatpush.msrb.mxu0 %v557_v22  ;;  %v583_v48 = vld [vmem:[%s2089_s6 + $0x590] sm:$0xff]  ;;  %v581_v56 = vld [vmem:[%s2089_s6 + $0x580] sm:$0xff]  ;;  %v339_v22 = vld [vmem:[%s2082_s29 + $0x1c8] sm:$0xff] }
  0x70   : > { %1139 = vmatpush.msrb.mxu3 %v462_v23  ;;  %985 = vmatpush.msrb.mxu1 %v589_v24  ;;  %v2235_v50 = vld [vmem:[%s2082_s29 + $0xf0] sm:$0xff]  ;;  %v2248_v57 = vld [vmem:[%s2082_s29 + $0x120] sm:$0xff]  ;;  %v2295_v23 = vld [vmem:[%s2082_s29 + $0x1b8] sm:$0xff] }
  0x71   : > { %1063 = vmatpush.msrb.mxu2 %v428_v25  ;;  %909 = vmatpush.msrb.mxu0 %v555_v26  ;;  %v320_v58 = vld [vmem:[%s2082_s29 + $0x130] sm:$0xff]  ;;  %v326_v3 = vld [vmem:[%s2082_s29 + $0x160] sm:$0xff]  ;;  %v414_v25 = vld [vmem:[%s2089_s6 + $0x48] sm:$0xff] }
  0x72   : > { %1140 = vmatpush.msrb.mxu3 %v460_v27  ;;  %986 = vmatpush.msrb.mxu1 %v587_v28  ;;  %v547_v62 = vld [vmem:[%s2089_s6 + $0x470] sm:$0xff]  ;;  %v545_v8 = vld [vmem:[%s2089_s6 + $0x460] sm:$0xff]  ;;  %v345_v28 = vld [vmem:[%s2082_s29 + $0x1f8] sm:$0xff] }
  0x73   : > { %1064 = vmatpush.msrb.mxu2 %v426_v33  ;;  %910 = vmatpush.msrb.mxu0 %v553_v34  ;;  %v579_v1 = vld [vmem:[%s2089_s6 + $0x570] sm:$0xff]  ;;  %v577_v10 = vld [vmem:[%s2089_s6 + $0x560] sm:$0xff]  ;;  %v446_v33 = vld [vmem:[%s2089_s6 + $0x148] sm:$0xff] }
  0x74   : > { %619 = vmatmul.f32.gmra.mxu0 %v2196_v29  ;;  %1141 = vmatpush.msrb.mxu3 %v458_v35  ;;  %v2262_v2 = vld [vmem:[%s2082_s29 + $0x150] sm:$0xff]  ;;  %v2276_v11 = vld [vmem:[%s2082_s29 + $0x180] sm:$0xff] }
  0x75   : > { %773 = vmatmul.f32.gmra.mxu2 %v296_v30  ;;  %850 = vmatmul.f32.gmra.mxu3 %v297_v31  ;;  %v332_v12 = vld [vmem:[%s2082_s29 + $0x190] sm:$0xff]  ;;  %v338_v20 = vld [vmem:[%s2082_s29 + $0x1c0] sm:$0xff]  ;;  %v2307_v30 = vld [vmem:[%s2082_s29 + $0x1e8] sm:$0xff] }
  0x76   : > { %987 = vmatpush.msrb.mxu1 %v585_v36  ;;  %1065 = vmatpush.msrb.mxu2 %v424_v41  ;;  %v543_v17 = vld [vmem:[%s2089_s6 + $0x450] sm:$0xff]  ;;  %v2301_v26 = vld [vmem:[%s2082_s29 + $0x1e0] sm:$0xff]  ;;  %v412_v41 = vld [vmem:[%s2089_s6 + $0x38] sm:$0xff] }
  0x77   : > { %696 = vmatmul.f32.gmra.mxu1 %v2202_v32  ;;  %911 = vmatpush.msrb.mxu0 %v551_v42  ;;  %v2289_v19 = vld [vmem:[%s2082_s29 + $0x1b0] sm:$0xff]  ;;  %v541_v31 = vld [vmem:[%s2089_s6 + $0x440] sm:$0xff] }
  0x78   : > { %1142 = vmatpush.msrb.mxu3 %v456_v43  ;;  %988 = vmatpush.msrb.mxu1 %v583_v48  ;;  %v575_v24 = vld [vmem:[%s2089_s6 + $0x550] sm:$0xff]  ;;  %v573_v34 = vld [vmem:[%s2089_s6 + $0x540] sm:$0xff]  ;;  %v444_v43 = vld [vmem:[%s2089_s6 + $0x138] sm:$0xff] }
  0x79   : > { %1066 = vmatpush.msrb.mxu2 %v422_v49  ;;  %912 = vmatpush.msrb.mxu0 %v549_v54  ;;  %v344_v27 = vld [vmem:[%s2082_s29 + $0x1f0] sm:$0xff]  ;;  %v350_v36 = vld [vmem:[%s2082_s29 + $0x220] sm:$0xff]  ;;  %v357_v49 = vld [vmem:[%s2082_s29 + $0x258] sm:$0xff] }
  0x7a   : > { %1143 = vmatpush.msrb.mxu3 %v454_v55  ;;  %989 = vmatpush.msrb.mxu1 %v581_v56  ;;  %v2314_v35 = vld [vmem:[%s2082_s29 + $0x210] sm:$0xff]  ;;  %v362_v55 = vld [vmem:[%s2082_s29 + $0x280] sm:$0xff]  ;;  %v363_v56 = vld [vmem:[%s2082_s29 + $0x288] sm:$0xff] }
  0x7b   : > { %1067 = vmatpush.msrb.mxu2 %v420_v61  ;;  %913 = vmatpush.msrb.mxu0 %v547_v62  ;;  %v539_v42 = vld [vmem:[%s2089_s6 + $0x430] sm:$0xff]  ;;  %v569_v61 = vld [vmem:[%s2089_s6 + $0x520] sm:$0xff]  ;;  %v2348_v62 = vld [vmem:[%s2082_s29 + $0x278] sm:$0xff] }
  0x7c   : > { %622 = vmatmul.f32.gmra.mxu0 %v2210_v37  ;;  %1144 = vmatpush.msrb.mxu3 %v452_v63  ;;  %v356_v48 = vld [vmem:[%s2082_s29 + $0x250] sm:$0xff]  ;;  %v2352_v63 = vld [vmem:[%s2082_s29 + $0x2a0] sm:$0xff] }
  0x7d   : > { %776 = vmatmul.f32.gmra.mxu2 %v302_v38  ;;  %853 = vmatmul.f32.gmra.mxu3 %v303_v39  ;;  %v351_v38 = vld [vmem:[%s2082_s29 + $0x228] sm:$0xff]  ;;  %v2320_v39 = vld [vmem:[%s2082_s29 + $0x218] sm:$0xff]  ;;  %v2339_v54 = vld [vmem:[%s2082_s29 + $0x270] sm:$0xff] }
  0x7e   : > { %990 = vmatpush.msrb.mxu1 %v579_v1  ;;  %1068 = vmatpush.msrb.mxu2 %v418_v7  ;;  %v368_v1 = vld [vmem:[%s2082_s29 + $0x2b0] sm:$0xff] }
  0x7f   : > { %699 = vmatmul.f32.gmra.mxu1 %v2216_v40  ;;  %914 = vmatpush.msrb.mxu0 %v545_v8  ;;  %v535_v7 = vld [vmem:[%s2089_s6 + $0x410] sm:$0xff]  ;;  %v440_v8 = vld [vmem:[%s2089_s6 + $0x118] sm:$0xff] }
  0x80   : > { %1145 = vmatpush.msrb.mxu3 %v450_v9  ;;  %991 = vmatpush.msrb.mxu1 %v577_v10  ;;  %v2361_v9 = vld [vmem:[%s2082_s29 + $0x2a8] sm:$0xff]  ;;  %v567_v10 = vld [vmem:[%s2089_s6 + $0x510] sm:$0xff] }
  0x81   : > { %1069 = vmatpush.msrb.mxu2 %v416_v16  ;;  %915 = vmatpush.msrb.mxu0 %v543_v17  ;;  %v375_v16 = vld [vmem:[%s2082_s29 + $0x2e8] sm:$0xff] }
  0x82   : > { %1146 = vmatpush.msrb.mxu3 %v448_v18  ;;  %992 = vmatpush.msrb.mxu1 %v575_v24  ;;  %v406_v17 = vld [vmem:[%s2089_s6 + $0x8] sm:$0xff]  ;;  %v2373_v18 = vld [vmem:[%s2082_s29 + $0x2d8] sm:$0xff]  ;;  %v565_v24 = vld [vmem:[%s2089_s6 + $0x500] sm:$0xff] }
  0x83   : > { %1070 = vmatpush.msrb.mxu2 %v414_v25  ;;  %916 = vmatpush.msrb.mxu0 %v541_v31  ;;  %v381_v31 = vld [vmem:[%s2082_s29 + $0x318] sm:$0xff] }
  0x84   : > { %625 = vmatmul.f32.gmra.mxu0 %v2223_v44  ;;  %1147 = vmatpush.msrb.mxu3 %v446_v33 }
  0x85   : > { %779 = vmatmul.f32.gmra.mxu2 %v308_v45  ;;  %856 = vmatmul.f32.gmra.mxu3 %v309_v46  ;;  %v571_v45 = vld [vmem:[%s2089_s6 + $0x530] sm:$0xff]  ;;  %v2328_v46 = vld [vmem:[%s2082_s29 + $0x240] sm:$0xff] }
  0x86   : > { %993 = vmatpush.msrb.mxu1 %v573_v34  ;;  %1071 = vmatpush.msrb.mxu2 %v412_v41  ;;  %v2386_v34 = vld [vmem:[%s2082_s29 + $0x308] sm:$0xff]  ;;  %v500_v41 = vld [vmem:[%s2089_s6 + $0x2f8] sm:$0xff] }
  0x87   : > { %702 = vmatmul.f32.gmra.mxu1 %v2229_v47  ;;  %917 = vmatpush.msrb.mxu0 %v539_v42  ;;  %v596_v42 = vld [vmem:[%s2089_s6 + $0x5f8] sm:$0xff] }
  0x88   : > { %1148 = vmatpush.msrb.mxu3 %v444_v43  ;;  %994 = vmatpush.msrb.mxu1 %v571_v45 }
  0x8a   : > { %995 = vmatpush.msrb.mxu1 %v569_v61 }
  0x8c   : > { %628 = vmatmul.f32.gmra.mxu0 %v2235_v50  ;;  %996 = vmatpush.msrb.mxu1 %v567_v10 }
  0x8d   : > { %782 = vmatmul.f32.gmra.mxu2 %v314_v51  ;;  %859 = vmatmul.f32.gmra.mxu3 %v315_v52  ;;  %v2334_v51 = vld [vmem:[%s2082_s29 + $0x248] sm:$0xff] }
  0x8e   : > { %v410_v52 = vld [vmem:[%s2089_s6 + $0x28] sm:$0xff]  ;;  %997 = vmatpush.msrb.mxu1 %v565_v24 }
  0x8f   : > { %705 = vmatmul.f32.gmra.mxu1 %v2241_v53  ;;  %1072 = vmatpush.msrb.mxu2 %v410_v52  ;;  %v2393_v52 = vld [vmem:[%s2082_s29 + $0x330] sm:$0xff]  ;;  %v498_v24 = vld [vmem:[%s2089_s6 + $0x2e8] sm:$0xff] }
  0x94   : > { %631 = vmatmul.f32.gmra.mxu0 %v2248_v57 }
  0x95   : > { %785 = vmatmul.f32.gmra.mxu2 %v320_v58  ;;  %862 = vmatmul.f32.gmra.mxu3 %v321_v59  ;;  %v537_v58 = vld [vmem:[%s2089_s6 + $0x420] sm:$0xff]  ;;  %v442_v59 = vld [vmem:[%s2089_s6 + $0x128] sm:$0xff] }
  0x96   : > { %1149 = vmatpush.msrb.mxu3 %v442_v59  ;;  %918 = vmatpush.msrb.mxu0 %v537_v58  ;;  %v532_v59 = vld [vmem:[%s2089_s6 + $0x3f8] sm:$0xff] }
  0x97   : > { %708 = vmatmul.f32.gmra.mxu1 %v2254_v60 }
  0x98   : > { %919 = vmatpush.msrb.mxu0 %v535_v7  ;;  %1150 = vmatpush.msrb.mxu3 %v440_v8 }
  0x99   : > { %1290 = vmatpush.msra.mxu1 %v532_v59  ;;  %v496_v59 = vld [vmem:[%s2089_s6 + $0x2d8] sm:$0xff] }
  0x9c   : > { %634 = vmatmul.f32.gmra.mxu0 %v2262_v2 }
  0x9d   : > { %788 = vmatmul.f32.gmra.mxu2 %v326_v3  ;;  %865 = vmatmul.f32.gmra.mxu3 %v327_v4  ;;  %v369_v3 = vld [vmem:[%s2082_s29 + $0x2b8] sm:$0xff] }
  0x9e   : > { %v408_v4 = vld [vmem:[%s2089_s6 + $0x18] sm:$0xff] }
  0x9f   : > { %711 = vmatmul.f32.gmra.mxu1 %v2268_v6  ;;  %1073 = vmatpush.msrb.mxu2 %v408_v4  ;;  %v562_v4 = vld [vmem:[%s2089_s6 + $0x4e8] sm:$0xff] }
  0xa1   : > { %1074 = vmatpush.msrb.mxu2 %v406_v17  ;;  %v392_v17 = vld [vmem:[%s2082_s29 + $0x370] sm:$0xff] }
  0xa4   : > { %637 = vmatmul.f32.gmra.mxu0 %v2276_v11 }
  0xa5   : > { %791 = vmatmul.f32.gmra.mxu2 %v332_v12  ;;  %868 = vmatmul.f32.gmra.mxu3 %v333_v13  ;;  %v2366_v12 = vld [vmem:[%s2082_s29 + $0x2d0] sm:$0xff]  ;;  %v374_v13 = vld [vmem:[%s2082_s29 + $0x2e0] sm:$0xff] }
  0xa7   : > { %714 = vmatmul.f32.gmra.mxu1 %v2282_v14 }
  0xac   : > { %640 = vmatmul.f32.gmra.mxu0 %v2289_v19 }
  0xad   : > { %794 = vmatmul.f32.gmra.mxu2 %v338_v20  ;;  %871 = vmatmul.f32.gmra.mxu3 %v339_v22  ;;  %v533_v20 = vld [vmem:[%s2089_s6 + $0x400] sm:$0xff]  ;;  %v438_v22 = vld [vmem:[%s2089_s6 + $0x108] sm:$0xff] }
  0xae   : > { %920 = vmatpush.msrb.mxu0 %v533_v20  ;;  %1151 = vmatpush.msrb.mxu3 %v438_v22  ;;  %v393_v20 = vld [vmem:[%s2082_s29 + $0x378] sm:$0xff] }
  0xaf   : > { %717 = vmatmul.f32.gmra.mxu1 %v2295_v23 }
  0xb0   : > { %1213 = vmatpush.msra.mxu0 %v500_v41  ;;  %1444 = vmatpush.msra.mxu3 %v596_v42 }
  0xb2   : > { %1214 = vmatpush.msra.mxu0 %v498_v24  ;;  %v2438_v24 = vld [vmem:[%s2082_s29 + $0x20] sm:$0xff] }
  0xb4   : > { %643 = vmatmul.f32.gmra.mxu0 %v2301_v26 }
  0xb5   : > { %797 = vmatmul.f32.gmra.mxu2 %v344_v27  ;;  %874 = vmatmul.f32.gmra.mxu3 %v345_v28  ;;  %v2380_v27 = vld [vmem:[%s2082_s29 + $0x300] sm:$0xff]  ;;  %v380_v28 = vld [vmem:[%s2082_s29 + $0x310] sm:$0xff] }
  0xb6   : > { %1215 = vmatpush.msra.mxu0 %v496_v59 }
  0xb7   : > { %720 = vmatmul.f32.gmra.mxu1 %v2307_v30 }
  0xbc   : > { %646 = vmatmul.f32.gmra.mxu0 %v2314_v35 }
  0xbd   : > { %800 = vmatmul.f32.gmra.mxu2 %v350_v36  ;;  %877 = vmatmul.f32.gmra.mxu3 %v351_v38  ;;  %v564_v36 = vld [vmem:[%s2089_s6 + $0x4f8] sm:$0xff] }
  0xbe   : > { %1367 = vmatpush.msra.mxu2 %v564_v36 }
  0xbf   : > { %723 = vmatmul.f32.gmra.mxu1 %v2320_v39 }
  0xc0   : > { %1368 = vmatpush.msra.mxu2 %v562_v4  ;;  %v2433_v4 = vld [vmem:[%s2082_s29 + $0x398] sm:$0xff] }
  0xc4   : > { %649 = vmatmul.f32.gmra.mxu0 %v2328_v46 }
  0xc5   : > { %803 = vmatmul.f32.gmra.mxu2 %v356_v48  ;;  %880 = vmatmul.f32.gmra.mxu3 %v357_v49 }
  0xc7   : > { %726 = vmatmul.f32.gmra.mxu1 %v2334_v51 }
  0xcc   : > { %652 = vmatmul.f32.gmra.mxu0 %v2339_v54 }
  0xcd   : > { %806 = vmatmul.f32.gmra.mxu2 %v362_v55  ;;  %883 = vmatmul.f32.gmra.mxu3 %v363_v56  ;;  %v386_v55 = vld [vmem:[%s2082_s29 + $0x340] sm:$0xff]  ;;  %v387_v56 = vld [vmem:[%s2082_s29 + $0x348] sm:$0xff] }
  0xcf   : > { %729 = vmatmul.f32.gmra.mxu1 %v2348_v62 }
  0xd4   : > { %655 = vmatmul.f32.gmra.mxu0 %v2352_v63 }
  0xd5   : > { %809 = vmatmul.f32.gmra.mxu2 %v368_v1  ;;  %886 = vmatmul.f32.gmra.mxu3 %v369_v3  ;;  %v2402_v1 = vld [vmem:[%s2082_s29 + $0x338] sm:$0xff] }
  0xd7   : > { %732 = vmatmul.f32.gmra.mxu1 %v2361_v9 }
  0xdc   : > { %658 = vmatmul.f32.gmra.mxu0 %v2366_v12 }
  0xdd   : > { %812 = vmatmul.f32.gmra.mxu2 %v374_v13  ;;  %889 = vmatmul.f32.gmra.mxu3 %v375_v16  ;;  %v2407_v16 = vld [vmem:[%s2082_s29 + $0x360] sm:$0xff] }
  0xdf   : > { %735 = vmatmul.f32.gmra.mxu1 %v2373_v18 }
  0xe1   : > { %v614_v25 = vpop.f32.mrf.mxu0 }
  0xe4   : > { %v691_v33 = vpop.f32.mrf.mxu1  ;;  %661 = vmatmul.f32.gmra.mxu0 %v2380_v27 }
  0xe5   : > { %815 = vmatmul.f32.gmra.mxu2 %v380_v28  ;;  %892 = vmatmul.f32.gmra.mxu3 %v381_v31  ;;  %v692_v38 = vadd.f32 %v691_v33, %v614_v25  ;;  %v594_v25 = vld [vmem:[%s2089_s6 + $0x5e8] sm:$0xff] }
  0xe6   : > { %v530_v28 = vld [vmem:[%s2089_s6 + $0x3e8] sm:$0xff]  ;;  %1445 = vmatpush.msra.mxu3 %v594_v25 }
  0xe7   : > { %738 = vmatmul.f32.gmra.mxu1 %v2386_v34  ;;  %v2418_v33 = vld [vmem:[%s2082_s29 + $0x368] sm:$0xff] }
  0xe8   : > { %v768_v43 = vpop.f32.mrf.mxu2  ;;  %v845_v45 = vpop.f32.mrf.mxu3  ;;  %1291 = vmatpush.msra.mxu1 %v530_v28  ;;  %v558_v28 = vld [vmem:[%s2089_s6 + $0x4c8] sm:$0xff] }
  0xe9   : > { %v769_v48 = vadd.f32 %v768_v43, %v692_v38  ;;  %v617_v49 = vpop.f32.mrf.mxu0 }
  0xeb   : > { %v2397_v58 = vadd.f32 %v845_v45, %v769_v48  ;;  %v2422_v45 = vld [vmem:[%s2082_s29 + $0x390] sm:$0xff]  ;;  %v398_v48 = vld [vmem:[%s2082_s29 + $0x3a0] sm:$0xff] }
  0xec   : > { %v694_v61 = vpop.f32.mrf.mxu1  ;;  %664 = vmatmul.f32.gmra.mxu0 %v2393_v52 }
  0xed   : > { %818 = vmatmul.f32.gmra.mxu2 %v386_v55  ;;  %895 = vmatmul.f32.gmra.mxu3 %v387_v56  ;;  %v695_v3 = vadd.f32 %v694_v61, %v617_v49  ;;  %v399_v49 = vld [vmem:[%s2082_s29 + $0x3a8] sm:$0xff]  ;;  %v560_v56 = vld [vmem:[%s2089_s6 + $0x4d8] sm:$0xff] }
  0xee   : > { %v592_v61 = vld [vmem:[%s2089_s6 + $0x5d8] sm:$0xff]  ;;  %1369 = vmatpush.msra.mxu2 %v560_v56 }
  0xef   : > { %741 = vmatmul.f32.gmra.mxu1 %v2402_v1  ;;  %1446 = vmatpush.msra.mxu3 %v592_v61 }
  0xf0   : > { %v771_v7 = vpop.f32.mrf.mxu2  ;;  %v848_v8 = vpop.f32.mrf.mxu3  ;;  %1370 = vmatpush.msra.mxu2 %v558_v28 }
  0xf1   : > { %v772_v10 = vadd.f32 %v771_v7, %v695_v3  ;;  %v620_v13 = vpop.f32.mrf.mxu0  ;;  %v528_v7 = vld [vmem:[%s2089_s6 + $0x3d8] sm:$0xff] }
  0xf2   : > { %1292 = vmatpush.msra.mxu1 %v528_v7  ;;  %v556_v7 = vld [vmem:[%s2089_s6 + $0x4b8] sm:$0xff] }
  0xf3   : > { %v2411_v22 = vadd.f32 %v848_v8, %v772_v10  ;;  %1371 = vmatpush.msra.mxu2 %v556_v7  ;;  %v2483_v7 = vld [vmem:[%s2082_s29 + $0xb0] sm:$0xff] }
  0xf4   : > { %v697_v31 = vpop.f32.mrf.mxu1  ;;  %667 = vmatmul.f32.gmra.mxu0 %v2407_v16 }
  0xf5   : > { %821 = vmatmul.f32.gmra.mxu2 %v392_v17  ;;  %898 = vmatmul.f32.gmra.mxu3 %v393_v20  ;;  %v698_v36 = vadd.f32 %v697_v31, %v620_v13 }
  0xf7   : > { %744 = vmatmul.f32.gmra.mxu1 %v2418_v33 }
  0xf8   : > { %v774_v38 = vpop.f32.mrf.mxu2  ;;  %v851_v41 = vpop.f32.mrf.mxu3 }
  0xf9   : > { %v775_v42 = vadd.f32 %v774_v38, %v698_v36  ;;  %v623_v43 = vpop.f32.mrf.mxu0  ;;  %v2445_v36 = vld [vmem:[%s2082_s29 + $0x28] sm:$0xff] }
  0xfa   : > { %v494_v38 = vld [vmem:[%s2089_s6 + $0x2c8] sm:$0xff] }
  0xfb   : > { %v2426_v55 = vadd.f32 %v851_v41, %v775_v42  ;;  %v590_v41 = vld [vmem:[%s2089_s6 + $0x5c8] sm:$0xff]  ;;  %1216 = vmatpush.msra.mxu0 %v494_v38  ;;  %v2469_v38 = vld [vmem:[%s2082_s29 + $0x80] sm:$0xff] }
  0xfc   : > { %v700_v3 = vpop.f32.mrf.mxu1  ;;  %670 = vmatmul.f32.gmra.mxu0 %v2422_v45  ;;  %1447 = vmatpush.msra.mxu3 %v590_v41 }
  0xfd   : > { %824 = vmatmul.f32.gmra.mxu2 %v398_v48  ;;  %901 = vmatmul.f32.gmra.mxu3 %v399_v49  ;;  %v701_v8 = vadd.f32 %v700_v3, %v623_v43  ;;  %v526_v43 = vld [vmem:[%s2089_s6 + $0x3c8] sm:$0xff]  ;;  %v2460_v3 = vld [vmem:[%s2082_s29 + $0x58] sm:$0xff] }
  0xfe   : > { %1293 = vmatpush.msra.mxu1 %v526_v43 }
  0xff   : > { %747 = vmatmul.f32.gmra.mxu1 %v2433_v4 }
 0x100   : > { %v777_v10 = vpop.f32.mrf.mxu2  ;;  %v854_v13 = vpop.f32.mrf.mxu3 }
 0x101   : > { %v778_v17 = vadd.f32 %v777_v10, %v701_v8  ;;  %v626_v20 = vpop.f32.mrf.mxu0  ;;  %v492_v10 = vld [vmem:[%s2089_s6 + $0x2b8] sm:$0xff] }
 0x102   : > { %1217 = vmatpush.msra.mxu0 %v492_v10  ;;  %v490_v10 = vld [vmem:[%s2089_s6 + $0x2a8] sm:$0xff] }
 0x103   : > { %v2440_v25 = vadd.f32 %v854_v13, %v778_v17  ;;  %v588_v13 = vld [vmem:[%s2089_s6 + $0x5b8] sm:$0xff] }
 0x104   : > { %v703_v31 = vpop.f32.mrf.mxu1  ;;  %921 = vmatmul.f32.vlgmr.msrb.gmra.mxu0 %v2438_v24  ;;  %1448 = vmatpush.msra.mxu3 %v588_v13  ;;  %v586_v13 = vld [vmem:[%s2089_s6 + $0x5a8] sm:$0xff] }
 0x105   : > { %1075 = vmatmul.f32.vlgmr.msrb.gmra.mxu2 %v2155_v0  ;;  %1152 = vmatmul.f32.vlgmr.msrb.gmra.mxu3 %v2163_v5  ;;  %v704_v42 = vadd.f32 %v703_v31, %v626_v20  ;;  %v2454_v0 = vld [vmem:[%s2082_s29 + $0x50] sm:$0xff] }
 0x106   : > { %1449 = vmatpush.msra.mxu3 %v586_v13  ;;  %1218 = vmatpush.msra.mxu0 %v490_v10 }
 0x107   : > { %998 = vmatmul.f32.vlgmr.msrb.gmra.mxu1 %v2445_v36 }
 0x108   : > { %v780_v48 = vpop.f32.mrf.mxu2  ;;  %v857_v49 = vpop.f32.mrf.mxu3 }
 0x109   : > { %v781_v56 = vadd.f32 %v780_v48, %v704_v42  ;;  %v629_v59 = vpop.f32.mrf.mxu0  ;;  %v2476_v42 = vld [vmem:[%s2082_s29 + $0x88] sm:$0xff] }
 0x10a   : > { %v554_v48 = vld [vmem:[%s2089_s6 + $0x4a8] sm:$0xff] }
 0x10b   : > { %v2456_v5 = vadd.f32 %v857_v49, %v781_v56  ;;  %1372 = vmatpush.msra.mxu2 %v554_v48 }
 0x10c   : > { %v706_v61 = vpop.f32.mrf.mxu1  ;;  %924 = vmatmul.f32.gmra.mxu0 %v2454_v0 }
 0x10d   : > { %1078 = vmatmul.f32.gmra.mxu2 %v2176_v15  ;;  %1155 = vmatmul.f32.gmra.mxu3 %v2185_v21  ;;  %v707_v8 = vadd.f32 %v706_v61, %v629_v59  ;;  %v524_v21 = vld [vmem:[%s2089_s6 + $0x3b8] sm:$0xff] }
 0x10e   : > { %1294 = vmatpush.msra.mxu1 %v524_v21 }
 0x10f   : > { %1001 = vmatmul.f32.gmra.mxu1 %v2460_v3 }
 0x110   : > { %v783_v17 = vpop.f32.mrf.mxu2  ;;  %v860_v20 = vpop.f32.mrf.mxu3 }
 0x111   : > { %v784_v28 = vadd.f32 %v783_v17, %v707_v8  ;;  %v632_v31 = vpop.f32.mrf.mxu0 }
 0x113   : > { %v2471_v15 = vadd.f32 %v860_v20, %v784_v28 }
 0x114   : > { %v709_v41 = vpop.f32.mrf.mxu1  ;;  %927 = vmatmul.f32.gmra.mxu0 %v2469_v38 }
 0x115   : > { %1081 = vmatmul.f32.gmra.mxu2 %v2196_v29  ;;  %1158 = vmatmul.f32.gmra.mxu3 %v2202_v32  ;;  %v710_v43 = vadd.f32 %v709_v41, %v632_v31  ;;  %v522_v29 = vld [vmem:[%s2089_s6 + $0x3a8] sm:$0xff]  ;;  %v2492_v32 = vld [vmem:[%s2082_s29 + $0xb8] sm:$0xff] }
 0x116   : > { %1295 = vmatpush.msra.mxu1 %v522_v29 }
 0x117   : > { %1004 = vmatmul.f32.gmra.mxu1 %v2476_v42 }
 0x118   : > { %v786_v49 = vpop.f32.mrf.mxu2  ;;  %v863_v56 = vpop.f32.mrf.mxu3 }
 0x119   : > { %v787_v59 = vadd.f32 %v786_v49, %v710_v43  ;;  %v635_v61 = vpop.f32.mrf.mxu0  ;;  %v2498_v43 = vld [vmem:[%s2082_s29 + $0xe0] sm:$0xff]  ;;  %v552_v49 = vld [vmem:[%s2089_s6 + $0x498] sm:$0xff] }
 0x11a   : > { %1373 = vmatpush.msra.mxu2 %v552_v49  ;;  %v582_v49 = vld [vmem:[%s2089_s6 + $0x588] sm:$0xff] }
 0x11b   : > { %v2485_v8 = vadd.f32 %v863_v56, %v787_v59  ;;  %v488_v56 = vld [vmem:[%s2089_s6 + $0x298] sm:$0xff] }
 0x11c   : > { %v712_v17 = vpop.f32.mrf.mxu1  ;;  %930 = vmatmul.f32.gmra.mxu0 %v2483_v7 }
 0x11d   : > { %1084 = vmatmul.f32.gmra.mxu2 %v2210_v37  ;;  %1161 = vmatmul.f32.gmra.mxu3 %v2216_v40  ;;  %v713_v20 = vadd.f32 %v712_v17, %v635_v61  ;;  %v584_v37 = vld [vmem:[%s2089_s6 + $0x598] sm:$0xff]  ;;  %v2507_v40 = vld [vmem:[%s2082_s29 + $0xe8] sm:$0xff] }
 0x11e   : > { %v520_v61 = vld [vmem:[%s2089_s6 + $0x398] sm:$0xff]  ;;  %1219 = vmatpush.msra.mxu0 %v488_v56  ;;  %1450 = vmatpush.msra.mxu3 %v584_v37  ;;  %v518_v37 = vld [vmem:[%s2089_s6 + $0x388] sm:$0xff] }
 0x11f   : > { %1007 = vmatmul.f32.gmra.mxu1 %v2492_v32 }
 0x120   : > { %v789_v28 = vpop.f32.mrf.mxu2  ;;  %v866_v31 = vpop.f32.mrf.mxu3  ;;  %1296 = vmatpush.msra.mxu1 %v520_v61  ;;  %1451 = vmatpush.msra.mxu3 %v582_v49 }
 0x121   : > { %v790_v21 = vadd.f32 %v789_v28, %v713_v20  ;;  %v638_v41 = vpop.f32.mrf.mxu0  ;;  %v2514_v28 = vld [vmem:[%s2082_s29 + $0x110] sm:$0xff] }
 0x122   : > { %1297 = vmatpush.msra.mxu1 %v518_v37 }
 0x123   : > { %v2500_v48 = vadd.f32 %v866_v31, %v790_v21  ;;  %v2521_v21 = vld [vmem:[%s2082_s29 + $0x118] sm:$0xff] }
 0x124   : > { %v715_v59 = vpop.f32.mrf.mxu1  ;;  %933 = vmatmul.f32.gmra.mxu0 %v2498_v43 }
 0x125   : > { %1087 = vmatmul.f32.gmra.mxu2 %v2223_v44  ;;  %1164 = vmatmul.f32.gmra.mxu3 %v2229_v47  ;;  %v716_v10 = vadd.f32 %v715_v59, %v638_v41  ;;  %v550_v47 = vld [vmem:[%s2089_s6 + $0x488] sm:$0xff] }
 0x126   : > { %1374 = vmatpush.msra.mxu2 %v550_v47  ;;  %v486_v41 = vld [vmem:[%s2089_s6 + $0x288] sm:$0xff] }
 0x127   : > { %1010 = vmatmul.f32.gmra.mxu1 %v2507_v40  ;;  %1220 = vmatpush.msra.mxu0 %v486_v41  ;;  %v580_v41 = vld [vmem:[%s2089_s6 + $0x578] sm:$0xff] }
 0x128   : > { %v792_v13 = vpop.f32.mrf.mxu2  ;;  %v869_v29 = vpop.f32.mrf.mxu3  ;;  %1452 = vmatpush.msra.mxu3 %v580_v41 }
 0x129   : > { %v793_v17 = vadd.f32 %v792_v13, %v716_v10  ;;  %v641_v20 = vpop.f32.mrf.mxu0 }
 0x12b   : > { %v2516_v44 = vadd.f32 %v869_v29, %v793_v17  ;;  %v2536_v17 = vld [vmem:[%s2082_s29 + $0x148] sm:$0xff] }
 0x12c   : > { %v718_v31 = vpop.f32.mrf.mxu1  ;;  %936 = vmatmul.f32.gmra.mxu0 %v2514_v28  ;;  %3000 = vst [vmem:[#allocation3_spill] sm:$0xff] %v2536_v17 }
 0x12d   : > { %1090 = vmatmul.f32.gmra.mxu2 %v2235_v50  ;;  %1167 = vmatmul.f32.gmra.mxu3 %v2241_v53  ;;  %v719_v56 = vadd.f32 %v718_v31, %v641_v20  ;;  %v2530_v50 = vld [vmem:[%s2082_s29 + $0x140] sm:$0xff]  ;;  %v548_v20 = vld [vmem:[%s2089_s6 + $0x478] sm:$0xff] }
 0x12e   : > { %1375 = vmatpush.msra.mxu2 %v548_v20  ;;  %v484_v31 = vld [vmem:[%s2089_s6 + $0x278] sm:$0xff]  ;;  %v546_v20 = vld [vmem:[%s2089_s6 + $0x468] sm:$0xff] }
 0x12f   : > { %1013 = vmatmul.f32.gmra.mxu1 %v2521_v21  ;;  %1221 = vmatpush.msra.mxu0 %v484_v31 }
 0x130   : > { %v795_v59 = vpop.f32.mrf.mxu2  ;;  %v872_v61 = vpop.f32.mrf.mxu3  ;;  %1376 = vmatpush.msra.mxu2 %v546_v20 }
 0x131   : > { %v796_v10 = vadd.f32 %v795_v59, %v719_v56  ;;  %v644_v13 = vpop.f32.mrf.mxu0 }
 0x133   : > { %v2532_v53 = vadd.f32 %v872_v61, %v796_v10  ;;  %v2545_v61 = vld [vmem:[%s2082_s29 + $0x170] sm:$0xff] }
 0x134   : > { %v721_v29 = vpop.f32.mrf.mxu1  ;;  %939 = vmatmul.f32.gmra.mxu0 %v2530_v50  ;;  %3001 = vst [vmem:[#allocation4_spill] sm:$0xff] %v2545_v61 }
 0x135   : > { %1093 = vmatmul.f32.gmra.mxu2 %v2248_v57  ;;  %1170 = vmatmul.f32.gmra.mxu3 %v2254_v60  ;;  %v722_v47 = vadd.f32 %v721_v29, %v644_v13  ;;  %v516_v60 = vld [vmem:[%s2089_s6 + $0x378] sm:$0xff] }
 0x136   : > { %v2552_v13 = vld [vmem:[%s2082_s29 + $0x178] sm:$0xff]  ;;  %1298 = vmatpush.msra.mxu1 %v516_v60  ;;  %v578_v60 = vld [vmem:[%s2089_s6 + $0x568] sm:$0xff] }
 0x137   : > { %1016 = vmatmul.f32.gmra.mxu1 %v2536_v17  ;;  %3002 = vst [vmem:[#allocation5_spill] sm:$0xff] %v2552_v13  ;;  %1453 = vmatpush.msra.mxu3 %v578_v60  ;;  %v544_v60 = vld [vmem:[%s2089_s6 + $0x458] sm:$0xff] }
 0x138   : > { %v798_v49 = vpop.f32.mrf.mxu2  ;;  %v875_v56 = vpop.f32.mrf.mxu3  ;;  %1377 = vmatpush.msra.mxu2 %v544_v60 }
 0x139   : > { %v799_v37 = vadd.f32 %v798_v49, %v722_v47  ;;  %v647_v59 = vpop.f32.mrf.mxu0 }
 0x13b   : > { %v2547_v57 = vadd.f32 %v875_v56, %v799_v37  ;;  %v2559_v56 = vld [vmem:[%s2082_s29 + $0x1a0] sm:$0xff] }
 0x13c   : > { %v724_v10 = vpop.f32.mrf.mxu1  ;;  %942 = vmatmul.f32.gmra.mxu0 %v2545_v61  ;;  %3003 = vst [vmem:[#allocation6_spill] sm:$0xff] %v2559_v56  ;;  %v482_v61 = vld [vmem:[%s2089_s6 + $0x268] sm:$0xff] }
 0x13d   : > { %1096 = vmatmul.f32.gmra.mxu2 %v2262_v2  ;;  %1173 = vmatmul.f32.gmra.mxu3 %v2268_v6  ;;  %v725_v29 = vadd.f32 %v724_v10, %v647_v59  ;;  %v514_v2 = vld [vmem:[%s2089_s6 + $0x368] sm:$0xff] }
 0x13e   : > { %v2568_v6 = vld [vmem:[%s2082_s29 + $0x1a8] sm:$0xff]  ;;  %1222 = vmatpush.msra.mxu0 %v482_v61  ;;  %1299 = vmatpush.msra.mxu1 %v514_v2 }
 0x13f   : > { %1019 = vmatmul.f32.gmra.mxu1 %v2552_v13 }
 0x140   : > { %v801_v47 = vpop.f32.mrf.mxu2  ;;  %v878_v31 = vpop.f32.mrf.mxu3 }
 0x141   : > { %v802_v41 = vadd.f32 %v801_v47, %v725_v29  ;;  %v650_v49 = vpop.f32.mrf.mxu0 }
 0x143   : > { %v2561_v37 = vadd.f32 %v878_v31, %v802_v41  ;;  %v2574_v31 = vld [vmem:[%s2082_s29 + $0x1d0] sm:$0xff] }
 0x144   : > { %v727_v17 = vpop.f32.mrf.mxu1  ;;  %945 = vmatmul.f32.gmra.mxu0 %v2559_v56  ;;  %v480_v56 = vld [vmem:[%s2089_s6 + $0x258] sm:$0xff] }
 0x145   : > { %1099 = vmatmul.f32.gmra.mxu2 %v2276_v11  ;;  %1176 = vmatmul.f32.gmra.mxu3 %v2282_v14  ;;  %v728_v59 = vadd.f32 %v727_v17, %v650_v49  ;;  %v576_v11 = vld [vmem:[%s2089_s6 + $0x558] sm:$0xff] }
 0x146   : > { %v2583_v14 = vld [vmem:[%s2082_s29 + $0x1d8] sm:$0xff]  ;;  %1223 = vmatpush.msra.mxu0 %v480_v56  ;;  %1454 = vmatpush.msra.mxu3 %v576_v11  ;;  %v2597_v56 = vld [vmem:[%s2082_s29 + $0x208] sm:$0xff] }
 0x147   : > { %1022 = vmatmul.f32.gmra.mxu1 %v2568_v6  ;;  %v512_v17 = vld [vmem:[%s2089_s6 + $0x358] sm:$0xff]  ;;  %v510_v11 = vld [vmem:[%s2089_s6 + $0x348] sm:$0xff] }
 0x148   : > { %v804_v10 = vpop.f32.mrf.mxu2  ;;  %v881_v29 = vpop.f32.mrf.mxu3  ;;  %1300 = vmatpush.msra.mxu1 %v512_v17 }
 0x149   : > { %v805_v20 = vadd.f32 %v804_v10, %v728_v59  ;;  %v653_v47 = vpop.f32.mrf.mxu0 }
 0x14a   : > { %1301 = vmatpush.msra.mxu1 %v510_v11 }
 0x14b   : > { %v2576_v41 = vadd.f32 %v881_v29, %v805_v20  ;;  %v2590_v29 = vld [vmem:[%s2082_s29 + $0x200] sm:$0xff] }
 0x14c   : > { %v730_v13 = vpop.f32.mrf.mxu1  ;;  %948 = vmatmul.f32.gmra.mxu0 %v2574_v31 }
 0x14d   : > { %1102 = vmatmul.f32.gmra.mxu2 %v2289_v19  ;;  %1179 = vmatmul.f32.gmra.mxu3 %v2295_v23  ;;  %v731_v61 = vadd.f32 %v730_v13, %v653_v47  ;;  %v542_v23 = vld [vmem:[%s2089_s6 + $0x448] sm:$0xff] }
 0x14e   : > { %1378 = vmatpush.msra.mxu2 %v542_v23  ;;  %v478_v13 = vld [vmem:[%s2089_s6 + $0x248] sm:$0xff]  ;;  %v2612_v23 = vld [vmem:[%s2082_s29 + $0x238] sm:$0xff] }
 0x14f   : > { %1025 = vmatmul.f32.gmra.mxu1 %v2583_v14  ;;  %v574_v47 = vld [vmem:[%s2089_s6 + $0x548] sm:$0xff]  ;;  %1224 = vmatpush.msra.mxu0 %v478_v13  ;;  %3004 = vst [vmem:[#allocation7_spill] sm:$0xff] %v2612_v23  ;;  %v476_v13 = vld [vmem:[%s2089_s6 + $0x238] sm:$0xff] }
 0x150   : > { %v807_v49 = vpop.f32.mrf.mxu2  ;;  %v884_v2 = vpop.f32.mrf.mxu3  ;;  %1455 = vmatpush.msra.mxu3 %v574_v47  ;;  %v572_v47 = vld [vmem:[%s2089_s6 + $0x538] sm:$0xff] }
 0x151   : > { %v808_v59 = vadd.f32 %v807_v49, %v731_v61  ;;  %v656_v10 = vpop.f32.mrf.mxu0  ;;  %1225 = vmatpush.msra.mxu0 %v476_v13 }
 0x152   : > { %1456 = vmatpush.msra.mxu3 %v572_v47  ;;  %v2634_v47 = vld [vmem:[%s2082_s29 + $0x290] sm:$0xff] }
 0x153   : > { %v2592_v19 = vadd.f32 %v884_v2, %v808_v59  ;;  %3006 = vst [vmem:[#allocation9_spill] sm:$0xff] %v2634_v47 }
 0x154   : > { %v733_v20 = vpop.f32.mrf.mxu1  ;;  %951 = vmatmul.f32.gmra.mxu0 %v2590_v29 }
 0x155   : > { %1105 = vmatmul.f32.gmra.mxu2 %v2301_v26  ;;  %1182 = vmatmul.f32.gmra.mxu3 %v2307_v30  ;;  %v734_v60 = vadd.f32 %v733_v20, %v656_v10  ;;  %v2606_v26 = vld [vmem:[%s2082_s29 + $0x230] sm:$0xff]  ;;  %v540_v10 = vld [vmem:[%s2089_s6 + $0x438] sm:$0xff] }
 0x156   : > { %1379 = vmatpush.msra.mxu2 %v540_v10 }
 0x157   : > { %1028 = vmatmul.f32.gmra.mxu1 %v2597_v56 }
 0x158   : > { %v810_v17 = vpop.f32.mrf.mxu2  ;;  %v887_v61 = vpop.f32.mrf.mxu3 }
 0x159   : > { %v811_v49 = vadd.f32 %v810_v17, %v734_v60  ;;  %v659_v2 = vpop.f32.mrf.mxu0 }
 0x15b   : > { %v2608_v30 = vadd.f32 %v887_v61, %v811_v49  ;;  %v2621_v49 = vld [vmem:[%s2082_s29 + $0x260] sm:$0xff] }
 0x15c   : > { %v736_v59 = vpop.f32.mrf.mxu1  ;;  %954 = vmatmul.f32.gmra.mxu0 %v2606_v26  ;;  %3005 = vst [vmem:[#allocation8_spill] sm:$0xff] %v2621_v49 }
 0x15d   : > { %1108 = vmatmul.f32.gmra.mxu2 %v2314_v35  ;;  %1185 = vmatmul.f32.gmra.mxu3 %v2320_v39  ;;  %v737_v20 = vadd.f32 %v736_v59, %v659_v2  ;;  %v508_v39 = vld [vmem:[%s2089_s6 + $0x338] sm:$0xff]  ;;  %v2628_v59 = vld [vmem:[%s2082_s29 + $0x268] sm:$0xff] }
 0x15e   : > { %1302 = vmatpush.msra.mxu1 %v508_v39  ;;  %v506_v39 = vld [vmem:[%s2089_s6 + $0x328] sm:$0xff] }
 0x15f   : > { %1031 = vmatmul.f32.gmra.mxu1 %v2612_v23  ;;  %v570_v23 = vld [vmem:[%s2089_s6 + $0x528] sm:$0xff] }
 0x160   : > { %v813_v60 = vpop.f32.mrf.mxu2  ;;  %v890_v11 = vpop.f32.mrf.mxu3  ;;  %1457 = vmatpush.msra.mxu3 %v570_v23  ;;  %1303 = vmatpush.msra.mxu1 %v506_v39  ;;  %v568_v39 = vld [vmem:[%s2089_s6 + $0x518] sm:$0xff] }
 0x161   : > { %v814_v17 = vadd.f32 %v813_v60, %v737_v20  ;;  %v662_v61 = vpop.f32.mrf.mxu0 }
 0x162   : > { %1458 = vmatpush.msra.mxu3 %v568_v39 }
 0x163   : > { %v2623_v35 = vadd.f32 %v890_v11, %v814_v17  ;;  %v538_v17 = vld [vmem:[%s2089_s6 + $0x428] sm:$0xff] }
 0x164   : > { %v739_v2 = vpop.f32.mrf.mxu1  ;;  %957 = vmatmul.f32.gmra.mxu0 %v2621_v49  ;;  %v474_v49 = vld [vmem:[%s2089_s6 + $0x228] sm:$0xff]  ;;  %1380 = vmatpush.msra.mxu2 %v538_v17  ;;  %v472_v17 = vld [vmem:[%s2089_s6 + $0x218] sm:$0xff] }
 0x165   : > { %1111 = vmatmul.f32.gmra.mxu2 %v2328_v46  ;;  %1188 = vmatmul.f32.gmra.mxu3 %v2334_v51  ;;  %v740_v10 = vadd.f32 %v739_v2, %v662_v61  ;;  %v2644_v61 = vld [vmem:[%s2082_s29 + $0x298] sm:$0xff] }
 0x166   : > { %1226 = vmatpush.msra.mxu0 %v474_v49 }
 0x167   : > { %1034 = vmatmul.f32.gmra.mxu1 %v2628_v59 }
 0x168   : > { %v816_v20 = vpop.f32.mrf.mxu2  ;;  %v893_v13 = vpop.f32.mrf.mxu3  ;;  %1227 = vmatpush.msra.mxu0 %v472_v17  ;;  %v534_v17 = vld [vmem:[%s2089_s6 + $0x408] sm:$0xff] }
 0x169   : > { %v817_v60 = vadd.f32 %v816_v20, %v740_v10  ;;  %v665_v11 = vpop.f32.mrf.mxu0 }
 0x16b   : > { %v2640_v46 = vadd.f32 %v893_v13, %v817_v60  ;;  %v2650_v13 = vld [vmem:[%s2082_s29 + $0x2c0] sm:$0xff]  ;;  %v536_v60 = vld [vmem:[%s2089_s6 + $0x418] sm:$0xff] }
 0x16c   : > { %v742_v51 = vpop.f32.mrf.mxu1  ;;  %960 = vmatmul.f32.gmra.mxu0 %v2634_v47  ;;  %1381 = vmatpush.msra.mxu2 %v536_v60  ;;  %v504_v60 = vld [vmem:[%s2089_s6 + $0x318] sm:$0xff] }
 0x16d   : > { %1114 = vmatmul.f32.gmra.mxu2 %v2339_v54  ;;  %1191 = vmatmul.f32.gmra.mxu3 %v2348_v62  ;;  %v743_v2 = vadd.f32 %v742_v51, %v665_v11  ;;  %v2659_v62 = vld [vmem:[%s2082_s29 + $0x2c8] sm:$0xff] }
 0x16e   : > { %3007 = vst [vmem:[#allocation10_spill] sm:$0xff] %v2659_v62  ;;  %1304 = vmatpush.msra.mxu1 %v504_v60  ;;  %1382 = vmatpush.msra.mxu2 %v534_v17  ;;  %v470_v60 = vld [vmem:[%s2089_s6 + $0x208] sm:$0xff] }
 0x16f   : > { %1037 = vmatmul.f32.gmra.mxu1 %v2644_v61  ;;  %v566_v17 = vld [vmem:[%s2089_s6 + $0x508] sm:$0xff]  ;;  %1228 = vmatpush.msra.mxu0 %v470_v60 }
 0x170   : > { %v819_v49 = vpop.f32.mrf.mxu2  ;;  %v896_v10 = vpop.f32.mrf.mxu3  ;;  %1459 = vmatpush.msra.mxu3 %v566_v17  ;;  %v244_v17 = vld [vmem:[#allocation2 + $0x10] sm:$0xff] }
 0x171   : > { %v820_v20 = vadd.f32 %v819_v49, %v743_v2  ;;  %v668_v23 = vpop.f32.mrf.mxu0 }
 0x173   : > { %v2655_v47 = vadd.f32 %v896_v10, %v820_v20  ;;  %v2665_v20 = vld [vmem:[%s2082_s29 + $0x2f0] sm:$0xff] }
 0x174   : > { %v745_v54 = vpop.f32.mrf.mxu1  ;;  %963 = vmatmul.f32.gmra.mxu0 %v2650_v13  ;;  %3008 = vst [vmem:[#allocation11_spill] sm:$0xff] %v2665_v20 }
 0x175   : > { %1117 = vmatmul.f32.gmra.mxu2 %v2352_v63  ;;  %1194 = vmatmul.f32.gmra.mxu3 %v2361_v9  ;;  %v746_v11 = vadd.f32 %v745_v54, %v668_v23  ;;  %v2673_v9 = vld [vmem:[%s2082_s29 + $0x2f8] sm:$0xff] }
 0x177   : > { %1040 = vmatmul.f32.gmra.mxu1 %v2659_v62  ;;  %v502_v62 = vld [vmem:[%s2089_s6 + $0x308] sm:$0xff] }
 0x178   : > { %v822_v51 = vpop.f32.mrf.mxu2  ;;  %v899_v2 = vpop.f32.mrf.mxu3  ;;  %1305 = vmatpush.msra.mxu1 %v502_v62 }
 0x179   : > { %v823_v49 = vadd.f32 %v822_v51, %v746_v11  ;;  %v671_v10 = vpop.f32.mrf.mxu0  ;;  %v2679_v51 = vld [vmem:[%s2082_s29 + $0x320] sm:$0xff] }
 0x17b   : > { %v2669_v39 = vadd.f32 %v899_v2, %v823_v49 }
 0x17c   : > { %v748_v63 = vpop.f32.mrf.mxu1  ;;  %966 = vmatmul.f32.gmra.mxu0 %v2665_v20 }
 0x17d   : > { %1120 = vmatmul.f32.gmra.mxu2 %v2366_v12  ;;  %1197 = vmatmul.f32.gmra.mxu3 %v2373_v18  ;;  %v749_v23 = vadd.f32 %v748_v63, %v671_v10  ;;  %v242_v18 = vld [vmem:[#allocation2 + $0xb0] sm:$0xff]  ;;  %v2689_v63 = vld [vmem:[%s2082_s29 + $0x328] sm:$0xff] }
 0x17f   : > { %1043 = vmatmul.f32.gmra.mxu1 %v2673_v9 }
 0x180   : > { %v825_v54 = vpop.f32.mrf.mxu2  ;;  %v902_v11 = vpop.f32.mrf.mxu3 }
 0x181   : > { %v826_v2 = vadd.f32 %v825_v54, %v749_v23  ;;  %v922_v49 = vpop.f32.mrf.mxu0 }
 0x182   : > { %v923_v20 = vadd.f32 %v922_v49, %v2397_v58  ;;  %v2697_v49 = vld [vmem:[%s2082_s29 + $0x350] sm:$0xff] }
 0x183   : > { %v2685_v12 = vadd.f32 %v902_v11, %v826_v2 }
 0x184   : > { %v999_v10 = vpop.f32.mrf.mxu1  ;;  %969 = vmatmul.f32.gmra.mxu0 %v2679_v51 }
 0x185   : > { %v1000_v23 = vadd.f32 %v999_v10, %v923_v20  ;;  %1123 = vmatmul.f32.gmra.mxu2 %v2380_v27  ;;  %1200 = vmatmul.f32.gmra.mxu3 %v2386_v34  ;;  %v2702_v27 = vld [vmem:[%s2082_s29 + $0x358] sm:$0xff] }
 0x187   : > { %v1521_v54 = vadd.f32 %v1000_v23, %v242_v18  ;;  %1046 = vmatmul.f32.gmra.mxu1 %v2689_v63 }
 0x188   : > { %v1076_v58 = vpop.f32.mrf.mxu2  ;;  %v1153_v11 = vpop.f32.mrf.mxu3 }
 0x189   : > { %1561 = vst [vmem:[#allocation2 + $0xb0] sm:$0xff] %v1521_v54  ;;  %v2694_v2 = vadd.f32 %v1153_v11, %v1076_v58  ;;  %v925_v62 = vpop.f32.mrf.mxu0  ;;  %v2710_v58 = vld [vmem:[%s2082_s29 + $0x380] sm:$0xff] }
 0x18a   : > { %v926_v60 = vadd.f32 %v925_v62, %v2411_v22  ;;  %3009 = vst [vmem:[#allocation12_spill] sm:$0xff] %v2710_v58  ;;  %v246_v62 = vld [vmem:[#allocation2 + $0x120] sm:$0xff] }
 0x18c   : > { %v1002_v20 = vpop.f32.mrf.mxu1  ;;  %972 = vmatmul.f32.gmra.mxu0 %v2697_v49 }
 0x18d   : > { %v1003_v34 = vadd.f32 %v1002_v20, %v926_v60  ;;  %1126 = vmatmul.f32.gmra.mxu2 %v2393_v52  ;;  %1203 = vmatmul.f32.gmra.mxu3 %v2402_v1  ;;  %v2715_v52 = vld [vmem:[%s2082_s29 + $0x388] sm:$0xff] }
 0x18f   : > { %v1523_v18 = vadd.f32 %v1003_v34, %v244_v17  ;;  %1049 = vmatmul.f32.gmra.mxu1 %v2702_v27 }
 0x190   : > { %v1079_v10 = vpop.f32.mrf.mxu2  ;;  %v1156_v23 = vpop.f32.mrf.mxu3 }
 0x191   : > { %1563 = vst [vmem:[#allocation2 + $0x10] sm:$0xff] %v1523_v18  ;;  %v2707_v54 = vadd.f32 %v1156_v23, %v1079_v10  ;;  %v928_v22 = vpop.f32.mrf.mxu0  ;;  %v2723_v10 = vld [vmem:[%s2082_s29 + $0x3b0] sm:$0xff] }
 0x192   : > { %v929_v11 = vadd.f32 %v928_v22, %v2426_v55  ;;  %v248_v22 = vld [vmem:[#allocation2 + $0xf8] sm:$0xff] }
 0x194   : > { %v1005_v60 = vpop.f32.mrf.mxu1  ;;  %975 = vmatmul.f32.gmra.mxu0 %v2710_v58 }
 0x195   : > { %v1006_v1 = vadd.f32 %v1005_v60, %v929_v11  ;;  %1129 = vmatmul.f32.gmra.mxu2 %v2407_v16  ;;  %1206 = vmatmul.f32.gmra.mxu3 %v2418_v33  ;;  %v2728_v16 = vld [vmem:[%s2082_s29 + $0x3b8] sm:$0xff] }
 0x197   : > { %v1525_v17 = vadd.f32 %v1006_v1, %v246_v62  ;;  %1052 = vmatmul.f32.gmra.mxu1 %v2715_v52 }
 0x198   : > { %v1082_v20 = vpop.f32.mrf.mxu2  ;;  %v1159_v34 = vpop.f32.mrf.mxu3 }
 0x199   : > { %1565 = vst [vmem:[#allocation2 + $0x120] sm:$0xff] %v1525_v17  ;;  %v2720_v18 = vadd.f32 %v1159_v34, %v1082_v20  ;;  %v931_v55 = vpop.f32.mrf.mxu0  ;;  %v250_v20 = vld [vmem:[#allocation2 + $0x80] sm:$0xff] }
 0x19a   : > { %v932_v23 = vadd.f32 %v931_v55, %v2440_v25  ;;  %v1940_v55 = vld [vmem:[%s2082_s29 + $0x10] sm:$0xff] }
 0x19c   : > { %v1008_v58 = vpop.f32.mrf.mxu1  ;;  %978 = vmatmul.f32.gmra.mxu0 %v2723_v10 }
 0x19d   : > { %v1009_v33 = vadd.f32 %v1008_v58, %v932_v23  ;;  %1132 = vmatmul.f32.gmra.mxu2 %v2422_v45  ;;  %1209 = vmatmul.f32.gmra.mxu3 %v2433_v4  ;;  %v1941_v58 = vld [vmem:[%s2082_s29 + $0x18] sm:$0xff] }
 0x19f   : > { %v1527_v11 = vadd.f32 %v1009_v33, %v248_v22  ;;  %1055 = vmatmul.f32.gmra.mxu1 %v2728_v16 }
 0x1a0   : > { %v1085_v62 = vpop.f32.mrf.mxu2  ;;  %v1162_v60 = vpop.f32.mrf.mxu3 }
 0x1a1   : > { %1567 = vst [vmem:[#allocation2 + $0xf8] sm:$0xff] %v1527_v11  ;;  %v2733_v25 = vadd.f32 %v1162_v60, %v1085_v62  ;;  %v934_v1 = vpop.f32.mrf.mxu0  ;;  %v252_v62 = vld [vmem:[#allocation2 + $0x138] sm:$0xff] }
 0x1a2   : > { %v935_v17 = vadd.f32 %v934_v1, %v2456_v5  ;;  %v1942_v1 = vld [vmem:[%s2082_s29 + $0x40] sm:$0xff] }
 0x1a4   : > { %v1011_v34 = vpop.f32.mrf.mxu1  ;;  %1229 = vmatmul.f32.vlgmr.msra.gmra.mxu0 %v1940_v55 }
 0x1a5   : > { %v1012_v45 = vadd.f32 %v1011_v34, %v935_v17  ;;  %1383 = vmatmul.f32.vlgmr.msra.gmra.mxu2 %v2438_v24  ;;  %1460 = vmatmul.f32.vlgmr.msra.gmra.mxu3 %v2445_v36  ;;  %v1943_v17 = vld [vmem:[%s2082_s29 + $0x48] sm:$0xff] }
 0x1a7   : > { %v1529_v4 = vadd.f32 %v1012_v45, %v250_v20  ;;  %1306 = vmatmul.f32.vlgmr.msra.gmra.mxu1 %v1941_v58 }
 0x1a8   : > { %v1088_v23 = vpop.f32.mrf.mxu2  ;;  %v1165_v22 = vpop.f32.mrf.mxu3 }
 0x1a9   : > { %1569 = vst [vmem:[#allocation2 + $0x80] sm:$0xff] %v1529_v4  ;;  %v2740_v33 = vadd.f32 %v1165_v22, %v1088_v23  ;;  %v937_v5 = vpop.f32.mrf.mxu0  ;;  %v254_v4 = vld [vmem:[#allocation2 + $0x18] sm:$0xff]  ;;  %v1944_v23 = vld [vmem:[%s2082_s29 + $0x70] sm:$0xff] }
 0x1aa   : > { %v938_v11 = vadd.f32 %v937_v5, %v2471_v15  ;;  %v1945_v22 = vld [vmem:[%s2082_s29 + $0x78] sm:$0xff] }
 0x1ac   : > { %v1014_v60 = vpop.f32.mrf.mxu1  ;;  %1232 = vmatmul.f32.gmra.mxu0 %v1942_v1  ;;  %v256_v1 = vld [vmem:[#allocation2 + $0x70] sm:$0xff] }
 0x1ad   : > { %v1015_v24 = vadd.f32 %v1014_v60, %v938_v11  ;;  %1386 = vmatmul.f32.gmra.mxu2 %v2454_v0  ;;  %1463 = vmatmul.f32.gmra.mxu3 %v2460_v3 }
 0x1af   : > { %v1531_v36 = vadd.f32 %v1015_v24, %v252_v62  ;;  %1309 = vmatmul.f32.gmra.mxu1 %v1943_v17  ;;  %v1947_v17 = vld [vmem:[%s2082_s29 + $0xa8] sm:$0xff] }
 0x1b0   : > { %v1091_v20 = vpop.f32.mrf.mxu2  ;;  %v1168_v34 = vpop.f32.mrf.mxu3 }
 0x1b1   : > { %1571 = vst [vmem:[#allocation2 + $0x138] sm:$0xff] %v1531_v36  ;;  %v2747_v55 = vadd.f32 %v1168_v34, %v1091_v20  ;;  %v940_v15 = vpop.f32.mrf.mxu0  ;;  %v1946_v36 = vld [vmem:[%s2082_s29 + $0xa0] sm:$0xff] }
 0x1b2   : > { %v941_v45 = vadd.f32 %v940_v15, %v2485_v8 }
 0x1b4   : > { %v1017_v58 = vpop.f32.mrf.mxu1  ;;  %1235 = vmatmul.f32.gmra.mxu0 %v1944_v23  ;;  %v1948_v23 = vld [vmem:[%s2082_s29 + $0xd0] sm:$0xff] }
 0x1b5   : > { %v1018_v0 = vadd.f32 %v1017_v58, %v941_v45  ;;  %1389 = vmatmul.f32.gmra.mxu2 %v2469_v38  ;;  %1466 = vmatmul.f32.gmra.mxu3 %v2476_v42 }
 0x1b7   : > { %v1533_v3 = vadd.f32 %v1018_v0, %v254_v4  ;;  %1312 = vmatmul.f32.gmra.mxu1 %v1945_v22  ;;  %v258_v4 = vld [vmem:[#allocation2 + $0x128] sm:$0xff]  ;;  %v1949_v0 = vld [vmem:[%s2082_s29 + $0xd8] sm:$0xff] }
 0x1b8   : > { %v1094_v5 = vpop.f32.mrf.mxu2  ;;  %v1171_v11 = vpop.f32.mrf.mxu3 }
 0x1b9   : > { %1573 = vst [vmem:[#allocation2 + $0x18] sm:$0xff] %v1533_v3  ;;  %v2754_v62 = vadd.f32 %v1171_v11, %v1094_v5  ;;  %v943_v8 = vpop.f32.mrf.mxu0 }
 0x1ba   : > { %v944_v60 = vadd.f32 %v943_v8, %v2500_v48  ;;  %v260_v8 = vld [vmem:[#allocation2 + $0x8] sm:$0xff] }
 0x1bc   : > { %v1020_v24 = vpop.f32.mrf.mxu1  ;;  %1238 = vmatmul.f32.gmra.mxu0 %v1946_v36 }
 0x1bd   : > { %v1021_v38 = vadd.f32 %v1020_v24, %v944_v60  ;;  %1392 = vmatmul.f32.gmra.mxu2 %v2483_v7  ;;  %1469 = vmatmul.f32.gmra.mxu3 %v2492_v32  ;;  %v1951_v24 = vld [vmem:[%s2082_s29 + $0x108] sm:$0xff] }
 0x1bf   : > { %v1535_v42 = vadd.f32 %v1021_v38, %v256_v1  ;;  %1315 = vmatmul.f32.gmra.mxu1 %v1947_v17  ;;  %v1950_v1 = vld [vmem:[%s2082_s29 + $0x100] sm:$0xff] }
 0x1c0   : > { %v1097_v20 = vpop.f32.mrf.mxu2  ;;  %v1174_v34 = vpop.f32.mrf.mxu3 }
 0x1c1   : > { %1575 = vst [vmem:[#allocation2 + $0x70] sm:$0xff] %v1535_v42  ;;  %v2761_v15 = vadd.f32 %v1174_v34, %v1097_v20  ;;  %v946_v48 = vpop.f32.mrf.mxu0  ;;  %v262_v20 = vld [vmem:[#allocation2 + $0xa8] sm:$0xff] }
 0x1c2   : > { %v947_v45 = vadd.f32 %v946_v48, %v2516_v44  ;;  %v1952_v48 = vld [vmem:[%s2082_s29 + $0x130] sm:$0xff] }
 0x1c4   : > { %v1023_v58 = vpop.f32.mrf.mxu1  ;;  %1241 = vmatmul.f32.gmra.mxu0 %v1948_v23 }
 0x1c5   : > { %v1024_v7 = vadd.f32 %v1023_v58, %v947_v45  ;;  %1395 = vmatmul.f32.gmra.mxu2 %v2498_v43  ;;  %1472 = vmatmul.f32.gmra.mxu3 %v2507_v40 }
 0x1c7   : > { %v1537_v32 = vadd.f32 %v1024_v7, %v258_v4  ;;  %1318 = vmatmul.f32.gmra.mxu1 %v1949_v0  ;;  %v1953_v4 = vld [vmem:[%s2082_s29 + $0x138] sm:$0xff]  ;;  %v264_v0 = vld [vmem:[#allocation2 + $0xe0] sm:$0xff] }
 0x1c8   : > { %v1100_v3 = vpop.f32.mrf.mxu2  ;;  %v1177_v22 = vpop.f32.mrf.mxu3 }
 0x1c9   : > { %1577 = vst [vmem:[#allocation2 + $0x128] sm:$0xff] %v1537_v32  ;;  %v2768_v5 = vadd.f32 %v1177_v22, %v1100_v3  ;;  %v949_v44 = vpop.f32.mrf.mxu0  ;;  %v1954_v22 = vld [vmem:[%s2082_s29 + $0x160] sm:$0xff] }
 0x1ca   : > { %v950_v11 = vadd.f32 %v949_v44, %v2532_v53  ;;  %v3011_v44 = vld [vmem:[#allocation4_spill] sm:$0xff] }
 0x1cc   : > { %v1026_v60 = vpop.f32.mrf.mxu1  ;;  %1244 = vmatmul.f32.gmra.mxu0 %v1950_v1 }
 0x1cd   : > { %v1027_v43 = vadd.f32 %v1026_v60, %v950_v11  ;;  %1398 = vmatmul.f32.gmra.mxu2 %v2514_v28  ;;  %1475 = vmatmul.f32.gmra.mxu3 %v2521_v21  ;;  %v3010_v21 = vld [vmem:[#allocation3_spill] sm:$0xff]  ;;  %v3012_v11 = vld [vmem:[#allocation5_spill] sm:$0xff]  ;;  %v1955_v60 = vld [vmem:[%s2082_s29 + $0x168] sm:$0xff] }
 0x1cf   : > { %v1539_v40 = vadd.f32 %v1027_v43, %v260_v8  ;;  %1321 = vmatmul.f32.gmra.mxu1 %v1951_v24 }
 0x1d0   : > { %v1103_v36 = vpop.f32.mrf.mxu2  ;;  %v1180_v38 = vpop.f32.mrf.mxu3 }
 0x1d1   : > { %1579 = vst [vmem:[#allocation2 + $0x8] sm:$0xff] %v1539_v40  ;;  %v2775_v42 = vadd.f32 %v1180_v38, %v1103_v36  ;;  %v952_v53 = vpop.f32.mrf.mxu0  ;;  %v266_v36 = vld [vmem:[#allocation2 + $0xc0] sm:$0xff] }
 0x1d2   : > { %v953_v17 = vadd.f32 %v952_v53, %v2547_v57  ;;  %v1956_v53 = vld [vmem:[%s2082_s29 + $0x190] sm:$0xff] }
 0x1d4   : > { %v1029_v34 = vpop.f32.mrf.mxu1  ;;  %1247 = vmatmul.f32.gmra.mxu0 %v1952_v48  ;;  %v1957_v48 = vld [vmem:[%s2082_s29 + $0x198] sm:$0xff] }
 0x1d5   : > { %v1030_v28 = vadd.f32 %v1029_v34, %v953_v17  ;;  %1401 = vmatmul.f32.gmra.mxu2 %v2530_v50  ;;  %1478 = vmatmul.f32.gmra.mxu3 %v3010_v21 }
 0x1d7   : > { %v1541_v45 = vadd.f32 %v1030_v28, %v262_v20  ;;  %1324 = vmatmul.f32.gmra.mxu1 %v1953_v4  ;;  %v3013_v20 = vld [vmem:[#allocation6_spill] sm:$0xff] }
 0x1d8   : > { %v1106_v58 = vpop.f32.mrf.mxu2  ;;  %v1183_v23 = vpop.f32.mrf.mxu3 }
 0x1d9   : > { %1581 = vst [vmem:[#allocation2 + $0xa8] sm:$0xff] %v1541_v45  ;;  %v2782_v7 = vadd.f32 %v1183_v23, %v1106_v58  ;;  %v955_v57 = vpop.f32.mrf.mxu0  ;;  %v268_v58 = vld [vmem:[#allocation2 + $0xd8] sm:$0xff] }
 0x1da   : > { %v956_v32 = vadd.f32 %v955_v57, %v2561_v37  ;;  %v1958_v57 = vld [vmem:[%s2082_s29 + $0x1c0] sm:$0xff] }
 0x1dc   : > { %v1032_v3 = vpop.f32.mrf.mxu1  ;;  %1250 = vmatmul.f32.gmra.mxu0 %v1954_v22 }
 0x1dd   : > { %v1033_v50 = vadd.f32 %v1032_v3, %v956_v32  ;;  %1404 = vmatmul.f32.gmra.mxu2 %v3011_v44  ;;  %1481 = vmatmul.f32.gmra.mxu3 %v3012_v11  ;;  %v270_v11 = vld [vmem:[#allocation2 + $0x68] sm:$0xff] }
 0x1df   : > { %v1543_v8 = vadd.f32 %v1033_v50, %v264_v0  ;;  %1327 = vmatmul.f32.gmra.mxu1 %v1955_v60  ;;  %v1959_v0 = vld [vmem:[%s2082_s29 + $0x1c8] sm:$0xff]  ;;  %v1960_v60 = vld [vmem:[%s2082_s29 + $0x1f0] sm:$0xff] }
 0x1e0   : > { %v1109_v1 = vpop.f32.mrf.mxu2  ;;  %v1186_v43 = vpop.f32.mrf.mxu3 }
 0x1e1   : > { %1583 = vst [vmem:[#allocation2 + $0xe0] sm:$0xff] %v1543_v8  ;;  %v2789_v40 = vadd.f32 %v1186_v43, %v1109_v1  ;;  %v958_v37 = vpop.f32.mrf.mxu0  ;;  %v1961_v1 = vld [vmem:[%s2082_s29 + $0x1f8] sm:$0xff] }
 0x1e2   : > { %v959_v24 = vadd.f32 %v958_v37, %v2576_v41 }
 0x1e4   : > { %v1035_v38 = vpop.f32.mrf.mxu1  ;;  %1253 = vmatmul.f32.gmra.mxu0 %v1956_v53 }
 0x1e5   : > { %v1036_v17 = vadd.f32 %v1035_v38, %v959_v24  ;;  %1407 = vmatmul.f32.gmra.mxu2 %v3013_v20  ;;  %1484 = vmatmul.f32.gmra.mxu3 %v2568_v6  ;;  %v272_v38 = vld [vmem:[#allocation2 + $0x50] sm:$0xff] }
 0x1e7   : > { %v1545_v34 = vadd.f32 %v1036_v17, %v266_v36  ;;  %1330 = vmatmul.f32.gmra.mxu1 %v1957_v48  ;;  %v1962_v17 = vld [vmem:[%s2082_s29 + $0x220] sm:$0xff] }
 0x1e8   : > { %v1112_v28 = vpop.f32.mrf.mxu2  ;;  %v1189_v21 = vpop.f32.mrf.mxu3 }
 0x1e9   : > { %1585 = vst [vmem:[#allocation2 + $0xc0] sm:$0xff] %v1545_v34  ;;  %v2796_v45 = vadd.f32 %v1189_v21, %v1112_v28  ;;  %v961_v41 = vpop.f32.mrf.mxu0  ;;  %v1963_v34 = vld [vmem:[%s2082_s29 + $0x228] sm:$0xff] }
 0x1ea   : > { %v962_v4 = vadd.f32 %v961_v41, %v2592_v19 }
 0x1ec   : > { %v1038_v23 = vpop.f32.mrf.mxu1  ;;  %1256 = vmatmul.f32.gmra.mxu0 %v1958_v57  ;;  %v3015_v57 = vld [vmem:[#allocation8_spill] sm:$0xff] }
 0x1ed   : > { %v1039_v32 = vadd.f32 %v1038_v23, %v962_v4  ;;  %1410 = vmatmul.f32.gmra.mxu2 %v2574_v31  ;;  %1487 = vmatmul.f32.gmra.mxu3 %v2583_v14  ;;  %v274_v4 = vld [vmem:[#allocation2 + $0x58] sm:$0xff]  ;;  %v1964_v23 = vld [vmem:[%s2082_s29 + $0x250] sm:$0xff] }
 0x1ef   : > { %v1547_v6 = vadd.f32 %v1039_v32, %v268_v58  ;;  %1333 = vmatmul.f32.gmra.mxu1 %v1959_v0 }
 0x1f0   : > { %v1115_v3 = vpop.f32.mrf.mxu2  ;;  %v1192_v22 = vpop.f32.mrf.mxu3 }
 0x1f1   : > { %1587 = vst [vmem:[#allocation2 + $0xd8] sm:$0xff] %v1547_v6  ;;  %v2803_v50 = vadd.f32 %v1192_v22, %v1115_v3  ;;  %v964_v19 = vpop.f32.mrf.mxu0  ;;  %v1965_v6 = vld [vmem:[%s2082_s29 + $0x258] sm:$0xff] }
 0x1f2   : > { %v965_v44 = vadd.f32 %v964_v19, %v2608_v30 }
 0x1f4   : > { %v1041_v8 = vpop.f32.mrf.mxu1  ;;  %1259 = vmatmul.f32.gmra.mxu0 %v1960_v60 }
 0x1f5   : > { %v1042_v31 = vadd.f32 %v1041_v8, %v965_v44  ;;  %1413 = vmatmul.f32.gmra.mxu2 %v2590_v29  ;;  %1490 = vmatmul.f32.gmra.mxu3 %v2597_v56  ;;  %v3014_v56 = vld [vmem:[#allocation7_spill] sm:$0xff]  ;;  %v276_v44 = vld [vmem:[#allocation2 + $0x30] sm:$0xff] }
 0x1f6   : > { %v1966_v8 = vld [vmem:[%s2082_s29 + $0x280] sm:$0xff] }
 0x1f7   : > { %v1549_v14 = vadd.f32 %v1042_v31, %v270_v11  ;;  %1336 = vmatmul.f32.gmra.mxu1 %v1961_v1  ;;  %v3016_v31 = vld [vmem:[#allocation9_spill] sm:$0xff] }
 0x1f8   : > { %v1118_v43 = vpop.f32.mrf.mxu2  ;;  %v1195_v37 = vpop.f32.mrf.mxu3 }
 0x1f9   : > { %1589 = vst [vmem:[#allocation2 + $0x68] sm:$0xff] %v1549_v14  ;;  %v2810_v24 = vadd.f32 %v1195_v37, %v1118_v43  ;;  %v967_v30 = vpop.f32.mrf.mxu0  ;;  %v1967_v14 = vld [vmem:[%s2082_s29 + $0x288] sm:$0xff] }
 0x1fa   : > { %v968_v36 = vadd.f32 %v967_v30, %v2623_v35 }
 0x1fc   : > { %v1044_v53 = vpop.f32.mrf.mxu1  ;;  %1262 = vmatmul.f32.gmra.mxu0 %v1962_v17 }
 0x1fd   : > { %v1045_v29 = vadd.f32 %v1044_v53, %v968_v36  ;;  %1416 = vmatmul.f32.gmra.mxu2 %v2606_v26  ;;  %1493 = vmatmul.f32.gmra.mxu3 %v3014_v56  ;;  %v278_v36 = vld [vmem:[#allocation2 + $0x28] sm:$0xff]  ;;  %v1968_v53 = vld [vmem:[%s2082_s29 + $0x2b0] sm:$0xff]  ;;  %v1969_v56 = vld [vmem:[%s2082_s29 + $0x2b8] sm:$0xff] }
 0x1ff   : > { %v1551_v20 = vadd.f32 %v1045_v29, %v272_v38  ;;  %1339 = vmatmul.f32.gmra.mxu1 %v1963_v34 }
 0x200   : > { %v1121_v48 = vpop.f32.mrf.mxu2  ;;  %v1198_v28 = vpop.f32.mrf.mxu3 }
 0x201   : > { %1591 = vst [vmem:[#allocation2 + $0x50] sm:$0xff] %v1551_v20  ;;  %v2817_v21 = vadd.f32 %v1198_v28, %v1121_v48  ;;  %v970_v35 = vpop.f32.mrf.mxu0 }
 0x202   : > { %v971_v41 = vadd.f32 %v970_v35, %v2640_v46  ;;  %v280_v35 = vld [vmem:[#allocation2 + $0xb8] sm:$0xff] }
 0x204   : > { %v1047_v58 = vpop.f32.mrf.mxu1  ;;  %1265 = vmatmul.f32.gmra.mxu0 %v1964_v23 }
 0x205   : > { %v1048_v26 = vadd.f32 %v1047_v58, %v971_v41  ;;  %1419 = vmatmul.f32.gmra.mxu2 %v3015_v57  ;;  %1496 = vmatmul.f32.gmra.mxu3 %v2628_v59  ;;  %v3018_v58 = vld [vmem:[#allocation11_spill] sm:$0xff] }
 0x207   : > { %v1553_v32 = vadd.f32 %v1048_v26, %v274_v4  ;;  %1342 = vmatmul.f32.gmra.mxu1 %v1965_v6  ;;  %v1970_v4 = vld [vmem:[%s2082_s29 + $0x2e0] sm:$0xff]  ;;  %v1971_v26 = vld [vmem:[%s2082_s29 + $0x2e8] sm:$0xff] }
 0x208   : > { %v1124_v0 = vpop.f32.mrf.mxu2  ;;  %v1201_v3 = vpop.f32.mrf.mxu3 }
 0x209   : > { %1593 = vst [vmem:[#allocation2 + $0x58] sm:$0xff] %v1553_v32  ;;  %v2824_v22 = vadd.f32 %v1201_v3, %v1124_v0  ;;  %v973_v46 = vpop.f32.mrf.mxu0 }
 0x20a   : > { %v974_v19 = vadd.f32 %v973_v46, %v2655_v47  ;;  %v1972_v46 = vld [vmem:[%s2082_s29 + $0x310] sm:$0xff] }
 0x20c   : > { %v1050_v11 = vpop.f32.mrf.mxu1  ;;  %1268 = vmatmul.f32.gmra.mxu0 %v1966_v8 }
 0x20d   : > { %v1051_v60 = vadd.f32 %v1050_v11, %v974_v19  ;;  %1422 = vmatmul.f32.gmra.mxu2 %v3016_v31  ;;  %1499 = vmatmul.f32.gmra.mxu3 %v2644_v61  ;;  %v3017_v61 = vld [vmem:[#allocation10_spill] sm:$0xff]  ;;  %v243_v31 = vld [vmem:[#allocation2 + $0xd0] sm:$0xff] }
 0x20e   : > { %v1973_v19 = vld [vmem:[%s2082_s29 + $0x318] sm:$0xff] }
 0x20f   : > { %v1555_v59 = vadd.f32 %v1051_v60, %v276_v44  ;;  %1345 = vmatmul.f32.gmra.mxu1 %v1967_v14 }
 0x210   : > { %v1127_v1 = vpop.f32.mrf.mxu2  ;;  %v1204_v43 = vpop.f32.mrf.mxu3 }
 0x211   : > { %1595 = vst [vmem:[#allocation2 + $0x30] sm:$0xff] %v1555_v59  ;;  %v2831_v37 = vadd.f32 %v1204_v43, %v1127_v1  ;;  %v976_v47 = vpop.f32.mrf.mxu0  ;;  %v1974_v1 = vld [vmem:[%s2082_s29 + $0x340] sm:$0xff] }
 0x212   : > { %v977_v30 = vadd.f32 %v976_v47, %v2669_v39 }
 0x214   : > { %v1053_v38 = vpop.f32.mrf.mxu1  ;;  %1271 = vmatmul.f32.gmra.mxu0 %v1968_v53 }
 0x215   : > { %v1054_v17 = vadd.f32 %v1053_v38, %v977_v30  ;;  %1425 = vmatmul.f32.gmra.mxu2 %v2650_v13  ;;  %1502 = vmatmul.f32.gmra.mxu3 %v3017_v61 }
 0x217   : > { %v1557_v29 = vadd.f32 %v1054_v17, %v278_v36  ;;  %1348 = vmatmul.f32.gmra.mxu1 %v1969_v56  ;;  %v3019_v56 = vld [vmem:[#allocation12_spill] sm:$0xff] }
 0x218   : > { %v1130_v20 = vpop.f32.mrf.mxu2  ;;  %v1207_v34 = vpop.f32.mrf.mxu3 }
 0x219   : > { %1597 = vst [vmem:[#allocation2 + $0x28] sm:$0xff] %v1557_v29  ;;  %v2838_v48 = vadd.f32 %v1207_v34, %v1130_v20  ;;  %v979_v39 = vpop.f32.mrf.mxu0  ;;  %v1976_v29 = vld [vmem:[%s2082_s29 + $0x370] sm:$0xff]  ;;  %v1977_v20 = vld [vmem:[%s2082_s29 + $0x378] sm:$0xff] }
 0x21a   : > { %v980_v28 = vadd.f32 %v979_v39, %v2685_v12 }
 0x21c   : > { %v1056_v41 = vpop.f32.mrf.mxu1  ;;  %1274 = vmatmul.f32.gmra.mxu0 %v1970_v4 }
 0x21d   : > { %v1057_v13 = vadd.f32 %v1056_v41, %v980_v28  ;;  %1428 = vmatmul.f32.gmra.mxu2 %v3018_v58  ;;  %1505 = vmatmul.f32.gmra.mxu3 %v2673_v9  ;;  %v1978_v58 = vld [vmem:[%s2082_s29 + $0x3a0] sm:$0xff] }
 0x21f   : > { %v1559_v23 = vadd.f32 %v1057_v13, %v280_v35  ;;  %1351 = vmatmul.f32.gmra.mxu1 %v1971_v26  ;;  %v1979_v26 = vld [vmem:[%s2082_s29 + $0x3a8] sm:$0xff] }
 0x220   : > { %v1133_v57 = vpop.f32.mrf.mxu2  ;;  %v1210_v32 = vpop.f32.mrf.mxu3 }
 0x221   : > { %1599 = vst [vmem:[#allocation2 + $0xb8] sm:$0xff] %v1559_v23  ;;  %v2845_v6 = vadd.f32 %v1210_v32, %v1133_v57  ;;  %v1230_v12 = vpop.f32.mrf.mxu0 }
 0x222   : > { %v1231_v0 = vadd.f32 %v1230_v12, %v2694_v2 }
 0x224   : > { %v1307_v3 = vpop.f32.mrf.mxu1  ;;  %1277 = vmatmul.f32.gmra.mxu0 %v1972_v46 }
 0x225   : > { %1431 = vmatmul.f32.gmra.mxu2 %v2679_v51  ;;  %1508 = vmatmul.f32.gmra.mxu3 %v2689_v63  ;;  %v1308_v9 = vadd.f32 %v1307_v3, %v1231_v0  ;;  %v1975_v63 = vld [vmem:[%s2082_s29 + $0x348] sm:$0xff]  ;;  %v249_v3 = vld [vmem:[#allocation2 + $0x100] sm:$0xff] }
 0x227   : > { %1354 = vmatmul.f32.gmra.mxu1 %v1973_v19 }
 0x228   : > { %v1384_v44 = vpop.f32.mrf.mxu2  ;;  %v1461_v11 = vpop.f32.mrf.mxu3 }
 0x229   : > { %v1385_v8 = vadd.f32 %v1384_v44, %v1308_v9  ;;  %v1233_v60 = vpop.f32.mrf.mxu0 }
 0x22a   : > { %v1234_v59 = vadd.f32 %v1233_v60, %v2707_v54  ;;  %v245_v54 = vld [vmem:[#allocation2 + $0x48] sm:$0xff] }
 0x22b   : > { %v1462_v2 = vadd.f32 %v1461_v11, %v1385_v8  ;;  %v251_v60 = vld [vmem:[#allocation2 + $0x108] sm:$0xff] }
 0x22c   : > { %v1310_v14 = vpop.f32.mrf.mxu1  ;;  %1280 = vmatmul.f32.gmra.mxu0 %v1974_v1 }
 0x22d   : > { %v1522_v43 = vadd.f32 %v1462_v2, %v243_v31  ;;  %1434 = vmatmul.f32.gmra.mxu2 %v2697_v49  ;;  %1511 = vmatmul.f32.gmra.mxu3 %v2702_v27  ;;  %v1311_v51 = vadd.f32 %v1310_v14, %v1234_v59 }
 0x22f   : > { %1562 = vst [vmem:[#allocation2 + $0xd0] sm:$0xff] %v1522_v43  ;;  %1357 = vmatmul.f32.gmra.mxu1 %v1975_v63 }
 0x230   : > { %v1387_v47 = vpop.f32.mrf.mxu2  ;;  %v1464_v30 = vpop.f32.mrf.mxu3 }
 0x231   : > { %v1388_v36 = vadd.f32 %v1387_v47, %v1311_v51  ;;  %v1236_v38 = vpop.f32.mrf.mxu0  ;;  %v253_v47 = vld [vmem:[#allocation2 + $0xf0] sm:$0xff] }
 0x232   : > { %v1237_v53 = vadd.f32 %v1236_v38, %v2720_v18  ;;  %v247_v18 = vld [vmem:[#allocation2 + $0x38] sm:$0xff] }
 0x233   : > { %v1465_v17 = vadd.f32 %v1464_v30, %v1388_v36 }
 0x234   : > { %v1313_v61 = vpop.f32.mrf.mxu1  ;;  %1283 = vmatmul.f32.gmra.mxu0 %v1976_v29 }
 0x235   : > { %v1524_v49 = vadd.f32 %v1465_v17, %v245_v54  ;;  %1437 = vmatmul.f32.gmra.mxu2 %v3019_v56  ;;  %1514 = vmatmul.f32.gmra.mxu3 %v2715_v52  ;;  %v1314_v27 = vadd.f32 %v1313_v61, %v1237_v53 }
 0x237   : > { %1564 = vst [vmem:[#allocation2 + $0x48] sm:$0xff] %v1524_v49  ;;  %1360 = vmatmul.f32.gmra.mxu1 %v1977_v20  ;;  %v255_v49 = vld [vmem:[#allocation2 + $0xc8] sm:$0xff] }
 0x238   : > { %v1390_v34 = vpop.f32.mrf.mxu2  ;;  %v1467_v39 = vpop.f32.mrf.mxu3 }
 0x239   : > { %v1391_v28 = vadd.f32 %v1390_v34, %v1314_v27  ;;  %v1239_v35 = vpop.f32.mrf.mxu0 }
 0x23a   : > { %v1240_v41 = vadd.f32 %v1239_v35, %v2733_v25 }
 0x23b   : > { %v1468_v4 = vadd.f32 %v1467_v39, %v1391_v28 }
 0x23c   : > { %v1316_v13 = vpop.f32.mrf.mxu1  ;;  %1286 = vmatmul.f32.gmra.mxu0 %v1978_v58 }
 0x23d   : > { %v1526_v23 = vadd.f32 %v1468_v4, %v247_v18  ;;  %1440 = vmatmul.f32.gmra.mxu2 %v2723_v10  ;;  %1517 = vmatmul.f32.gmra.mxu3 %v2728_v16  ;;  %v1317_v52 = vadd.f32 %v1316_v13, %v1240_v41  ;;  %v257_v41 = vld [vmem:[#allocation2 + $0x20] sm:$0xff] }
 0x23f   : > { %1566 = vst [vmem:[#allocation2 + $0x38] sm:$0xff] %v1526_v23  ;;  %1363 = vmatmul.f32.gmra.mxu1 %v1979_v26 }
 0x240   : > { %v1393_v57 = vpop.f32.mrf.mxu2  ;;  %v1470_v32 = vpop.f32.mrf.mxu3 }
 0x241   : > { %v1394_v12 = vadd.f32 %v1393_v57, %v1317_v52  ;;  %v1242_v0 = vpop.f32.mrf.mxu0 }
 0x242   : > { %v1243_v25 = vadd.f32 %v1242_v0, %v2740_v33 }
 0x243   : > { %v1471_v46 = vadd.f32 %v1470_v32, %v1394_v12  ;;  %v259_v12 = vld [vmem:[#allocation2 + $0x110] sm:$0xff] }
 0x244   : > { %v1319_v9 = vpop.f32.mrf.mxu1 }
 0x245   : > { %v1528_v19 = vadd.f32 %v1471_v46, %v249_v3  ;;  %v1320_v44 = vadd.f32 %v1319_v9, %v1243_v25 }
 0x247   : > { %1568 = vst [vmem:[#allocation2 + $0x100] sm:$0xff] %v1528_v19 }
 0x248   : > { %v1396_v11 = vpop.f32.mrf.mxu2  ;;  %v1473_v10 = vpop.f32.mrf.mxu3 }
 0x249   : > { %v1397_v8 = vadd.f32 %v1396_v11, %v1320_v44  ;;  %v1245_v16 = vpop.f32.mrf.mxu0 }
 0x24a   : > { %v1246_v31 = vadd.f32 %v1245_v16, %v2747_v55 }
 0x24b   : > { %v1474_v59 = vadd.f32 %v1473_v10, %v1397_v8  ;;  %v261_v10 = vld [vmem:[#allocation2 + $0x98] sm:$0xff] }
 0x24c   : > { %v1322_v2 = vpop.f32.mrf.mxu1 }
 0x24d   : > { %v1530_v14 = vadd.f32 %v1474_v59, %v251_v60  ;;  %v1323_v1 = vadd.f32 %v1322_v2, %v1246_v31 }
 0x24f   : > { %1570 = vst [vmem:[#allocation2 + $0x108] sm:$0xff] %v1530_v14 }
 0x250   : > { %v1399_v43 = vpop.f32.mrf.mxu2  ;;  %v1476_v51 = vpop.f32.mrf.mxu3 }
 0x251   : > { %v1400_v33 = vadd.f32 %v1399_v43, %v1323_v1  ;;  %v1248_v63 = vpop.f32.mrf.mxu0  ;;  %v263_v43 = vld [vmem:[#allocation2 + $0x90] sm:$0xff] }
 0x252   : > { %v1249_v30 = vadd.f32 %v1248_v63, %v2754_v62 }
 0x253   : > { %v1477_v36 = vadd.f32 %v1476_v51, %v1400_v33 }
 0x254   : > { %v1325_v38 = vpop.f32.mrf.mxu1 }
 0x255   : > { %v1532_v54 = vadd.f32 %v1477_v36, %v253_v47  ;;  %v1326_v53 = vadd.f32 %v1325_v38, %v1249_v30 }
 0x257   : > { %1572 = vst [vmem:[#allocation2 + $0xf0] sm:$0xff] %v1532_v54 }
 0x258   : > { %v1402_v17 = vpop.f32.mrf.mxu2  ;;  %v1479_v61 = vpop.f32.mrf.mxu3 }
 0x259   : > { %v1403_v55 = vadd.f32 %v1402_v17, %v1326_v53  ;;  %v1251_v29 = vpop.f32.mrf.mxu0  ;;  %v265_v53 = vld [vmem:[#allocation2 + $0x88] sm:$0xff] }
 0x25a   : > { %v1252_v56 = vadd.f32 %v1251_v29, %v2761_v15 }
 0x25b   : > { %v1480_v27 = vadd.f32 %v1479_v61, %v1403_v55 }
 0x25c   : > { %v1328_v20 = vpop.f32.mrf.mxu1 }
 0x25d   : > { %v1534_v34 = vadd.f32 %v1480_v27, %v255_v49  ;;  %v1329_v39 = vadd.f32 %v1328_v20, %v1252_v56 }
 0x25f   : > { %1574 = vst [vmem:[#allocation2 + $0xc8] sm:$0xff] %v1534_v34  ;;  %v267_v34 = vld [vmem:[#allocation2 + $0x118] sm:$0xff] }
 0x260   : > { %v1405_v28 = vpop.f32.mrf.mxu2  ;;  %v1482_v35 = vpop.f32.mrf.mxu3 }
 0x261   : > { %v1406_v62 = vadd.f32 %v1405_v28, %v1329_v39  ;;  %v1254_v18 = vpop.f32.mrf.mxu0 }
 0x262   : > { %v1255_v4 = vadd.f32 %v1254_v18, %v2768_v5 }
 0x263   : > { %v1483_v13 = vadd.f32 %v1482_v35, %v1406_v62 }
 0x264   : > { %v1331_v58 = vpop.f32.mrf.mxu1 }
 0x265   : > { %v1536_v23 = vadd.f32 %v1483_v13, %v257_v41  ;;  %v1332_v52 = vadd.f32 %v1331_v58, %v1255_v4  ;;  %v269_v58 = vld [vmem:[#allocation2 + $0xa0] sm:$0xff] }
 0x267   : > { %1576 = vst [vmem:[#allocation2 + $0x20] sm:$0xff] %v1536_v23 }
 0x268   : > { %v1408_v26 = vpop.f32.mrf.mxu2  ;;  %v1485_v57 = vpop.f32.mrf.mxu3 }
 0x269   : > { %v1409_v15 = vadd.f32 %v1408_v26, %v1332_v52  ;;  %v1257_v32 = vpop.f32.mrf.mxu0 }
 0x26a   : > { %v1258_v0 = vadd.f32 %v1257_v32, %v2775_v42 }
 0x26b   : > { %v1486_v3 = vadd.f32 %v1485_v57, %v1409_v15 }
 0x26c   : > { %v1334_v25 = vpop.f32.mrf.mxu1 }
 0x26d   : > { %v1538_v46 = vadd.f32 %v1486_v3, %v259_v12  ;;  %v1335_v9 = vadd.f32 %v1334_v25, %v1258_v0  ;;  %v271_v3 = vld [vmem:[#allocation2 + $0x130] sm:$0xff] }
 0x26f   : > { %1578 = vst [vmem:[#allocation2 + $0x110] sm:$0xff] %v1538_v46 }
 0x270   : > { %v1411_v19 = vpop.f32.mrf.mxu2  ;;  %v1488_v44 = vpop.f32.mrf.mxu3 }
 0x271   : > { %v1412_v5 = vadd.f32 %v1411_v19, %v1335_v9  ;;  %v1260_v11 = vpop.f32.mrf.mxu0 }
 0x272   : > { %v1261_v8 = vadd.f32 %v1260_v11, %v2782_v7 }
 0x273   : > { %v1489_v16 = vadd.f32 %v1488_v44, %v1412_v5 }
 0x274   : > { %v1337_v60 = vpop.f32.mrf.mxu1 }
 0x275   : > { %v1540_v31 = vadd.f32 %v1489_v16, %v261_v10  ;;  %v1338_v59 = vadd.f32 %v1337_v60, %v1261_v8  ;;  %v273_v8 = vld [vmem:[#allocation2 + $0xe8] sm:$0xff] }
 0x277   : > { %1580 = vst [vmem:[#allocation2 + $0x98] sm:$0xff] %v1540_v31 }
 0x278   : > { %v1414_v2 = vpop.f32.mrf.mxu2  ;;  %v1491_v14 = vpop.f32.mrf.mxu3 }
 0x279   : > { %v1415_v42 = vadd.f32 %v1414_v2, %v1338_v59  ;;  %v1263_v1 = vpop.f32.mrf.mxu0 }
 0x27a   : > { %v1264_v51 = vadd.f32 %v1263_v1, %v2789_v40 }
 0x27b   : > { %v1492_v33 = vadd.f32 %v1491_v14, %v1415_v42 }
 0x27c   : > { %v1340_v63 = vpop.f32.mrf.mxu1 }
 0x27d   : > { %v1542_v47 = vadd.f32 %v1492_v33, %v263_v43  ;;  %v1341_v30 = vadd.f32 %v1340_v63, %v1264_v51  ;;  %v275_v43 = vld [vmem:[#allocation2 + $0x78] sm:$0xff] }
 0x27f   : > { %1582 = vst [vmem:[#allocation2 + $0x90] sm:$0xff] %v1542_v47 }
 0x280   : > { %v1417_v36 = vpop.f32.mrf.mxu2  ;;  %v1494_v38 = vpop.f32.mrf.mxu3 }
 0x281   : > { %v1418_v7 = vadd.f32 %v1417_v36, %v1341_v30  ;;  %v1266_v54 = vpop.f32.mrf.mxu0 }
 0x282   : > { %v1267_v17 = vadd.f32 %v1266_v54, %v2796_v45  ;;  %v277_v54 = vld [vmem:[#allocation2 + $0x40] sm:$0xff] }
 0x283   : > { %v1495_v61 = vadd.f32 %v1494_v38, %v1418_v7 }
 0x284   : > { %v1343_v55 = vpop.f32.mrf.mxu1 }
 0x285   : > { %v1544_v29 = vadd.f32 %v1495_v61, %v265_v53  ;;  %v1344_v49 = vadd.f32 %v1343_v55, %v1267_v17 }
 0x287   : > { %1584 = vst [vmem:[#allocation2 + $0x88] sm:$0xff] %v1544_v29 }
 0x288   : > { %v1420_v56 = vpop.f32.mrf.mxu2  ;;  %v1497_v27 = vpop.f32.mrf.mxu3 }
 0x289   : > { %v1421_v40 = vadd.f32 %v1420_v56, %v1344_v49  ;;  %v1269_v20 = vpop.f32.mrf.mxu0 }
 0x28a   : > { %v1270_v39 = vadd.f32 %v1269_v20, %v2803_v50 }
 0x28b   : > { %v1498_v28 = vadd.f32 %v1497_v27, %v1421_v40  ;;  %v279_v40 = vld [vmem:[#allocation2] sm:$0xff] }
 0x28c   : > { %v1346_v35 = vpop.f32.mrf.mxu1 }
 0x28d   : > { %v1546_v62 = vadd.f32 %v1498_v28, %v267_v34  ;;  %v1347_v18 = vadd.f32 %v1346_v35, %v1270_v39 }
 0x28f   : > { %1586 = vst [vmem:[#allocation2 + $0x118] sm:$0xff] %v1546_v62 }
 0x290   : > { %v1423_v41 = vpop.f32.mrf.mxu2  ;;  %v1500_v4 = vpop.f32.mrf.mxu3 }
 0x291   : > { %v1424_v45 = vadd.f32 %v1423_v41, %v1347_v18  ;;  %v1272_v13 = vpop.f32.mrf.mxu0  ;;  %v281_v41 = vld [vmem:[#allocation2 + $0x60] sm:$0xff] }
 0x292   : > { %v1273_v23 = vadd.f32 %v1272_v13, %v2810_v24 }
 0x293   : > { %v1501_v52 = vadd.f32 %v1500_v4, %v1424_v45 }
 0x294   : > { %v1349_v26 = vpop.f32.mrf.mxu1 }
 0x295   : > { %v1548_v57 = vadd.f32 %v1501_v52, %v269_v58  ;;  %v1350_v15 = vadd.f32 %v1349_v26, %v1273_v23 }
 0x297   : > { %1588 = vst [vmem:[#allocation2 + $0xa0] sm:$0xff] %v1548_v57 }
 0x298   : > { %v1426_v32 = vpop.f32.mrf.mxu2  ;;  %v1503_v12 = vpop.f32.mrf.mxu3 }
 0x299   : > { %v1427_v50 = vadd.f32 %v1426_v32, %v1350_v15  ;;  %v1275_v0 = vpop.f32.mrf.mxu0 }
 0x29a   : > { %v1276_v25 = vadd.f32 %v1275_v0, %v2817_v21 }
 0x29b   : > { %v1504_v46 = vadd.f32 %v1503_v12, %v1427_v50 }
 0x29c   : > { %v1352_v9 = vpop.f32.mrf.mxu1 }
 0x29d   : > { %v1550_v19 = vadd.f32 %v1504_v46, %v271_v3  ;;  %v1353_v44 = vadd.f32 %v1352_v9, %v1276_v25 }
 0x29f   : > { %1590 = vst [vmem:[#allocation2 + $0x130] sm:$0xff] %v1550_v19 }
 0x2a0   : > { %v1429_v5 = vpop.f32.mrf.mxu2  ;;  %v1506_v11 = vpop.f32.mrf.mxu3 }
 0x2a1   : > { %v1430_v24 = vadd.f32 %v1429_v5, %v1353_v44  ;;  %v1278_v10 = vpop.f32.mrf.mxu0 }
 0x2a2   : > { %v1279_v16 = vadd.f32 %v1278_v10, %v2824_v22 }
 0x2a3   : > { %v1507_v60 = vadd.f32 %v1506_v11, %v1430_v24 }
 0x2a4   : > { %v1355_v31 = vpop.f32.mrf.mxu1 }
 0x2a5   : > { %v1552_v59 = vadd.f32 %v1507_v60, %v273_v8  ;;  %v1356_v2 = vadd.f32 %v1355_v31, %v1279_v16 }
 0x2a7   : > { %1592 = vst [vmem:[#allocation2 + $0xe8] sm:$0xff] %v1552_v59 }
 0x2a8   : > { %v1432_v14 = vpop.f32.mrf.mxu2  ;;  %v1509_v42 = vpop.f32.mrf.mxu3 }
 0x2a9   : > { %v1433_v21 = vadd.f32 %v1432_v14, %v1356_v2  ;;  %v1281_v1 = vpop.f32.mrf.mxu0 }
 0x2aa   : > { %v1282_v51 = vadd.f32 %v1281_v1, %v2831_v37 }
 0x2ab   : > { %v1510_v33 = vadd.f32 %v1509_v42, %v1433_v21 }
 0x2ac   : > { %v1358_v63 = vpop.f32.mrf.mxu1 }
 0x2ad   : > { %v1554_v47 = vadd.f32 %v1510_v33, %v275_v43  ;;  %v1359_v30 = vadd.f32 %v1358_v63, %v1282_v51 }
 0x2af   : > { %1594 = vst [vmem:[#allocation2 + $0x78] sm:$0xff] %v1554_v47 }
 0x2b0   : > { %v1435_v36 = vpop.f32.mrf.mxu2  ;;  %v1512_v38 = vpop.f32.mrf.mxu3 }
 0x2b1   : > { %v1436_v22 = vadd.f32 %v1435_v36, %v1359_v30  ;;  %v1284_v7 = vpop.f32.mrf.mxu0 }
 0x2b2   : > { %v1285_v53 = vadd.f32 %v1284_v7, %v2838_v48 }
 0x2b3   : > { %v1513_v17 = vadd.f32 %v1512_v38, %v1436_v22 }
 0x2b4   : > { %v1361_v61 = vpop.f32.mrf.mxu1 }
 0x2b5   : > { %v1556_v55 = vadd.f32 %v1513_v17, %v277_v54  ;;  %v1362_v29 = vadd.f32 %v1361_v61, %v1285_v53 }
 0x2b7   : > { %1596 = vst [vmem:[#allocation2 + $0x40] sm:$0xff] %v1556_v55 }
 0x2b8   : > { %v1438_v49 = vpop.f32.mrf.mxu2  ;;  %v1515_v56 = vpop.f32.mrf.mxu3 }
 0x2b9   : > { %v1439_v37 = vadd.f32 %v1438_v49, %v1362_v29  ;;  %v1287_v27 = vpop.f32.mrf.mxu0 }
 0x2ba   : > { %v1288_v20 = vadd.f32 %v1287_v27, %v2845_v6 }
 0x2bb   : > { %v1516_v34 = vadd.f32 %v1515_v56, %v1439_v37 }
 0x2bc   : > { %v1364_v39 = vpop.f32.mrf.mxu1 }
 0x2bd   : > { %v1558_v28 = vadd.f32 %v1516_v34, %v279_v40  ;;  %v1365_v35 = vadd.f32 %v1364_v39, %v1288_v20 }
 0x2bf   : > { %1598 = vst [vmem:[#allocation2] sm:$0xff] %v1558_v28 }
 0x2c0   : > { %v1441_v62 = vpop.f32.mrf.mxu2  ;;  %v1518_v18 = vpop.f32.mrf.mxu3 }
 0x2c1   : > { %v1442_v48 = vadd.f32 %v1441_v62, %v1365_v35 }
 0x2c3   : > { %v1519_v4 = vadd.f32 %v1518_v18, %v1442_v48  ;;  %1604 = sbr.rel (%p1893_p8) target bundleno = 761 (0x2f9), region = 40 }
 0x2c5   : > { %v1560_v45 = vadd.f32 %v1519_v4, %v281_v41 }
 0x2c7   : > { %1600 = vst [vmem:[#allocation2 + $0x60] sm:$0xff] %v1560_v45 }
 0x2c8   : > { %v1605_v13 = vld [vmem:[#allocation2 + $0xb0] sm:$0xff]  ;;  %v1645_v6 = vld [vmem:[%s2988_s2] sm:$0x3]  ;;  %v1608_v57 = vld [vmem:[#allocation2 + $0x48] sm:$0xff] }
 0x2c9   : > { %v1606_v58 = vld [vmem:[#allocation2 + $0xd0] sm:$0xff]  ;;  %v2887_v23 = vperm.slane %v1645_v6, 0  ;;  %v2889_v52 = vperm.slane %v1645_v6, 1  ;;  %v1609_v15 = vld [vmem:[#allocation2 + $0x120] sm:$0xff]  ;;  %v1610_v32 = vld [vmem:[#allocation2 + $0x38] sm:$0xff] }
 0x2ca   : > { %v1607_v26 = vld [vmem:[#allocation2 + $0x10] sm:$0xff]  ;;  %v1611_v12 = vld [vmem:[#allocation2 + $0xf8] sm:$0xff]  ;;  %v1612_v50 = vld [vmem:[#allocation2 + $0x100] sm:$0xff] }
 0x2cb   : > { %v1651_v0 = vadd.f32 %v2887_v23, %v1605_v13  ;;  %v1652_v3 = vadd.f32 %v2889_v52, %v1606_v58  ;;  %v1653_v25 = vadd.f32 %v2887_v23, %v1607_v26  ;;  %v1654_v46 = vadd.f32 %v2889_v52, %v1608_v57  ;;  %v1613_v16 = vld [vmem:[#allocation2 + $0x80] sm:$0xff]  ;;  %v1614_v60 = vld [vmem:[#allocation2 + $0x108] sm:$0xff]  ;;  %v1615_v2 = vld [vmem:[#allocation2 + $0x138] sm:$0xff] }
 0x2cc   : > { %v1655_v9 = vadd.f32 %v2887_v23, %v1609_v15  ;;  %v1656_v19 = vadd.f32 %v2889_v52, %v1610_v32  ;;  %v1657_v44 = vadd.f32 %v2887_v23, %v1611_v12  ;;  %v1658_v5 = vadd.f32 %v2889_v52, %v1612_v50  ;;  %v1616_v14 = vld [vmem:[#allocation2 + $0xf0] sm:$0xff]  ;;  %v1617_v42 = vld [vmem:[#allocation2 + $0x18] sm:$0xff]  ;;  %v1618_v33 = vld [vmem:[#allocation2 + $0xc8] sm:$0xff] }
 0x2cd   : > { %v1691_v11 = vmax.f32 %v1651_v0, 753.0  ;;  %v1692_v24 = vmax.f32 %v1652_v3, 753.0  ;;  %v1693_v10 = vmax.f32 %v1653_v25, 753.0  ;;  %v1694_v8 = vmax.f32 %v1654_v46, 753.0  ;;  %v1619_v63 = vld [vmem:[#allocation2 + $0x70] sm:$0xff]  ;;  %v1620_v53 = vld [vmem:[#allocation2 + $0x20] sm:$0xff] }
 0x2ce   : > { %v1695_v31 = vmax.f32 %v1655_v9, 753.0  ;;  %v1696_v59 = vmax.f32 %v1656_v19, 753.0  ;;  %v1697_v51 = vmax.f32 %v1657_v44, 753.0  ;;  %v1698_v36 = vmax.f32 %v1658_v5, 753.0  ;;  %v1621_v39 = vld [vmem:[#allocation2 + $0x128] sm:$0xff]  ;;  %v1622_v28 = vld [vmem:[#allocation2 + $0x110] sm:$0xff] }
 0x2cf   : > { %v1731_v21 = vmin.f32 %v1691_v11, -8162.0  ;;  %v1732_v1 = vmin.f32 %v1692_v24, -8162.0  ;;  %v1733_v43 = vmin.f32 %v1693_v10, -8162.0  ;;  %v1734_v47 = vmin.f32 %v1694_v8, -8162.0  ;;  %v1623_v35 = vld [vmem:[#allocation2 + $0x8] sm:$0xff]  ;;  %v1624_v48 = vld [vmem:[#allocation2 + $0x98] sm:$0xff] }
 0x2d0   : > { %v1735_v30 = vmin.f32 %v1695_v31, -8162.0  ;;  %v1659_v38 = vadd.f32 %v2887_v23, %v1613_v16  ;;  %v1660_v22 = vadd.f32 %v2889_v52, %v1614_v60  ;;  %v1661_v7 = vadd.f32 %v2887_v23, %v1615_v2  ;;  %v1625_v13 = vld [vmem:[#allocation2 + $0xa8] sm:$0xff]  ;;  %v1626_v15 = vld [vmem:[#allocation2 + $0x90] sm:$0xff]  ;;  %v1627_v0 = vld [vmem:[#allocation2 + $0xe0] sm:$0xff] }
 0x2d1   : > { %1771 = vst [vmem:[%s2077_s26] sm:$0xff] %v1731_v21  ;;  %v1662_v54 = vadd.f32 %v2889_v52, %v1616_v14  ;;  %v1736_v17 = vmin.f32 %v1696_v59, -8162.0  ;;  %v1663_v61 = vadd.f32 %v2887_v23, %v1617_v42  ;;  %v1664_v55 = vadd.f32 %v2889_v52, %v1618_v33  ;;  %v1628_v9 = vld [vmem:[#allocation2 + $0x88] sm:$0xff]  ;;  %v1629_v11 = vld [vmem:[#allocation2 + $0xc0] sm:$0xff]  ;;  %v1630_v16 = vld [vmem:[#allocation2 + $0x118] sm:$0xff] }
 0x2d2   : > { %1772 = vst [vmem:[%s2077_s26 + $0x8] sm:$0xff] %v1732_v1  ;;  %v1665_v29 = vadd.f32 %v2887_v23, %v1619_v63  ;;  %v1737_v49 = vmin.f32 %v1697_v51, -8162.0  ;;  %v1699_v56 = vmax.f32 %v1659_v38, 753.0  ;;  %v1700_v37 = vmax.f32 %v1660_v22, 753.0  ;;  %v1631_v2 = vld [vmem:[#allocation2 + $0xd8] sm:$0xff]  ;;  %v1632_v1 = vld [vmem:[#allocation2 + $0xa0] sm:$0xff] }
 0x2d3   : > { %1773 = vst [vmem:[%s2077_s26 + $0x10] sm:$0xff] %v1733_v43  ;;  %v1701_v27 = vmax.f32 %v1661_v7, 753.0  ;;  %v1738_v40 = vmin.f32 %v1698_v36, -8162.0  ;;  %v1702_v20 = vmax.f32 %v1662_v54, 753.0  ;;  %v1666_v34 = vadd.f32 %v2889_v52, %v1620_v53  ;;  %v1633_v63 = vld [vmem:[#allocation2 + $0x68] sm:$0xff]  ;;  %v1634_v38 = vld [vmem:[#allocation2 + $0x130] sm:$0xff] }
 0x2d4   : > { %1774 = vst [vmem:[%s2077_s26 + $0x18] sm:$0xff] %v1734_v47  ;;  %v1739_v62 = vmin.f32 %v1699_v56, -8162.0  ;;  %v1703_v18 = vmax.f32 %v1663_v61, 753.0  ;;  %v1740_v41 = vmin.f32 %v1700_v37, -8162.0  ;;  %v1704_v4 = vmax.f32 %v1664_v55, 753.0  ;;  %v1635_v53 = vld [vmem:[#allocation2 + $0x50] sm:$0xff] }
 0x2d5   : > { %1775 = vst [vmem:[%s2077_s26 + $0x20] sm:$0xff] %v1735_v30  ;;  %v1705_v45 = vmax.f32 %v1665_v29, 753.0  ;;  %v1741_v6 = vmin.f32 %v1701_v27, -8162.0  ;;  %v1667_v58 = vadd.f32 %v2887_v23, %v1621_v39  ;;  %v1668_v26 = vadd.f32 %v2889_v52, %v1622_v28  ;;  %v1636_v29 = vld [vmem:[#allocation2 + $0xe8] sm:$0xff]  ;;  %v1637_v27 = vld [vmem:[#allocation2 + $0x58] sm:$0xff] }
 0x2d6   : > { %1776 = vst [vmem:[%s2077_s26 + $0x28] sm:$0xff] %v1736_v17  ;;  %v1669_v57 = vadd.f32 %v2887_v23, %v1623_v35  ;;  %v1742_v32 = vmin.f32 %v1702_v20, -8162.0  ;;  %v1706_v12 = vmax.f32 %v1666_v34, 753.0  ;;  %v1670_v50 = vadd.f32 %v2889_v52, %v1624_v48  ;;  %v1638_v39 = vld [vmem:[#allocation2 + $0x78] sm:$0xff] }
 0x2d7   : > { %1777 = vst [vmem:[%s2077_s26 + $0x30] sm:$0xff] %v1737_v49  ;;  %v1743_v3 = vmin.f32 %v1703_v18, -8162.0  ;;  %v1707_v25 = vmax.f32 %v1667_v58, 753.0  ;;  %v1671_v46 = vadd.f32 %v2887_v23, %v1625_v13  ;;  %v1744_v19 = vmin.f32 %v1704_v4, -8162.0  ;;  %v1639_v18 = vld [vmem:[#allocation2 + $0x30] sm:$0xff] }
 0x2d8   : > { %1778 = vst [vmem:[%s2077_s26 + $0x38] sm:$0xff] %v1738_v40  ;;  %v1708_v44 = vmax.f32 %v1668_v26, 753.0  ;;  %v1672_v5 = vadd.f32 %v2889_v52, %v1626_v15  ;;  %v1745_v24 = vmin.f32 %v1705_v45, -8162.0  ;;  %v1709_v10 = vmax.f32 %v1669_v57, 753.0  ;;  %v1640_v45 = vld [vmem:[#allocation2 + $0x40] sm:$0xff]  ;;  %v1641_v26 = vld [vmem:[#allocation2 + $0x28] sm:$0xff] }
 0x2d9   : > { %1779 = vst [vmem:[%s2077_s26 + $0x40] sm:$0xff] %v1739_v62  ;;  %v1673_v8 = vadd.f32 %v2887_v23, %v1627_v0  ;;  %v1746_v60 = vmin.f32 %v1706_v12, -8162.0  ;;  %v1710_v31 = vmax.f32 %v1670_v50, 753.0  ;;  %v1674_v59 = vadd.f32 %v2889_v52, %v1628_v9  ;;  %v1642_v12 = vld [vmem:[#allocation2] sm:$0xff] }
 0x2da   : > { %1780 = vst [vmem:[%s2077_s26 + $0x48] sm:$0xff] %v1740_v41  ;;  %v1747_v14 = vmin.f32 %v1707_v25, -8162.0  ;;  %v1711_v42 = vmax.f32 %v1671_v46, 753.0  ;;  %v1675_v21 = vadd.f32 %v2887_v23, %v1629_v11  ;;  %v1748_v43 = vmin.f32 %v1708_v44, -8162.0  ;;  %v1643_v25 = vld [vmem:[#allocation2 + $0xb8] sm:$0xff]  ;;  %v1644_v44 = vld [vmem:[#allocation2 + $0x60] sm:$0xff] }
 0x2db   : > { %1781 = vst [vmem:[%s2077_s26 + $0x50] sm:$0xff] %v1741_v6  ;;  %v1712_v51 = vmax.f32 %v1672_v5, 753.0  ;;  %v1676_v33 = vadd.f32 %v2889_v52, %v1630_v16  ;;  %v1749_v47 = vmin.f32 %v1709_v10, -8162.0  ;;  %v1713_v30 = vmax.f32 %v1673_v8, 753.0 }
 0x2dc   : > { %1782 = vst [vmem:[%s2077_s26 + $0x58] sm:$0xff] %v1742_v32  ;;  %v1677_v36 = vadd.f32 %v2887_v23, %v1631_v2  ;;  %v1750_v22 = vmin.f32 %v1710_v31, -8162.0  ;;  %v1714_v7 = vmax.f32 %v1674_v59, 753.0  ;;  %v1678_v54 = vadd.f32 %v2889_v52, %v1632_v1 }
 0x2dd   : > { %1783 = vst [vmem:[%s2077_s26 + $0x60] sm:$0xff] %v1743_v3  ;;  %v1751_v17 = vmin.f32 %v1711_v42, -8162.0  ;;  %v1715_v61 = vmax.f32 %v1675_v21, 753.0  ;;  %v1679_v55 = vadd.f32 %v2887_v23, %v1633_v63  ;;  %v1752_v49 = vmin.f32 %v1712_v51, -8162.0 }
 0x2de   : > { %1784 = vst [vmem:[%s2077_s26 + $0x68] sm:$0xff] %v1744_v19  ;;  %v1716_v56 = vmax.f32 %v1676_v33, 753.0  ;;  %v1680_v37 = vadd.f32 %v2889_v52, %v1634_v38  ;;  %v1753_v40 = vmin.f32 %v1713_v30, -8162.0  ;;  %v1717_v20 = vmax.f32 %v1677_v36, 753.0 }
 0x2df   : > { %1785 = vst [vmem:[%s2077_s26 + $0x70] sm:$0xff] %v1745_v24  ;;  %v1681_v34 = vadd.f32 %v2887_v23, %v1635_v53  ;;  %v1754_v28 = vmin.f32 %v1714_v7, -8162.0  ;;  %v1718_v35 = vmax.f32 %v1678_v54, 753.0  ;;  %v1682_v62 = vadd.f32 %v2889_v52, %v1636_v29 }
 0x2e0   : > { %1786 = vst [vmem:[%s2077_s26 + $0x78] sm:$0xff] %v1746_v60  ;;  %v1755_v48 = vmin.f32 %v1715_v61, -8162.0  ;;  %v1719_v41 = vmax.f32 %v1679_v55, 753.0  ;;  %v1683_v4 = vadd.f32 %v2887_v23, %v1637_v27  ;;  %v1756_v13 = vmin.f32 %v1716_v56, -8162.0 }
 0x2e1   : > { %1787 = vst [vmem:[%s2077_s26 + $0x80] sm:$0xff] %v1747_v14  ;;  %v1720_v6 = vmax.f32 %v1680_v37, 753.0  ;;  %v1684_v58 = vadd.f32 %v2889_v52, %v1638_v39  ;;  %v1757_v57 = vmin.f32 %v1717_v20, -8162.0  ;;  %v1721_v15 = vmax.f32 %v1681_v34, 753.0 }
 0x2e2   : > { %1788 = vst [vmem:[%s2077_s26 + $0x88] sm:$0xff] %v1748_v43  ;;  %v1685_v32 = vadd.f32 %v2887_v23, %v1639_v18  ;;  %v1758_v50 = vmin.f32 %v1718_v35, -8162.0  ;;  %v1722_v0 = vmax.f32 %v1682_v62, 753.0  ;;  %v1686_v3 = vadd.f32 %v2889_v52, %v1640_v45 }
 0x2e3   : > { %1789 = vst [vmem:[%s2077_s26 + $0x90] sm:$0xff] %v1749_v47  ;;  %v1759_v46 = vmin.f32 %v1719_v41, -8162.0  ;;  %v1723_v9 = vmax.f32 %v1683_v4, 753.0  ;;  %v1687_v19 = vadd.f32 %v2887_v23, %v1641_v26  ;;  %v1760_v5 = vmin.f32 %v1720_v6, -8162.0 }
 0x2e4   : > { %1790 = vst [vmem:[%s2077_s26 + $0x98] sm:$0xff] %v1750_v22  ;;  %v1724_v11 = vmax.f32 %v1684_v58, 753.0  ;;  %v1688_v24 = vadd.f32 %v2889_v52, %v1642_v12  ;;  %v1761_v10 = vmin.f32 %v1721_v15, -8162.0  ;;  %v1725_v8 = vmax.f32 %v1685_v32, 753.0 }
 0x2e5   : > { %1791 = vst [vmem:[%s2077_s26 + $0xa0] sm:$0xff] %v1751_v17  ;;  %v1689_v16 = vadd.f32 %v2887_v23, %v1643_v25  ;;  %v1762_v60 = vmin.f32 %v1722_v0, -8162.0  ;;  %v1726_v31 = vmax.f32 %v1686_v3, 753.0  ;;  %v1690_v59 = vadd.f32 %v2889_v52, %v1644_v44 }
 0x2e6   : > { %1792 = vst [vmem:[%s2077_s26 + $0xa8] sm:$0xff] %v1752_v49  ;;  %v1763_v2 = vmin.f32 %v1723_v9, -8162.0  ;;  %v1727_v14 = vmax.f32 %v1687_v19, 753.0  ;;  %v1764_v42 = vmin.f32 %v1724_v11, -8162.0  ;;  %v1728_v21 = vmax.f32 %v1688_v24, 753.0 }
 0x2e7   : > { %1793 = vst [vmem:[%s2077_s26 + $0xb0] sm:$0xff] %v1753_v40  ;;  %v1765_v23 = vmin.f32 %v1725_v8, -8162.0  ;;  %v1729_v1 = vmax.f32 %v1689_v16, 753.0  ;;  %v1766_v43 = vmin.f32 %v1726_v31, -8162.0  ;;  %v1730_v51 = vmax.f32 %v1690_v59, 753.0 }
 0x2e8   : > { %1794 = vst [vmem:[%s2077_s26 + $0xb8] sm:$0xff] %v1754_v28  ;;  %v1767_v52 = vmin.f32 %v1727_v14, -8162.0  ;;  %v1768_v33 = vmin.f32 %v1728_v21, -8162.0 }
 0x2e9   : > { %1795 = vst [vmem:[%s2077_s26 + $0xc0] sm:$0xff] %v1755_v48  ;;  %v1769_v63 = vmin.f32 %v1729_v1, -8162.0  ;;  %v1770_v47 = vmin.f32 %v1730_v51, -8162.0 }
 0x2ea   : > { %1796 = vst [vmem:[%s2077_s26 + $0xc8] sm:$0xff] %v1756_v13 }
 0x2eb   : > { %1797 = vst [vmem:[%s2077_s26 + $0xd0] sm:$0xff] %v1757_v57 }
 0x2ec   : > { %1798 = vst [vmem:[%s2077_s26 + $0xd8] sm:$0xff] %v1758_v50 }
 0x2ed   : > { %1799 = vst [vmem:[%s2077_s26 + $0xe0] sm:$0xff] %v1759_v46 }
 0x2ee   : > { %1800 = vst [vmem:[%s2077_s26 + $0xe8] sm:$0xff] %v1760_v5 }
 0x2ef   : > { %1801 = vst [vmem:[%s2077_s26 + $0xf0] sm:$0xff] %v1761_v10 }
 0x2f0   : > { %1802 = vst [vmem:[%s2077_s26 + $0xf8] sm:$0xff] %v1762_v60 }
 0x2f1   : > { %1803 = vst [vmem:[%s2077_s26 + $0x100] sm:$0xff] %v1763_v2 }
 0x2f2   : > { %1804 = vst [vmem:[%s2077_s26 + $0x108] sm:$0xff] %v1764_v42 }
 0x2f3   : > { %1805 = vst [vmem:[%s2077_s26 + $0x110] sm:$0xff] %v1765_v23 }
 0x2f4   : > { %1806 = vst [vmem:[%s2077_s26 + $0x118] sm:$0xff] %v1766_v43 }
 0x2f5   : > { %1807 = vst [vmem:[%s2077_s26 + $0x120] sm:$0xff] %v1767_v52 }
 0x2f6   : > { %1808 = vst [vmem:[%s2077_s26 + $0x128] sm:$0xff] %v1768_v33 }
 0x2f7   : > { %1809 = vst [vmem:[%s2077_s26 + $0x130] sm:$0xff] %v1769_v63 }
 0x2f8   : > { %1810 = vst [vmem:[%s2077_s26 + $0x138] sm:$0xff] %v1770_v47 }
 0x2f9 PF: > { %s13_s16 = sadd.s32 1, %s2018_s16   ;;  %s3020_s12 = smov %s2010_s14 }
 0x2fa   : > { %p10_p9 = scmp.ge.s32.totalorder %s13_s16, 14   ;;  %s3021_s13 = smov %s2014_s15 }
 0x2fb   : > { %s3022_s14 = smov %s3025_s17  ;;  %s3023_s15 = smov %s3029_s18 }
 0x2fc   :  { %12 = sbr.rel (!%p10_p9) target bundleno = 3 (0x3), region = 71 }

</bundles_post_ra>
